<compile_context>
chip_gen: v6e
topology: v6e:2x2x1
jax: 0.10.0
libtpu: 0.0.40
codegen_flags: <defaults>
</compile_context>

<pallas_src>
import functools

import jax
import jax.numpy as jnp
import numpy as np
from jax import lax
from jax.experimental import pallas as pl
from jax.experimental.pallas import tpu as pltpu

_LAYER_CHANNELS = [(3, 32), (32, 64), (64, 128), (128, 128)]
_NEG_SLOPE = 0.2
_MXU_K = 256      # target contraction depth per matmul (fills the 256-deep MXU on v6e/v7x)


def _cdiv(a, b):
    return -(-a // b)


def _round_up(x, m):
    return _cdiv(x, m) * m


def _layout(H, W):
    """Flat padded-row layout constants."""
    Wp = W + 2                                  # row stride (W valid cols + 2 pad cols)
    m_flat = H * Wp                             # flat rows carrying real outputs
    n_strips = _cdiv(m_flat, 128)               # ~128-row strips keep the accumulator in vregs
    m_strip = _round_up(_cdiv(m_flat, n_strips), 16)   # 16: bf16 sublane-pack aligned strips
    m_pad = m_strip * n_strips
    off = _round_up(Wp + 1, 8)                  # sublane-aligned store offset into padded bufs
    buf_len = _round_up(off + m_pad + Wp + 1, 8)
    return Wp, m_flat, n_strips, m_strip, m_pad, off, buf_len


def _tap_groups(cin):
    """Taps per matmul group so the concatenated K = g*cin fills (<=) the MXU depth."""
    g = max(1, _MXU_K // cin)
    n_groups = _cdiv(9, g)
    return g, n_groups


def _encoder_kernel(x1_ref, w1_ref, b1_ref, w2_ref, b2_ref, w3_ref, b3_ref,
                    w4_ref, b4_ref, o_ref, buf2, buf3, buf4,
                    *, W, m_strip, n_strips, m_flat, off):
    Wp = W + 2

    # Zero the padded activation buffers: the prefix [0, off), the per-row gap columns and
    # the suffix beyond the stored region act as every layer's zero padding.  Re-zeroed each
    # grid step so the batch axis stays embarrassingly parallel (megacore safe).
    buf2[...] = jnp.zeros(buf2.shape, buf2.dtype)
    buf3[...] = jnp.zeros(buf3.shape, buf3.dtype)
    buf4[...] = jnp.zeros(buf4.shape, buf4.dtype)

    def strip_mask(m0):
        m = lax.broadcasted_iota(jnp.int32, (m_strip, 1), 0) + m0
        return jnp.logical_and(m % Wp < W, m < m_flat)   # kill junk cols / overrun rows

    def leaky_relu(a):
        return jnp.where(a >= 0, a, _NEG_SLOPE * a)

    # ---- layer 1: single K=27 im2col matmul per strip (wrapper builds the bf16 im2col) ----
    def l1_body(s, carry):
        m0 = pl.multiple_of(s * m_strip, 16)
        lhs = x1_ref[0, pl.ds(m0, m_strip), :]                  # already bf16
        acc = jnp.dot(lhs, w1_ref[...], preferred_element_type=jnp.float32)
        acc = leaky_relu(acc + b1_ref[...])
        acc = jnp.where(strip_mask(m0), acc, 0.0)
        buf2[pl.ds(off + m0, m_strip), :] = acc
        return carry

    lax.fori_loop(0, n_strips, l1_body, 0)

    # ---- layers 2..4: tap-grouped (K = 256) contiguous flat-window matmuls per strip -------
    def conv3x3_layer(src, w_ref, b_ref, dst, apply_lrelu):
        cin = src.shape[-1]
        n_groups, gk, cout = w_ref.shape
        g = gk // cin
        # tap t -> flat-row offset of its input window; padded (zero-weight) taps reuse an
        # in-bounds window (tap 8), contributing exactly zero.
        tap_off = [((t // 3) * Wp + (t % 3)) if t < 9 else (2 * Wp + 2)
                   for t in range(g * n_groups)]

        def body(s, carry):
            m0 = pl.multiple_of(s * m_strip, 16)
            base = off - (Wp + 1) + m0
            acc = jnp.zeros((m_strip, cout), jnp.float32)
            for grp in range(n_groups):                          # static unroll
                pieces = [
                    src[pl.ds(base + tap_off[grp * g + p], m_strip), :].astype(jnp.bfloat16)
                    for p in range(g)
                ]
                lhs = pieces[0] if g == 1 else jnp.concatenate(pieces, axis=1)
                acc = acc + jnp.dot(lhs, w_ref[grp], preferred_element_type=jnp.float32)
            acc = acc + b_ref[...]
            if apply_lrelu:
                acc = leaky_relu(acc)
            if dst is None:
                # final layer: lane-dense (128) write straight to the HBM output block;
                # junk columns are sliced off in the wrapper.
                o_ref[0, pl.ds(m0, m_strip), :] = acc
            else:
                acc = jnp.where(strip_mask(m0), acc, 0.0)
                dst[pl.ds(off + m0, m_strip), :] = acc
            return carry

        lax.fori_loop(0, n_strips, body, 0)

    conv3x3_layer(buf2, w2_ref, b2_ref, buf3, apply_lrelu=True)
    conv3x3_layer(buf3, w3_ref, b3_ref, buf4, apply_lrelu=True)
    conv3x3_layer(buf4, w4_ref, b4_ref, None, apply_lrelu=False)


def _im2col_3x3(x_nhwc, Wp, m_pad):
    """(N, H, W, C) -> (N, m_pad, 9*C); rows indexed by i*Wp + j (2 junk cols/row, masked in-kernel)."""
    N, H, W, C = x_nhwc.shape
    xp = jnp.pad(x_nhwc, ((0, 0), (1, 1), (1, 3), (0, 0)))
    taps = [xp[:, kh:kh + H, kw:kw + Wp, :] for kh in range(3) for kw in range(3)]
    cols = jnp.stack(taps, axis=3)                      # (N, H, Wp, 9, C)  -- (kh,kw,cin) order
    cols = cols.reshape(N, H * Wp, 9 * C)
    return jnp.pad(cols, ((0, 0), (0, m_pad - H * Wp), (0, 0)))


def _group_weights(w):
    """(3,3,cin,cout) -> (G, g*cin, cout) bf16, taps zero-padded to a multiple of the group size."""
    _, _, cin, cout = w.shape
    g, n_groups = _tap_groups(cin)
    taps = w.reshape(9, cin, cout)
    n_pad = g * n_groups - 9
    if n_pad:
        taps = jnp.concatenate([taps, jnp.zeros((n_pad, cin, cout), w.dtype)], axis=0)
    return taps.reshape(n_groups, g * cin, cout).astype(jnp.bfloat16)


@jax.jit
def encoder_forward(x_nchw, params):
    """Matches Encoder.forward: NCHW f32 in, NCHW f32 out (N, 128, H, W)."""
    x = jnp.transpose(x_nchw, (0, 2, 3, 1)).astype(jnp.float32)   # NHWC
    N, H, W, _ = x.shape
    Wp, m_flat, n_strips, m_strip, m_pad, off, buf_len = _layout(H, W)

    (w1, b1), (w2, b2), (w3, b3), (w4, b4) = params
    c1, c2, c3, c4 = (c for _, c in _LAYER_CHANNELS)

    x1 = _im2col_3x3(x, Wp, m_pad).astype(jnp.bfloat16)            # (N, m_pad, 27)
    w1f = w1.reshape(9 * w1.shape[2], c1).astype(jnp.bfloat16)     # (27, 32)
    w2g = _group_weights(w2)                                       # (2, 256, 64)
    w3g = _group_weights(w3)                                       # (3, 256, 128)
    w4g = _group_weights(w4)                                       # (5, 256, 128)
    b1f = b1.reshape(1, c1).astype(jnp.float32)
    b2f = b2.reshape(1, c2).astype(jnp.float32)
    b3f = b3.reshape(1, c3).astype(jnp.float32)
    b4f = b4.reshape(1, c4).astype(jnp.float32)

    kernel = functools.partial(_encoder_kernel, W=W, m_strip=m_strip,
                               n_strips=n_strips, m_flat=m_flat, off=off)

    out_flat = pl.pallas_call(
        kernel,
        out_shape=jax.ShapeDtypeStruct((N, m_pad, c4), jnp.float32),
        grid_spec=pltpu.PrefetchScalarGridSpec(
            num_scalar_prefetch=0,
            grid=(N,),
            in_specs=[
                pl.BlockSpec((1, m_pad, x1.shape[-1]), lambda n: (n, 0, 0)),
                pl.BlockSpec(w1f.shape, lambda n: (0, 0)),
                pl.BlockSpec(b1f.shape, lambda n: (0, 0)),
                pl.BlockSpec(w2g.shape, lambda n: (0, 0, 0)),
                pl.BlockSpec(b2f.shape, lambda n: (0, 0)),
                pl.BlockSpec(w3g.shape, lambda n: (0, 0, 0)),
                pl.BlockSpec(b3f.shape, lambda n: (0, 0)),
                pl.BlockSpec(w4g.shape, lambda n: (0, 0, 0)),
                pl.BlockSpec(b4f.shape, lambda n: (0, 0)),
            ],
            out_specs=pl.BlockSpec((1, m_pad, c4), lambda n: (n, 0, 0)),
            scratch_shapes=[
                pltpu.VMEM((buf_len, c1), jnp.float32),   # layer-1 output (padded flat layout)
                pltpu.VMEM((buf_len, c2), jnp.float32),   # layer-2 output
                pltpu.VMEM((buf_len, c3), jnp.float32),   # layer-3 output
            ],
        ),
        compiler_params=pltpu.CompilerParams(
            dimension_semantics=("parallel",),
            vmem_limit_bytes=32 * 1024 * 1024,
        ),
    )(x1, w1f, b1f, w2g, b2f, w3g, b3f, w4g, b4f)

    out = out_flat[:, :m_flat, :].reshape(N, H, Wp, c4)[:, :, :W, :]   # drop junk cols
    return jnp.transpose(out, (0, 3, 1, 2))                            # -> NCHW


def init_params(key):
    """Deterministic synthetic init (PyTorch-style uniform(-1/sqrt(fan_in), +))."""
    params = []
    for i, (cin, cout) in enumerate(_LAYER_CHANNELS):
        kw_key, kb_key = jax.random.split(jax.random.fold_in(key, i))
        fan_in = cin * 3 * 3
        bound = 1.0 / np.sqrt(fan_in)
        w = jax.random.uniform(kw_key, (3, 3, cin, cout), jnp.float32, -bound, bound)
        b = jax.random.uniform(kb_key, (cout,), jnp.float32, -bound, bound)
        params.append((w, b))
    return params


def _reference_forward(x_nchw, params):
    x = jnp.transpose(x_nchw, (0, 2, 3, 1))
    n_layers = len(params)
    for i, (w, b) in enumerate(params):
        x = lax.conv_general_dilated(
            x, w, window_strides=(1, 1), padding="SAME",
            dimension_numbers=("NHWC", "HWIO", "NHWC")) + b
        if i < n_layers - 1:
            x = jnp.where(x >= 0, x, _NEG_SLOPE * x)
    return jnp.transpose(x, (0, 3, 1, 2))


if __name__ == "__main__":
    key = jax.random.PRNGKey(0)
    pkey, xkey = jax.random.split(key)
    params = init_params(pkey)
    x = jax.random.normal(xkey, (2, 3, 16, 16), jnp.float32)   # NCHW like PyTorch

    out = jax.block_until_ready(encoder_forward(x, params))
    ref = jax.block_until_ready(_reference_forward(x, params))

    assert out.shape == (2, 128, 16, 16), out.shape
    # bf16 MXU operands (f32 accumulation) vs. the pure-f32 reference -> relaxed tolerance.
    err = float(np.max(np.abs(np.asarray(out) - np.asarray(ref))))
    assert np.allclose(np.asarray(out), np.asarray(ref), rtol=5e-2, atol=5e-2), err

    print("KERNEL_OK")
</pallas_src>

<mosaic_0001>
module attributes {stable_mosaic.version = 11 : i64} {
  func.func @_encoder_kernel(%arg0: i32, %arg1: memref<1x288x27xbf16, #tpu.memory_space<vmem>>, %arg2: memref<27x32xbf16, #tpu.memory_space<vmem>>, %arg3: memref<1x32xf32, #tpu.memory_space<vmem>>, %arg4: memref<2x256x64xbf16, #tpu.memory_space<vmem>>, %arg5: memref<1x64xf32, #tpu.memory_space<vmem>>, %arg6: memref<3x256x128xbf16, #tpu.memory_space<vmem>>, %arg7: memref<1x128xf32, #tpu.memory_space<vmem>>, %arg8: memref<5x256x128xbf16, #tpu.memory_space<vmem>>, %arg9: memref<1x128xf32, #tpu.memory_space<vmem>>, %arg10: memref<1x288x128xf32, #tpu.memory_space<vmem>>, %arg11: memref<336x32xf32, #tpu.memory_space<vmem>>, %arg12: memref<336x64xf32, #tpu.memory_space<vmem>>, %arg13: memref<336x128xf32, #tpu.memory_space<vmem>>) attributes {dimension_semantics = [#tpu.dimension_semantics<parallel>], iteration_bounds = array<i64: 2>, scalar_prefetch = 0 : i64, scratch_operands = 3 : i64, tpu.core_type = #tpu.core_type<tc>, window_params = [{transform_indices = @transform_0, window_bounds = array<i64: 1, 288, 27>}, {pipeline_mode = #tpu.pipeline_mode<synchronous>, transform_indices = @transform_1, window_bounds = array<i64: 27, 32>}, {pipeline_mode = #tpu.pipeline_mode<synchronous>, transform_indices = @transform_2, window_bounds = array<i64: 1, 32>}, {pipeline_mode = #tpu.pipeline_mode<synchronous>, transform_indices = @transform_3, window_bounds = array<i64: 2, 256, 64>}, {pipeline_mode = #tpu.pipeline_mode<synchronous>, transform_indices = @transform_4, window_bounds = array<i64: 1, 64>}, {pipeline_mode = #tpu.pipeline_mode<synchronous>, transform_indices = @transform_5, window_bounds = array<i64: 3, 256, 128>}, {pipeline_mode = #tpu.pipeline_mode<synchronous>, transform_indices = @transform_6, window_bounds = array<i64: 1, 128>}, {pipeline_mode = #tpu.pipeline_mode<synchronous>, transform_indices = @transform_7, window_bounds = array<i64: 5, 256, 128>}, {pipeline_mode = #tpu.pipeline_mode<synchronous>, transform_indices = @transform_8, window_bounds = array<i64: 1, 128>}, {transform_indices = @transform_9, window_bounds = array<i64: 1, 288, 128>}]} {
    %cst = arith.constant 0.000000e+00 : f32
    %0 = vector.broadcast %cst : f32 to vector<336x32xf32>
    %c0 = arith.constant 0 : index
    %c0_0 = arith.constant 0 : index
    %1 = vector.load %arg11[%c0, %c0_0] : memref<336x32xf32, #tpu.memory_space<vmem>>, vector<336x32xf32>
    tpu.vector_store %arg11[%c0, %c0_0], %0 {strides = array<i32>} : memref<336x32xf32, #tpu.memory_space<vmem>>, vector<336x32xf32>,
    %cst_1 = arith.constant 0.000000e+00 : f32
    %2 = vector.broadcast %cst_1 : f32 to vector<336x64xf32>
    %c0_2 = arith.constant 0 : index
    %c0_3 = arith.constant 0 : index
    %3 = vector.load %arg12[%c0_2, %c0_3] : memref<336x64xf32, #tpu.memory_space<vmem>>, vector<336x64xf32>
    tpu.vector_store %arg12[%c0_2, %c0_3], %2 {strides = array<i32>} : memref<336x64xf32, #tpu.memory_space<vmem>>, vector<336x64xf32>,
    %cst_4 = arith.constant 0.000000e+00 : f32
    %4 = vector.broadcast %cst_4 : f32 to vector<336x128xf32>
    %c0_5 = arith.constant 0 : index
    %c0_6 = arith.constant 0 : index
    %5 = vector.load %arg13[%c0_5, %c0_6] : memref<336x128xf32, #tpu.memory_space<vmem>>, vector<336x128xf32>
    tpu.vector_store %arg13[%c0_5, %c0_6], %4 {strides = array<i32>} : memref<336x128xf32, #tpu.memory_space<vmem>>, vector<336x128xf32>,
    %c0_i32 = arith.constant 0 : i32
    %c3_i32 = arith.constant 3 : i32
    %6 = arith.addi %c0_i32, %c3_i32 : i32
    %c1_i32 = arith.constant 1 : i32
    scf.for %arg14 = %c0_i32 to %6 step %c1_i32  : i32 {
      %c96_i32 = arith.constant 96 : i32
      %10 = arith.muli %arg14, %c96_i32 : i32
      %11 = tpu.assume_multiple %10, 16 : i32
      %c0_20 = arith.constant 0 : index
      %12 = arith.index_cast %11 : i32 to index
      %c0_21 = arith.constant 0 : index
      %13 = vector.load %arg1[%c0_20, %12, %c0_21] : memref<1x288x27xbf16, #tpu.memory_space<vmem>>, vector<1x96x27xbf16>
      %14 = vector.shape_cast %13 : vector<1x96x27xbf16> to vector<96x27xbf16>
      %c0_22 = arith.constant 0 : index
      %c0_23 = arith.constant 0 : index
      %15 = vector.load %arg2[%c0_22, %c0_23] : memref<27x32xbf16, #tpu.memory_space<vmem>>, vector<27x32xbf16>
      %cst_24 = arith.constant dense<0.000000e+00> : vector<96x32xf32>
      %16 = tpu.matmul %14, %15, %cst_24 {dimension_numbers = #tpu.dot_dimension_numbers<[1], [0], [0], [1], [0, 0, 1, 1], [], []>} : vector<96x27xbf16>, vector<27x32xbf16>, vector<96x32xf32> -> vector<96x32xf32>
      %c0_25 = arith.constant 0 : index
      %c0_26 = arith.constant 0 : index
      %17 = vector.load %arg3[%c0_25, %c0_26] : memref<1x32xf32, #tpu.memory_space<vmem>>, vector<1x32xf32>
      %18 = vector.broadcast %17 : vector<1x32xf32> to vector<96x32xf32>
      %19 = arith.addf %16, %18 : vector<96x32xf32>
      %cst_27 = arith.constant 0.000000e+00 : f32
      %20 = vector.broadcast %cst_27 : f32 to vector<96x32xf32>
      %21 = arith.cmpf oge, %19, %20 : vector<96x32xf32>
      %cst_28 = arith.constant 2.000000e-01 : f32
      %22 = vector.broadcast %cst_28 : f32 to vector<96x32xf32>
      %23 = arith.mulf %22, %19 : vector<96x32xf32>
      %24 = arith.select %21, %19, %23 : vector<96x32xi1>, vector<96x32xf32>
      %25 = tpu.iota {dimensions = array<i32: 0>} : vector<96x1xi32>
      %26 = vector.broadcast %11 : i32 to vector<96x1xi32>
      %27 = arith.addi %25, %26 : vector<96x1xi32>
      %c18_i32 = arith.constant 18 : i32
      %c0_i32_29 = arith.constant 0 : i32
      %28 = arith.cmpi eq, %c18_i32, %c0_i32_29 : i32
      %c1_i32_30 = arith.constant 1 : i32
      %29 = arith.select %28, %c1_i32_30, %c18_i32 : i32
      %30 = vector.broadcast %29 : i32 to vector<96x1xi32>
      %31 = arith.remsi %27, %30 : vector<96x1xi32>
      %c0_i32_31 = arith.constant 0 : i32
      %32 = vector.broadcast %c0_i32_31 : i32 to vector<96x1xi32>
      %33 = arith.cmpi ne, %31, %32 : vector<96x1xi32>
      %c0_i32_32 = arith.constant 0 : i32
      %34 = vector.broadcast %c0_i32_32 : i32 to vector<96x1xi32>
      %35 = arith.cmpi slt, %31, %34 : vector<96x1xi32>
      %c0_i32_33 = arith.constant 0 : i32
      %36 = arith.cmpi slt, %29, %c0_i32_33 : i32
      %37 = vector.broadcast %36 : i1 to vector<96x1xi1>
      %38 = vector.broadcast %37 : vector<96x1xi1> to vector<96x1xi1>
      %39 = arith.xori %35, %38 : vector<96x1xi1>
      %40 = arith.andi %39, %33 : vector<96x1xi1>
      %41 = vector.broadcast %29 : i32 to vector<96x1xi32>
      %42 = arith.addi %31, %41 : vector<96x1xi32>
      %43 = arith.select %40, %42, %31 : vector<96x1xi1>, vector<96x1xi32>
      %c16_i32 = arith.constant 16 : i32
      %44 = vector.broadcast %c16_i32 : i32 to vector<96x1xi32>
      %45 = arith.cmpi slt, %43, %44 : vector<96x1xi32>
      %c288_i32 = arith.constant 288 : i32
      %46 = vector.broadcast %c288_i32 : i32 to vector<96x1xi32>
      %47 = arith.cmpi slt, %27, %46 : vector<96x1xi32>
      %48 = arith.andi %45, %47 : vector<96x1xi1>
      %cst_34 = arith.constant 0.000000e+00 : f32
      %49 = vector.shape_cast %48 : vector<96x1xi1> to vector<96x1xi1>
      %50 = vector.broadcast %49 : vector<96x1xi1> to vector<96x32xi1>
      %51 = vector.broadcast %cst_34 : f32 to vector<96x32xf32>
      %52 = arith.select %50, %24, %51 : vector<96x32xi1>, vector<96x32xf32>
      %c24_i32 = arith.constant 24 : i32
      %53 = arith.addi %c24_i32, %11 : i32
      %54 = arith.index_cast %53 : i32 to index
      %c0_35 = arith.constant 0 : index
      %55 = vector.load %arg11[%54, %c0_35] : memref<336x32xf32, #tpu.memory_space<vmem>>, vector<96x32xf32>
      tpu.vector_store %arg11[%54, %c0_35], %52 {strides = array<i32>} : memref<336x32xf32, #tpu.memory_space<vmem>>, vector<96x32xf32>,
    }
    %c3_i32_7 = arith.constant 3 : i32
    %c0_i32_8 = arith.constant 0 : i32
    %c3_i32_9 = arith.constant 3 : i32
    %7 = arith.addi %c0_i32_8, %c3_i32_9 : i32
    %c1_i32_10 = arith.constant 1 : i32
    scf.for %arg14 = %c0_i32_8 to %7 step %c1_i32_10  : i32 {
      %c96_i32 = arith.constant 96 : i32
      %10 = arith.muli %arg14, %c96_i32 : i32
      %11 = tpu.assume_multiple %10, 16 : i32
      %c5_i32 = arith.constant 5 : i32
      %12 = arith.addi %c5_i32, %11 : i32
      %cst_20 = arith.constant 0.000000e+00 : f32
      %13 = vector.broadcast %cst_20 : f32 to vector<96x64xf32>
      %c0_i32_21 = arith.constant 0 : i32
      %14 = arith.addi %12, %c0_i32_21 : i32
      %15 = arith.index_cast %14 : i32 to index
      %c0_22 = arith.constant 0 : index
      %16 = vector.load %arg11[%15, %c0_22] : memref<336x32xf32, #tpu.memory_space<vmem>>, vector<96x32xf32>
      %17 = arith.truncf %16 : vector<96x32xf32> to vector<96x32xbf16>
      %c1_i32_23 = arith.constant 1 : i32
      %18 = arith.addi %12, %c1_i32_23 : i32
      %19 = arith.index_cast %18 : i32 to index
      %c0_24 = arith.constant 0 : index
      %20 = vector.load %arg11[%19, %c0_24] : memref<336x32xf32, #tpu.memory_space<vmem>>, vector<96x32xf32>
      %21 = arith.truncf %20 : vector<96x32xf32> to vector<96x32xbf16>
      %c2_i32 = arith.constant 2 : i32
      %22 = arith.addi %12, %c2_i32 : i32
      %23 = arith.index_cast %22 : i32 to index
      %c0_25 = arith.constant 0 : index
      %24 = vector.load %arg11[%23, %c0_25] : memref<336x32xf32, #tpu.memory_space<vmem>>, vector<96x32xf32>
      %25 = arith.truncf %24 : vector<96x32xf32> to vector<96x32xbf16>
      %c18_i32 = arith.constant 18 : i32
      %26 = arith.addi %12, %c18_i32 : i32
      %27 = arith.index_cast %26 : i32 to index
      %c0_26 = arith.constant 0 : index
      %28 = vector.load %arg11[%27, %c0_26] : memref<336x32xf32, #tpu.memory_space<vmem>>, vector<96x32xf32>
      %29 = arith.truncf %28 : vector<96x32xf32> to vector<96x32xbf16>
      %c19_i32 = arith.constant 19 : i32
      %30 = arith.addi %12, %c19_i32 : i32
      %31 = arith.index_cast %30 : i32 to index
      %c0_27 = arith.constant 0 : index
      %32 = vector.load %arg11[%31, %c0_27] : memref<336x32xf32, #tpu.memory_space<vmem>>, vector<96x32xf32>
      %33 = arith.truncf %32 : vector<96x32xf32> to vector<96x32xbf16>
      %c20_i32 = arith.constant 20 : i32
      %34 = arith.addi %12, %c20_i32 : i32
      %35 = arith.index_cast %34 : i32 to index
      %c0_28 = arith.constant 0 : index
      %36 = vector.load %arg11[%35, %c0_28] : memref<336x32xf32, #tpu.memory_space<vmem>>, vector<96x32xf32>
      %37 = arith.truncf %36 : vector<96x32xf32> to vector<96x32xbf16>
      %c36_i32 = arith.constant 36 : i32
      %38 = arith.addi %12, %c36_i32 : i32
      %39 = arith.index_cast %38 : i32 to index
      %c0_29 = arith.constant 0 : index
      %40 = vector.load %arg11[%39, %c0_29] : memref<336x32xf32, #tpu.memory_space<vmem>>, vector<96x32xf32>
      %41 = arith.truncf %40 : vector<96x32xf32> to vector<96x32xbf16>
      %c37_i32 = arith.constant 37 : i32
      %42 = arith.addi %12, %c37_i32 : i32
      %43 = arith.index_cast %42 : i32 to index
      %c0_30 = arith.constant 0 : index
      %44 = vector.load %arg11[%43, %c0_30] : memref<336x32xf32, #tpu.memory_space<vmem>>, vector<96x32xf32>
      %45 = arith.truncf %44 : vector<96x32xf32> to vector<96x32xbf16>
      %46 = tpu.concatenate %17, %21, %25, %29, %33, %37, %41, %45 in 1 : vector<96x32xbf16>, vector<96x32xbf16>, vector<96x32xbf16>, vector<96x32xbf16>, vector<96x32xbf16>, vector<96x32xbf16>, vector<96x32xbf16>, vector<96x32xbf16> -> vector<96x256xbf16>
      %c0_31 = arith.constant 0 : index
      %c0_32 = arith.constant 0 : index
      %c0_33 = arith.constant 0 : index
      %47 = vector.load %arg4[%c0_31, %c0_32, %c0_33] : memref<2x256x64xbf16, #tpu.memory_space<vmem>>, vector<1x256x64xbf16>
      %48 = vector.shape_cast %47 : vector<1x256x64xbf16> to vector<256x64xbf16>
      %cst_34 = arith.constant dense<0.000000e+00> : vector<96x64xf32>
      %49 = tpu.matmul %46, %48, %cst_34 {dimension_numbers = #tpu.dot_dimension_numbers<[1], [0], [0], [1], [0, 0, 1, 1], [], []>} : vector<96x256xbf16>, vector<256x64xbf16>, vector<96x64xf32> -> vector<96x64xf32>
      %50 = arith.addf %13, %49 : vector<96x64xf32>
      %c38_i32 = arith.constant 38 : i32
      %51 = arith.addi %12, %c38_i32 : i32
      %52 = arith.index_cast %51 : i32 to index
      %c0_35 = arith.constant 0 : index
      %53 = vector.load %arg11[%52, %c0_35] : memref<336x32xf32, #tpu.memory_space<vmem>>, vector<96x32xf32>
      %54 = arith.truncf %53 : vector<96x32xf32> to vector<96x32xbf16>
      %c38_i32_36 = arith.constant 38 : i32
      %55 = arith.addi %12, %c38_i32_36 : i32
      %56 = arith.index_cast %55 : i32 to index
      %c0_37 = arith.constant 0 : index
      %57 = vector.load %arg11[%56, %c0_37] : memref<336x32xf32, #tpu.memory_space<vmem>>, vector<96x32xf32>
      %58 = arith.truncf %57 : vector<96x32xf32> to vector<96x32xbf16>
      %c38_i32_38 = arith.constant 38 : i32
      %59 = arith.addi %12, %c38_i32_38 : i32
      %60 = arith.index_cast %59 : i32 to index
      %c0_39 = arith.constant 0 : index
      %61 = vector.load %arg11[%60, %c0_39] : memref<336x32xf32, #tpu.memory_space<vmem>>, vector<96x32xf32>
      %62 = arith.truncf %61 : vector<96x32xf32> to vector<96x32xbf16>
      %c38_i32_40 = arith.constant 38 : i32
      %63 = arith.addi %12, %c38_i32_40 : i32
      %64 = arith.index_cast %63 : i32 to index
      %c0_41 = arith.constant 0 : index
      %65 = vector.load %arg11[%64, %c0_41] : memref<336x32xf32, #tpu.memory_space<vmem>>, vector<96x32xf32>
      %66 = arith.truncf %65 : vector<96x32xf32> to vector<96x32xbf16>
      %c38_i32_42 = arith.constant 38 : i32
      %67 = arith.addi %12, %c38_i32_42 : i32
      %68 = arith.index_cast %67 : i32 to index
      %c0_43 = arith.constant 0 : index
      %69 = vector.load %arg11[%68, %c0_43] : memref<336x32xf32, #tpu.memory_space<vmem>>, vector<96x32xf32>
      %70 = arith.truncf %69 : vector<96x32xf32> to vector<96x32xbf16>
      %c38_i32_44 = arith.constant 38 : i32
      %71 = arith.addi %12, %c38_i32_44 : i32
      %72 = arith.index_cast %71 : i32 to index
      %c0_45 = arith.constant 0 : index
      %73 = vector.load %arg11[%72, %c0_45] : memref<336x32xf32, #tpu.memory_space<vmem>>, vector<96x32xf32>
      %74 = arith.truncf %73 : vector<96x32xf32> to vector<96x32xbf16>
      %c38_i32_46 = arith.constant 38 : i32
      %75 = arith.addi %12, %c38_i32_46 : i32
      %76 = arith.index_cast %75 : i32 to index
      %c0_47 = arith.constant 0 : index
      %77 = vector.load %arg11[%76, %c0_47] : memref<336x32xf32, #tpu.memory_space<vmem>>, vector<96x32xf32>
      %78 = arith.truncf %77 : vector<96x32xf32> to vector<96x32xbf16>
      %c38_i32_48 = arith.constant 38 : i32
      %79 = arith.addi %12, %c38_i32_48 : i32
      %80 = arith.index_cast %79 : i32 to index
      %c0_49 = arith.constant 0 : index
      %81 = vector.load %arg11[%80, %c0_49] : memref<336x32xf32, #tpu.memory_space<vmem>>, vector<96x32xf32>
      %82 = arith.truncf %81 : vector<96x32xf32> to vector<96x32xbf16>
      %83 = tpu.concatenate %54, %58, %62, %66, %70, %74, %78, %82 in 1 : vector<96x32xbf16>, vector<96x32xbf16>, vector<96x32xbf16>, vector<96x32xbf16>, vector<96x32xbf16>, vector<96x32xbf16>, vector<96x32xbf16>, vector<96x32xbf16> -> vector<96x256xbf16>
      %c1 = arith.constant 1 : index
      %c0_50 = arith.constant 0 : index
      %c0_51 = arith.constant 0 : index
      %84 = vector.load %arg4[%c1, %c0_50, %c0_51] : memref<2x256x64xbf16, #tpu.memory_space<vmem>>, vector<1x256x64xbf16>
      %85 = vector.shape_cast %84 : vector<1x256x64xbf16> to vector<256x64xbf16>
      %cst_52 = arith.constant dense<0.000000e+00> : vector<96x64xf32>
      %86 = tpu.matmul %83, %85, %cst_52 {dimension_numbers = #tpu.dot_dimension_numbers<[1], [0], [0], [1], [0, 0, 1, 1], [], []>} : vector<96x256xbf16>, vector<256x64xbf16>, vector<96x64xf32> -> vector<96x64xf32>
      %87 = arith.addf %50, %86 : vector<96x64xf32>
      %c0_53 = arith.constant 0 : index
      %c0_54 = arith.constant 0 : index
      %88 = vector.load %arg5[%c0_53, %c0_54] : memref<1x64xf32, #tpu.memory_space<vmem>>, vector<1x64xf32>
      %89 = vector.broadcast %88 : vector<1x64xf32> to vector<96x64xf32>
      %90 = arith.addf %87, %89 : vector<96x64xf32>
      %cst_55 = arith.constant 0.000000e+00 : f32
      %91 = vector.broadcast %cst_55 : f32 to vector<96x64xf32>
      %92 = arith.cmpf oge, %90, %91 : vector<96x64xf32>
      %cst_56 = arith.constant 2.000000e-01 : f32
      %93 = vector.broadcast %cst_56 : f32 to vector<96x64xf32>
      %94 = arith.mulf %93, %90 : vector<96x64xf32>
      %95 = arith.select %92, %90, %94 : vector<96x64xi1>, vector<96x64xf32>
      %96 = tpu.iota {dimensions = array<i32: 0>} : vector<96x1xi32>
      %97 = vector.broadcast %11 : i32 to vector<96x1xi32>
      %98 = arith.addi %96, %97 : vector<96x1xi32>
      %c18_i32_57 = arith.constant 18 : i32
      %c0_i32_58 = arith.constant 0 : i32
      %99 = arith.cmpi eq, %c18_i32_57, %c0_i32_58 : i32
      %c1_i32_59 = arith.constant 1 : i32
      %100 = arith.select %99, %c1_i32_59, %c18_i32_57 : i32
      %101 = vector.broadcast %100 : i32 to vector<96x1xi32>
      %102 = arith.remsi %98, %101 : vector<96x1xi32>
      %c0_i32_60 = arith.constant 0 : i32
      %103 = vector.broadcast %c0_i32_60 : i32 to vector<96x1xi32>
      %104 = arith.cmpi ne, %102, %103 : vector<96x1xi32>
      %c0_i32_61 = arith.constant 0 : i32
      %105 = vector.broadcast %c0_i32_61 : i32 to vector<96x1xi32>
      %106 = arith.cmpi slt, %102, %105 : vector<96x1xi32>
      %c0_i32_62 = arith.constant 0 : i32
      %107 = arith.cmpi slt, %100, %c0_i32_62 : i32
      %108 = vector.broadcast %107 : i1 to vector<96x1xi1>
      %109 = vector.broadcast %108 : vector<96x1xi1> to vector<96x1xi1>
      %110 = arith.xori %106, %109 : vector<96x1xi1>
      %111 = arith.andi %110, %104 : vector<96x1xi1>
      %112 = vector.broadcast %100 : i32 to vector<96x1xi32>
      %113 = arith.addi %102, %112 : vector<96x1xi32>
      %114 = arith.select %111, %113, %102 : vector<96x1xi1>, vector<96x1xi32>
      %c16_i32 = arith.constant 16 : i32
      %115 = vector.broadcast %c16_i32 : i32 to vector<96x1xi32>
      %116 = arith.cmpi slt, %114, %115 : vector<96x1xi32>
      %c288_i32 = arith.constant 288 : i32
      %117 = vector.broadcast %c288_i32 : i32 to vector<96x1xi32>
      %118 = arith.cmpi slt, %98, %117 : vector<96x1xi32>
      %119 = arith.andi %116, %118 : vector<96x1xi1>
      %cst_63 = arith.constant 0.000000e+00 : f32
      %120 = vector.shape_cast %119 : vector<96x1xi1> to vector<96x1xi1>
      %121 = vector.broadcast %120 : vector<96x1xi1> to vector<96x64xi1>
      %122 = vector.broadcast %cst_63 : f32 to vector<96x64xf32>
      %123 = arith.select %121, %95, %122 : vector<96x64xi1>, vector<96x64xf32>
      %c24_i32 = arith.constant 24 : i32
      %124 = arith.addi %c24_i32, %11 : i32
      %125 = arith.index_cast %124 : i32 to index
      %c0_64 = arith.constant 0 : index
      %126 = vector.load %arg12[%125, %c0_64] : memref<336x64xf32, #tpu.memory_space<vmem>>, vector<96x64xf32>
      tpu.vector_store %arg12[%125, %c0_64], %123 {strides = array<i32>} : memref<336x64xf32, #tpu.memory_space<vmem>>, vector<96x64xf32>,
    }
    %c3_i32_11 = arith.constant 3 : i32
    %c0_i32_12 = arith.constant 0 : i32
    %c3_i32_13 = arith.constant 3 : i32
    %8 = arith.addi %c0_i32_12, %c3_i32_13 : i32
    %c1_i32_14 = arith.constant 1 : i32
    scf.for %arg14 = %c0_i32_12 to %8 step %c1_i32_14  : i32 {
      %c96_i32 = arith.constant 96 : i32
      %10 = arith.muli %arg14, %c96_i32 : i32
      %11 = tpu.assume_multiple %10, 16 : i32
      %c5_i32 = arith.constant 5 : i32
      %12 = arith.addi %c5_i32, %11 : i32
      %cst_20 = arith.constant 0.000000e+00 : f32
      %13 = vector.broadcast %cst_20 : f32 to vector<96x128xf32>
      %c0_i32_21 = arith.constant 0 : i32
      %14 = arith.addi %12, %c0_i32_21 : i32
      %15 = arith.index_cast %14 : i32 to index
      %c0_22 = arith.constant 0 : index
      %16 = vector.load %arg12[%15, %c0_22] : memref<336x64xf32, #tpu.memory_space<vmem>>, vector<96x64xf32>
      %17 = arith.truncf %16 : vector<96x64xf32> to vector<96x64xbf16>
      %c1_i32_23 = arith.constant 1 : i32
      %18 = arith.addi %12, %c1_i32_23 : i32
      %19 = arith.index_cast %18 : i32 to index
      %c0_24 = arith.constant 0 : index
      %20 = vector.load %arg12[%19, %c0_24] : memref<336x64xf32, #tpu.memory_space<vmem>>, vector<96x64xf32>
      %21 = arith.truncf %20 : vector<96x64xf32> to vector<96x64xbf16>
      %c2_i32 = arith.constant 2 : i32
      %22 = arith.addi %12, %c2_i32 : i32
      %23 = arith.index_cast %22 : i32 to index
      %c0_25 = arith.constant 0 : index
      %24 = vector.load %arg12[%23, %c0_25] : memref<336x64xf32, #tpu.memory_space<vmem>>, vector<96x64xf32>
      %25 = arith.truncf %24 : vector<96x64xf32> to vector<96x64xbf16>
      %c18_i32 = arith.constant 18 : i32
      %26 = arith.addi %12, %c18_i32 : i32
      %27 = arith.index_cast %26 : i32 to index
      %c0_26 = arith.constant 0 : index
      %28 = vector.load %arg12[%27, %c0_26] : memref<336x64xf32, #tpu.memory_space<vmem>>, vector<96x64xf32>
      %29 = arith.truncf %28 : vector<96x64xf32> to vector<96x64xbf16>
      %30 = tpu.concatenate %17, %21, %25, %29 in 1 : vector<96x64xbf16>, vector<96x64xbf16>, vector<96x64xbf16>, vector<96x64xbf16> -> vector<96x256xbf16>
      %c0_27 = arith.constant 0 : index
      %c0_28 = arith.constant 0 : index
      %c0_29 = arith.constant 0 : index
      %31 = vector.load %arg6[%c0_27, %c0_28, %c0_29] : memref<3x256x128xbf16, #tpu.memory_space<vmem>>, vector<1x256x128xbf16>
      %32 = vector.shape_cast %31 : vector<1x256x128xbf16> to vector<256x128xbf16>
      %cst_30 = arith.constant dense<0.000000e+00> : vector<96x128xf32>
      %33 = tpu.matmul %30, %32, %cst_30 {dimension_numbers = #tpu.dot_dimension_numbers<[1], [0], [0], [1], [0, 0, 1, 1], [], []>} : vector<96x256xbf16>, vector<256x128xbf16>, vector<96x128xf32> -> vector<96x128xf32>
      %34 = arith.addf %13, %33 : vector<96x128xf32>
      %c19_i32 = arith.constant 19 : i32
      %35 = arith.addi %12, %c19_i32 : i32
      %36 = arith.index_cast %35 : i32 to index
      %c0_31 = arith.constant 0 : index
      %37 = vector.load %arg12[%36, %c0_31] : memref<336x64xf32, #tpu.memory_space<vmem>>, vector<96x64xf32>
      %38 = arith.truncf %37 : vector<96x64xf32> to vector<96x64xbf16>
      %c20_i32 = arith.constant 20 : i32
      %39 = arith.addi %12, %c20_i32 : i32
      %40 = arith.index_cast %39 : i32 to index
      %c0_32 = arith.constant 0 : index
      %41 = vector.load %arg12[%40, %c0_32] : memref<336x64xf32, #tpu.memory_space<vmem>>, vector<96x64xf32>
      %42 = arith.truncf %41 : vector<96x64xf32> to vector<96x64xbf16>
      %c36_i32 = arith.constant 36 : i32
      %43 = arith.addi %12, %c36_i32 : i32
      %44 = arith.index_cast %43 : i32 to index
      %c0_33 = arith.constant 0 : index
      %45 = vector.load %arg12[%44, %c0_33] : memref<336x64xf32, #tpu.memory_space<vmem>>, vector<96x64xf32>
      %46 = arith.truncf %45 : vector<96x64xf32> to vector<96x64xbf16>
      %c37_i32 = arith.constant 37 : i32
      %47 = arith.addi %12, %c37_i32 : i32
      %48 = arith.index_cast %47 : i32 to index
      %c0_34 = arith.constant 0 : index
      %49 = vector.load %arg12[%48, %c0_34] : memref<336x64xf32, #tpu.memory_space<vmem>>, vector<96x64xf32>
      %50 = arith.truncf %49 : vector<96x64xf32> to vector<96x64xbf16>
      %51 = tpu.concatenate %38, %42, %46, %50 in 1 : vector<96x64xbf16>, vector<96x64xbf16>, vector<96x64xbf16>, vector<96x64xbf16> -> vector<96x256xbf16>
      %c1 = arith.constant 1 : index
      %c0_35 = arith.constant 0 : index
      %c0_36 = arith.constant 0 : index
      %52 = vector.load %arg6[%c1, %c0_35, %c0_36] : memref<3x256x128xbf16, #tpu.memory_space<vmem>>, vector<1x256x128xbf16>
      %53 = vector.shape_cast %52 : vector<1x256x128xbf16> to vector<256x128xbf16>
      %cst_37 = arith.constant dense<0.000000e+00> : vector<96x128xf32>
      %54 = tpu.matmul %51, %53, %cst_37 {dimension_numbers = #tpu.dot_dimension_numbers<[1], [0], [0], [1], [0, 0, 1, 1], [], []>} : vector<96x256xbf16>, vector<256x128xbf16>, vector<96x128xf32> -> vector<96x128xf32>
      %55 = arith.addf %34, %54 : vector<96x128xf32>
      %c38_i32 = arith.constant 38 : i32
      %56 = arith.addi %12, %c38_i32 : i32
      %57 = arith.index_cast %56 : i32 to index
      %c0_38 = arith.constant 0 : index
      %58 = vector.load %arg12[%57, %c0_38] : memref<336x64xf32, #tpu.memory_space<vmem>>, vector<96x64xf32>
      %59 = arith.truncf %58 : vector<96x64xf32> to vector<96x64xbf16>
      %c38_i32_39 = arith.constant 38 : i32
      %60 = arith.addi %12, %c38_i32_39 : i32
      %61 = arith.index_cast %60 : i32 to index
      %c0_40 = arith.constant 0 : index
      %62 = vector.load %arg12[%61, %c0_40] : memref<336x64xf32, #tpu.memory_space<vmem>>, vector<96x64xf32>
      %63 = arith.truncf %62 : vector<96x64xf32> to vector<96x64xbf16>
      %c38_i32_41 = arith.constant 38 : i32
      %64 = arith.addi %12, %c38_i32_41 : i32
      %65 = arith.index_cast %64 : i32 to index
      %c0_42 = arith.constant 0 : index
      %66 = vector.load %arg12[%65, %c0_42] : memref<336x64xf32, #tpu.memory_space<vmem>>, vector<96x64xf32>
      %67 = arith.truncf %66 : vector<96x64xf32> to vector<96x64xbf16>
      %c38_i32_43 = arith.constant 38 : i32
      %68 = arith.addi %12, %c38_i32_43 : i32
      %69 = arith.index_cast %68 : i32 to index
      %c0_44 = arith.constant 0 : index
      %70 = vector.load %arg12[%69, %c0_44] : memref<336x64xf32, #tpu.memory_space<vmem>>, vector<96x64xf32>
      %71 = arith.truncf %70 : vector<96x64xf32> to vector<96x64xbf16>
      %72 = tpu.concatenate %59, %63, %67, %71 in 1 : vector<96x64xbf16>, vector<96x64xbf16>, vector<96x64xbf16>, vector<96x64xbf16> -> vector<96x256xbf16>
      %c2 = arith.constant 2 : index
      %c0_45 = arith.constant 0 : index
      %c0_46 = arith.constant 0 : index
      %73 = vector.load %arg6[%c2, %c0_45, %c0_46] : memref<3x256x128xbf16, #tpu.memory_space<vmem>>, vector<1x256x128xbf16>
      %74 = vector.shape_cast %73 : vector<1x256x128xbf16> to vector<256x128xbf16>
      %cst_47 = arith.constant dense<0.000000e+00> : vector<96x128xf32>
      %75 = tpu.matmul %72, %74, %cst_47 {dimension_numbers = #tpu.dot_dimension_numbers<[1], [0], [0], [1], [0, 0, 1, 1], [], []>} : vector<96x256xbf16>, vector<256x128xbf16>, vector<96x128xf32> -> vector<96x128xf32>
      %76 = arith.addf %55, %75 : vector<96x128xf32>
      %c0_48 = arith.constant 0 : index
      %c0_49 = arith.constant 0 : index
      %77 = vector.load %arg7[%c0_48, %c0_49] : memref<1x128xf32, #tpu.memory_space<vmem>>, vector<1x128xf32>
      %78 = vector.broadcast %77 : vector<1x128xf32> to vector<96x128xf32>
      %79 = arith.addf %76, %78 : vector<96x128xf32>
      %cst_50 = arith.constant 0.000000e+00 : f32
      %80 = vector.broadcast %cst_50 : f32 to vector<96x128xf32>
      %81 = arith.cmpf oge, %79, %80 : vector<96x128xf32>
      %cst_51 = arith.constant 2.000000e-01 : f32
      %82 = vector.broadcast %cst_51 : f32 to vector<96x128xf32>
      %83 = arith.mulf %82, %79 : vector<96x128xf32>
      %84 = arith.select %81, %79, %83 : vector<96x128xi1>, vector<96x128xf32>
      %85 = tpu.iota {dimensions = array<i32: 0>} : vector<96x1xi32>
      %86 = vector.broadcast %11 : i32 to vector<96x1xi32>
      %87 = arith.addi %85, %86 : vector<96x1xi32>
      %c18_i32_52 = arith.constant 18 : i32
      %c0_i32_53 = arith.constant 0 : i32
      %88 = arith.cmpi eq, %c18_i32_52, %c0_i32_53 : i32
      %c1_i32_54 = arith.constant 1 : i32
      %89 = arith.select %88, %c1_i32_54, %c18_i32_52 : i32
      %90 = vector.broadcast %89 : i32 to vector<96x1xi32>
      %91 = arith.remsi %87, %90 : vector<96x1xi32>
      %c0_i32_55 = arith.constant 0 : i32
      %92 = vector.broadcast %c0_i32_55 : i32 to vector<96x1xi32>
      %93 = arith.cmpi ne, %91, %92 : vector<96x1xi32>
      %c0_i32_56 = arith.constant 0 : i32
      %94 = vector.broadcast %c0_i32_56 : i32 to vector<96x1xi32>
      %95 = arith.cmpi slt, %91, %94 : vector<96x1xi32>
      %c0_i32_57 = arith.constant 0 : i32
      %96 = arith.cmpi slt, %89, %c0_i32_57 : i32
      %97 = vector.broadcast %96 : i1 to vector<96x1xi1>
      %98 = vector.broadcast %97 : vector<96x1xi1> to vector<96x1xi1>
      %99 = arith.xori %95, %98 : vector<96x1xi1>
      %100 = arith.andi %99, %93 : vector<96x1xi1>
      %101 = vector.broadcast %89 : i32 to vector<96x1xi32>
      %102 = arith.addi %91, %101 : vector<96x1xi32>
      %103 = arith.select %100, %102, %91 : vector<96x1xi1>, vector<96x1xi32>
      %c16_i32 = arith.constant 16 : i32
      %104 = vector.broadcast %c16_i32 : i32 to vector<96x1xi32>
      %105 = arith.cmpi slt, %103, %104 : vector<96x1xi32>
      %c288_i32 = arith.constant 288 : i32
      %106 = vector.broadcast %c288_i32 : i32 to vector<96x1xi32>
      %107 = arith.cmpi slt, %87, %106 : vector<96x1xi32>
      %108 = arith.andi %105, %107 : vector<96x1xi1>
      %cst_58 = arith.constant 0.000000e+00 : f32
      %109 = vector.shape_cast %108 : vector<96x1xi1> to vector<96x1xi1>
      %110 = vector.broadcast %109 : vector<96x1xi1> to vector<96x128xi1>
      %111 = vector.broadcast %cst_58 : f32 to vector<96x128xf32>
      %112 = arith.select %110, %84, %111 : vector<96x128xi1>, vector<96x128xf32>
      %c24_i32 = arith.constant 24 : i32
      %113 = arith.addi %c24_i32, %11 : i32
      %114 = arith.index_cast %113 : i32 to index
      %c0_59 = arith.constant 0 : index
      %115 = vector.load %arg13[%114, %c0_59] : memref<336x128xf32, #tpu.memory_space<vmem>>, vector<96x128xf32>
      tpu.vector_store %arg13[%114, %c0_59], %112 {strides = array<i32>} : memref<336x128xf32, #tpu.memory_space<vmem>>, vector<96x128xf32>,
    }
    %c3_i32_15 = arith.constant 3 : i32
    %c0_i32_16 = arith.constant 0 : i32
    %c3_i32_17 = arith.constant 3 : i32
    %9 = arith.addi %c0_i32_16, %c3_i32_17 : i32
    %c1_i32_18 = arith.constant 1 : i32
    scf.for %arg14 = %c0_i32_16 to %9 step %c1_i32_18  : i32 {
      %c96_i32 = arith.constant 96 : i32
      %10 = arith.muli %arg14, %c96_i32 : i32
      %11 = tpu.assume_multiple %10, 16 : i32
      %c5_i32 = arith.constant 5 : i32
      %12 = arith.addi %c5_i32, %11 : i32
      %cst_20 = arith.constant 0.000000e+00 : f32
      %13 = vector.broadcast %cst_20 : f32 to vector<96x128xf32>
      %c0_i32_21 = arith.constant 0 : i32
      %14 = arith.addi %12, %c0_i32_21 : i32
      %15 = arith.index_cast %14 : i32 to index
      %c0_22 = arith.constant 0 : index
      %16 = vector.load %arg13[%15, %c0_22] : memref<336x128xf32, #tpu.memory_space<vmem>>, vector<96x128xf32>
      %17 = arith.truncf %16 : vector<96x128xf32> to vector<96x128xbf16>
      %c1_i32_23 = arith.constant 1 : i32
      %18 = arith.addi %12, %c1_i32_23 : i32
      %19 = arith.index_cast %18 : i32 to index
      %c0_24 = arith.constant 0 : index
      %20 = vector.load %arg13[%19, %c0_24] : memref<336x128xf32, #tpu.memory_space<vmem>>, vector<96x128xf32>
      %21 = arith.truncf %20 : vector<96x128xf32> to vector<96x128xbf16>
      %22 = tpu.concatenate %17, %21 in 1 : vector<96x128xbf16>, vector<96x128xbf16> -> vector<96x256xbf16>
      %c0_25 = arith.constant 0 : index
      %c0_26 = arith.constant 0 : index
      %c0_27 = arith.constant 0 : index
      %23 = vector.load %arg8[%c0_25, %c0_26, %c0_27] : memref<5x256x128xbf16, #tpu.memory_space<vmem>>, vector<1x256x128xbf16>
      %24 = vector.shape_cast %23 : vector<1x256x128xbf16> to vector<256x128xbf16>
      %cst_28 = arith.constant dense<0.000000e+00> : vector<96x128xf32>
      %25 = tpu.matmul %22, %24, %cst_28 {dimension_numbers = #tpu.dot_dimension_numbers<[1], [0], [0], [1], [0, 0, 1, 1], [], []>} : vector<96x256xbf16>, vector<256x128xbf16>, vector<96x128xf32> -> vector<96x128xf32>
      %26 = arith.addf %13, %25 : vector<96x128xf32>
      %c2_i32 = arith.constant 2 : i32
      %27 = arith.addi %12, %c2_i32 : i32
      %28 = arith.index_cast %27 : i32 to index
      %c0_29 = arith.constant 0 : index
      %29 = vector.load %arg13[%28, %c0_29] : memref<336x128xf32, #tpu.memory_space<vmem>>, vector<96x128xf32>
      %30 = arith.truncf %29 : vector<96x128xf32> to vector<96x128xbf16>
      %c18_i32 = arith.constant 18 : i32
      %31 = arith.addi %12, %c18_i32 : i32
      %32 = arith.index_cast %31 : i32 to index
      %c0_30 = arith.constant 0 : index
      %33 = vector.load %arg13[%32, %c0_30] : memref<336x128xf32, #tpu.memory_space<vmem>>, vector<96x128xf32>
      %34 = arith.truncf %33 : vector<96x128xf32> to vector<96x128xbf16>
      %35 = tpu.concatenate %30, %34 in 1 : vector<96x128xbf16>, vector<96x128xbf16> -> vector<96x256xbf16>
      %c1 = arith.constant 1 : index
      %c0_31 = arith.constant 0 : index
      %c0_32 = arith.constant 0 : index
      %36 = vector.load %arg8[%c1, %c0_31, %c0_32] : memref<5x256x128xbf16, #tpu.memory_space<vmem>>, vector<1x256x128xbf16>
      %37 = vector.shape_cast %36 : vector<1x256x128xbf16> to vector<256x128xbf16>
      %cst_33 = arith.constant dense<0.000000e+00> : vector<96x128xf32>
      %38 = tpu.matmul %35, %37, %cst_33 {dimension_numbers = #tpu.dot_dimension_numbers<[1], [0], [0], [1], [0, 0, 1, 1], [], []>} : vector<96x256xbf16>, vector<256x128xbf16>, vector<96x128xf32> -> vector<96x128xf32>
      %39 = arith.addf %26, %38 : vector<96x128xf32>
      %c19_i32 = arith.constant 19 : i32
      %40 = arith.addi %12, %c19_i32 : i32
      %41 = arith.index_cast %40 : i32 to index
      %c0_34 = arith.constant 0 : index
      %42 = vector.load %arg13[%41, %c0_34] : memref<336x128xf32, #tpu.memory_space<vmem>>, vector<96x128xf32>
      %43 = arith.truncf %42 : vector<96x128xf32> to vector<96x128xbf16>
      %c20_i32 = arith.constant 20 : i32
      %44 = arith.addi %12, %c20_i32 : i32
      %45 = arith.index_cast %44 : i32 to index
      %c0_35 = arith.constant 0 : index
      %46 = vector.load %arg13[%45, %c0_35] : memref<336x128xf32, #tpu.memory_space<vmem>>, vector<96x128xf32>
      %47 = arith.truncf %46 : vector<96x128xf32> to vector<96x128xbf16>
      %48 = tpu.concatenate %43, %47 in 1 : vector<96x128xbf16>, vector<96x128xbf16> -> vector<96x256xbf16>
      %c2 = arith.constant 2 : index
      %c0_36 = arith.constant 0 : index
      %c0_37 = arith.constant 0 : index
      %49 = vector.load %arg8[%c2, %c0_36, %c0_37] : memref<5x256x128xbf16, #tpu.memory_space<vmem>>, vector<1x256x128xbf16>
      %50 = vector.shape_cast %49 : vector<1x256x128xbf16> to vector<256x128xbf16>
      %cst_38 = arith.constant dense<0.000000e+00> : vector<96x128xf32>
      %51 = tpu.matmul %48, %50, %cst_38 {dimension_numbers = #tpu.dot_dimension_numbers<[1], [0], [0], [1], [0, 0, 1, 1], [], []>} : vector<96x256xbf16>, vector<256x128xbf16>, vector<96x128xf32> -> vector<96x128xf32>
      %52 = arith.addf %39, %51 : vector<96x128xf32>
      %c36_i32 = arith.constant 36 : i32
      %53 = arith.addi %12, %c36_i32 : i32
      %54 = arith.index_cast %53 : i32 to index
      %c0_39 = arith.constant 0 : index
      %55 = vector.load %arg13[%54, %c0_39] : memref<336x128xf32, #tpu.memory_space<vmem>>, vector<96x128xf32>
      %56 = arith.truncf %55 : vector<96x128xf32> to vector<96x128xbf16>
      %c37_i32 = arith.constant 37 : i32
      %57 = arith.addi %12, %c37_i32 : i32
      %58 = arith.index_cast %57 : i32 to index
      %c0_40 = arith.constant 0 : index
      %59 = vector.load %arg13[%58, %c0_40] : memref<336x128xf32, #tpu.memory_space<vmem>>, vector<96x128xf32>
      %60 = arith.truncf %59 : vector<96x128xf32> to vector<96x128xbf16>
      %61 = tpu.concatenate %56, %60 in 1 : vector<96x128xbf16>, vector<96x128xbf16> -> vector<96x256xbf16>
      %c3 = arith.constant 3 : index
      %c0_41 = arith.constant 0 : index
      %c0_42 = arith.constant 0 : index
      %62 = vector.load %arg8[%c3, %c0_41, %c0_42] : memref<5x256x128xbf16, #tpu.memory_space<vmem>>, vector<1x256x128xbf16>
      %63 = vector.shape_cast %62 : vector<1x256x128xbf16> to vector<256x128xbf16>
      %cst_43 = arith.constant dense<0.000000e+00> : vector<96x128xf32>
      %64 = tpu.matmul %61, %63, %cst_43 {dimension_numbers = #tpu.dot_dimension_numbers<[1], [0], [0], [1], [0, 0, 1, 1], [], []>} : vector<96x256xbf16>, vector<256x128xbf16>, vector<96x128xf32> -> vector<96x128xf32>
      %65 = arith.addf %52, %64 : vector<96x128xf32>
      %c38_i32 = arith.constant 38 : i32
      %66 = arith.addi %12, %c38_i32 : i32
      %67 = arith.index_cast %66 : i32 to index
      %c0_44 = arith.constant 0 : index
      %68 = vector.load %arg13[%67, %c0_44] : memref<336x128xf32, #tpu.memory_space<vmem>>, vector<96x128xf32>
      %69 = arith.truncf %68 : vector<96x128xf32> to vector<96x128xbf16>
      %c38_i32_45 = arith.constant 38 : i32
      %70 = arith.addi %12, %c38_i32_45 : i32
      %71 = arith.index_cast %70 : i32 to index
      %c0_46 = arith.constant 0 : index
      %72 = vector.load %arg13[%71, %c0_46] : memref<336x128xf32, #tpu.memory_space<vmem>>, vector<96x128xf32>
      %73 = arith.truncf %72 : vector<96x128xf32> to vector<96x128xbf16>
      %74 = tpu.concatenate %69, %73 in 1 : vector<96x128xbf16>, vector<96x128xbf16> -> vector<96x256xbf16>
      %c4 = arith.constant 4 : index
      %c0_47 = arith.constant 0 : index
      %c0_48 = arith.constant 0 : index
      %75 = vector.load %arg8[%c4, %c0_47, %c0_48] : memref<5x256x128xbf16, #tpu.memory_space<vmem>>, vector<1x256x128xbf16>
      %76 = vector.shape_cast %75 : vector<1x256x128xbf16> to vector<256x128xbf16>
      %cst_49 = arith.constant dense<0.000000e+00> : vector<96x128xf32>
      %77 = tpu.matmul %74, %76, %cst_49 {dimension_numbers = #tpu.dot_dimension_numbers<[1], [0], [0], [1], [0, 0, 1, 1], [], []>} : vector<96x256xbf16>, vector<256x128xbf16>, vector<96x128xf32> -> vector<96x128xf32>
      %78 = arith.addf %65, %77 : vector<96x128xf32>
      %c0_50 = arith.constant 0 : index
      %c0_51 = arith.constant 0 : index
      %79 = vector.load %arg9[%c0_50, %c0_51] : memref<1x128xf32, #tpu.memory_space<vmem>>, vector<1x128xf32>
      %80 = vector.broadcast %79 : vector<1x128xf32> to vector<96x128xf32>
      %81 = arith.addf %78, %80 : vector<96x128xf32>
      %c0_52 = arith.constant 0 : index
      %82 = arith.index_cast %11 : i32 to index
      %c0_53 = arith.constant 0 : index
      %83 = vector.load %arg10[%c0_52, %82, %c0_53] : memref<1x288x128xf32, #tpu.memory_space<vmem>>, vector<1x96x128xf32>
      %84 = vector.shape_cast %83 : vector<1x96x128xf32> to vector<96x128xf32>
      %85 = vector.shape_cast %81 : vector<96x128xf32> to vector<1x96x128xf32>
      tpu.vector_store %arg10[%c0_52, %82, %c0_53], %85 {strides = array<i32>} : memref<1x288x128xf32, #tpu.memory_space<vmem>>, vector<1x96x128xf32>,
    }
    %c3_i32_19 = arith.constant 3 : i32
    return
  }
  func.func @transform_0(%arg0: i32) -> (i32, i32, i32) {
    %c0_i32 = arith.constant 0 : i32
    %c0_i32_0 = arith.constant 0 : i32
    %c0_i32_1 = arith.constant 0 : i32
    return %arg0, %c0_i32, %c0_i32_0 : i32, i32, i32
  }
  func.func @transform_1(%arg0: i32) -> (i32, i32) {
    %c0_i32 = arith.constant 0 : i32
    %c0_i32_0 = arith.constant 0 : i32
    %c0_i32_1 = arith.constant 0 : i32
    return %c0_i32, %c0_i32_0 : i32, i32
  }
  func.func @transform_2(%arg0: i32) -> (i32, i32) {
    %c0_i32 = arith.constant 0 : i32
    %c0_i32_0 = arith.constant 0 : i32
    %c0_i32_1 = arith.constant 0 : i32
    return %c0_i32, %c0_i32_0 : i32, i32
  }
  func.func @transform_3(%arg0: i32) -> (i32, i32, i32) {
    %c0_i32 = arith.constant 0 : i32
    %c0_i32_0 = arith.constant 0 : i32
    %c0_i32_1 = arith.constant 0 : i32
    %c0_i32_2 = arith.constant 0 : i32
    return %c0_i32, %c0_i32_0, %c0_i32_1 : i32, i32, i32
  }
  func.func @transform_4(%arg0: i32) -> (i32, i32) {
    %c0_i32 = arith.constant 0 : i32
    %c0_i32_0 = arith.constant 0 : i32
    %c0_i32_1 = arith.constant 0 : i32
    return %c0_i32, %c0_i32_0 : i32, i32
  }
  func.func @transform_5(%arg0: i32) -> (i32, i32, i32) {
    %c0_i32 = arith.constant 0 : i32
    %c0_i32_0 = arith.constant 0 : i32
    %c0_i32_1 = arith.constant 0 : i32
    %c0_i32_2 = arith.constant 0 : i32
    return %c0_i32, %c0_i32_0, %c0_i32_1 : i32, i32, i32
  }
  func.func @transform_6(%arg0: i32) -> (i32, i32) {
    %c0_i32 = arith.constant 0 : i32
    %c0_i32_0 = arith.constant 0 : i32
    %c0_i32_1 = arith.constant 0 : i32
    return %c0_i32, %c0_i32_0 : i32, i32
  }
  func.func @transform_7(%arg0: i32) -> (i32, i32, i32) {
    %c0_i32 = arith.constant 0 : i32
    %c0_i32_0 = arith.constant 0 : i32
    %c0_i32_1 = arith.constant 0 : i32
    %c0_i32_2 = arith.constant 0 : i32
    return %c0_i32, %c0_i32_0, %c0_i32_1 : i32, i32, i32
  }
  func.func @transform_8(%arg0: i32) -> (i32, i32) {
    %c0_i32 = arith.constant 0 : i32
    %c0_i32_0 = arith.constant 0 : i32
    %c0_i32_1 = arith.constant 0 : i32
    return %c0_i32, %c0_i32_0 : i32, i32
  }
  func.func @transform_9(%arg0: i32) -> (i32, i32, i32) {
    %c0_i32 = arith.constant 0 : i32
    %c0_i32_0 = arith.constant 0 : i32
    %c0_i32_1 = arith.constant 0 : i32
    return %arg0, %c0_i32, %c0_i32_0 : i32, i32, i32
  }
}

</mosaic_0001>

<bundles_post_ra>
// kernel: encoder_forward.1
= control target key start
LH: loop header
LB: loop body
LE: loop exit
PB: predicated region body
PF: predicated region fallthrough
CT: control target
= control target key end

     0   :  { %s6884_s30 = smov 0   ;;  %s9995_s0 = inlined_call_operand.vmem [shape: bf16[2,288,27], index: 0, kind: input, shape index: {}]   ;;  %s9996_s1 = inlined_call_operand.vmem [shape: bf16[27,32], index: 1, kind: input, shape index: {}]   ;;  %s9997_s2 = inlined_call_operand.vmem [shape: f32[1,32], index: 2, kind: input, shape index: {}]   ;;  %s9998_s3 = inlined_call_operand.vmem [shape: bf16[2,256,64], index: 3, kind: input, shape index: {}]   ;;  %s9999_s4 = inlined_call_operand.vmem [shape: f32[1,64], index: 4, kind: input, shape index: {}]   ;;  %s10000_s5 = inlined_call_operand.vmem [shape: bf16[3,256,128], index: 5, kind: input, shape index: {}]   ;;  %s10001_s6 = inlined_call_operand.vmem [shape: f32[1,128], index: 6, kind: input, shape index: {}]   ;;  %s10002_s7 = inlined_call_operand.vmem [shape: bf16[5,256,128], index: 7, kind: input, shape index: {}]   ;;  %s10003_s8 = inlined_call_operand.vmem [shape: f32[1,128], index: 8, kind: input, shape index: {}]   ;;  %s10004_s9 = inlined_call_operand.vmem [shape: f32[2,288,128], index: 9, kind: output, shape index: {}]  }
   0x1 LB: > { %s5112_s10 = sadd.s32 4294967295, %s6810_s30   ;;  %p5116_p0 = scmp.ge.s32.totalorder %s6810_s30, 1  ;;  %s6810_s30 = sphi %s6884_s30, %s19_s30  }
   0x2   : > { %p287_p1 = scmp.lt.s32.totalorder %s6810_s30, 3 }
   0x4   : > { %p288_p2 = pnand %p5116_p0, %p287_p1 }
   0x6   : > { %291 = sbr.rel (%p288_p2) target bundleno = 1507 (0x5e3), region = 56 }
   0xb   : > { %p6894_p3 = scmp.lt.s32.totalorder %s5112_s10, 1  ;;  %vm10006_vm0 = vcmask 261120   ;;  %vm10005_vm1 = vcmask 523264   ;;  %v6828_v0 = vmov 0.0   ;;  %s7122_s20 = smov 0  }
   0xc   : > { %335 = vst.msk [vmem:[#allocation2] sm:$0xff] %vm10006_vm0, %v6828_v0  ;;  %336 = vst.msk [vmem:[#allocation2 + $0x8] sm:$0xff] %vm10006_vm0, %v6828_v0 }
   0xd   : > { %337 = vst.msk [vmem:[#allocation2 + $0x10] sm:$0xff] %vm10006_vm0, %v6828_v0  ;;  %338 = vst.msk [vmem:[#allocation2 + $0x18] sm:$0xff] %vm10006_vm0, %v6828_v0  ;;  %s10402_s10 = smov (!%p6894_p3, %s5112_s10), 1 }
   0xe   : > { %339 = vst.msk [vmem:[#allocation2 + $0x20] sm:$0xff] %vm10006_vm0, %v6828_v0  ;;  %340 = vst.msk [vmem:[#allocation2 + $0x28] sm:$0xff] %vm10006_vm0, %v6828_v0  ;;  %s6500_s12 = smul.u32 144, %s10402_s10 }
   0xf   : > { %341 = vst.msk [vmem:[#allocation2 + $0x30] sm:$0xff] %vm10006_vm0, %v6828_v0  ;;  %342 = vst.msk [vmem:[#allocation2 + $0x38] sm:$0xff] %vm10006_vm0, %v6828_v0  ;;  %s6501_s13 = smul.u32 288, %s10402_s10 }
  0x10   : > { %343 = vst.msk [vmem:[#allocation2 + $0x40] sm:$0xff] %vm10006_vm0, %v6828_v0  ;;  %344 = vst.msk [vmem:[#allocation2 + $0x48] sm:$0xff] %vm10006_vm0, %v6828_v0  ;;  %s7115_s16 = scalar_lea.vmem %s9995_s0, %s6500_s12 }
  0x11   : > { %345 = vst.msk [vmem:[#allocation2 + $0x50] sm:$0xff] %vm10006_vm0, %v6828_v0  ;;  %346 = vst.msk [vmem:[#allocation2 + $0x58] sm:$0xff] %vm10006_vm0, %v6828_v0  ;;  %s7120_s19 = scalar_lea.vmem %s10004_s9, %s6501_s13 }
  0x12   : > { %347 = vst.msk [vmem:[#allocation2 + $0x60] sm:$0xff] %vm10006_vm0, %v6828_v0  ;;  %348 = vst.msk [vmem:[#allocation2 + $0x68] sm:$0xff] %vm10006_vm0, %v6828_v0 }
  0x13   : > { %349 = vst.msk [vmem:[#allocation2 + $0x70] sm:$0xff] %vm10006_vm0, %v6828_v0  ;;  %350 = vst.msk [vmem:[#allocation2 + $0x78] sm:$0xff] %vm10006_vm0, %v6828_v0 }
  0x14   : > { %351 = vst.msk [vmem:[#allocation2 + $0x80] sm:$0xff] %vm10006_vm0, %v6828_v0  ;;  %352 = vst.msk [vmem:[#allocation2 + $0x88] sm:$0xff] %vm10006_vm0, %v6828_v0 }
  0x15   : > { %353 = vst.msk [vmem:[#allocation2 + $0x90] sm:$0xff] %vm10006_vm0, %v6828_v0  ;;  %354 = vst.msk [vmem:[#allocation2 + $0x98] sm:$0xff] %vm10006_vm0, %v6828_v0 }
  0x16   : > { %355 = vst.msk [vmem:[#allocation2 + $0xa0] sm:$0xff] %vm10006_vm0, %v6828_v0  ;;  %356 = vst.msk [vmem:[#allocation2 + $0xa8] sm:$0xff] %vm10006_vm0, %v6828_v0 }
  0x17   : > { %357 = vst.msk [vmem:[#allocation2 + $0xb0] sm:$0xff] %vm10006_vm0, %v6828_v0  ;;  %358 = vst.msk [vmem:[#allocation2 + $0xb8] sm:$0xff] %vm10006_vm0, %v6828_v0 }
  0x18   : > { %359 = vst.msk [vmem:[#allocation2 + $0xc0] sm:$0xff] %vm10006_vm0, %v6828_v0  ;;  %360 = vst.msk [vmem:[#allocation2 + $0xc8] sm:$0xff] %vm10006_vm0, %v6828_v0 }
  0x19   : > { %361 = vst.msk [vmem:[#allocation2 + $0xd0] sm:$0xff] %vm10006_vm0, %v6828_v0  ;;  %362 = vst.msk [vmem:[#allocation2 + $0xd8] sm:$0xff] %vm10006_vm0, %v6828_v0 }
  0x1a   : > { %363 = vst.msk [vmem:[#allocation2 + $0xe0] sm:$0xff] %vm10006_vm0, %v6828_v0  ;;  %364 = vst.msk [vmem:[#allocation2 + $0xe8] sm:$0xff] %vm10006_vm0, %v6828_v0 }
  0x1b   : > { %365 = vst.msk [vmem:[#allocation2 + $0xf0] sm:$0xff] %vm10006_vm0, %v6828_v0  ;;  %366 = vst.msk [vmem:[#allocation2 + $0xf8] sm:$0xff] %vm10006_vm0, %v6828_v0 }
  0x1c   : > { %367 = vst.msk [vmem:[#allocation2 + $0x100] sm:$0xff] %vm10006_vm0, %v6828_v0  ;;  %368 = vst.msk [vmem:[#allocation2 + $0x108] sm:$0xff] %vm10006_vm0, %v6828_v0 }
  0x1d   : > { %369 = vst.msk [vmem:[#allocation2 + $0x110] sm:$0xff] %vm10006_vm0, %v6828_v0  ;;  %370 = vst.msk [vmem:[#allocation2 + $0x118] sm:$0xff] %vm10006_vm0, %v6828_v0 }
  0x1e   : > { %371 = vst.msk [vmem:[#allocation2 + $0x120] sm:$0xff] %vm10006_vm0, %v6828_v0  ;;  %372 = vst.msk [vmem:[#allocation2 + $0x128] sm:$0xff] %vm10006_vm0, %v6828_v0 }
  0x1f   : > { %373 = vst.msk [vmem:[#allocation2 + $0x130] sm:$0xff] %vm10006_vm0, %v6828_v0  ;;  %374 = vst.msk [vmem:[#allocation2 + $0x138] sm:$0xff] %vm10006_vm0, %v6828_v0 }
  0x20   : > { %375 = vst.msk [vmem:[#allocation2 + $0x140] sm:$0xff] %vm10006_vm0, %v6828_v0  ;;  %376 = vst.msk [vmem:[#allocation2 + $0x148] sm:$0xff] %vm10006_vm0, %v6828_v0 }
  0x21   : > { %420 = vst [vmem:[#allocation4] sm:$0xff] %v6828_v0  ;;  %421 = vst [vmem:[#allocation4 + $0x8] sm:$0xff] %v6828_v0 }
  0x22   : > { %422 = vst [vmem:[#allocation4 + $0x10] sm:$0xff] %v6828_v0  ;;  %423 = vst [vmem:[#allocation4 + $0x18] sm:$0xff] %v6828_v0 }
  0x23   : > { %424 = vst [vmem:[#allocation4 + $0x20] sm:$0xff] %v6828_v0  ;;  %425 = vst [vmem:[#allocation4 + $0x28] sm:$0xff] %v6828_v0 }
  0x24   : > { %426 = vst [vmem:[#allocation4 + $0x30] sm:$0xff] %v6828_v0  ;;  %427 = vst [vmem:[#allocation4 + $0x38] sm:$0xff] %v6828_v0 }
  0x25   : > { %428 = vst [vmem:[#allocation4 + $0x40] sm:$0xff] %v6828_v0  ;;  %429 = vst [vmem:[#allocation4 + $0x48] sm:$0xff] %v6828_v0 }
  0x26   : > { %430 = vst [vmem:[#allocation4 + $0x50] sm:$0xff] %v6828_v0  ;;  %431 = vst [vmem:[#allocation4 + $0x58] sm:$0xff] %v6828_v0 }
  0x27   : > { %432 = vst [vmem:[#allocation4 + $0x60] sm:$0xff] %v6828_v0  ;;  %433 = vst [vmem:[#allocation4 + $0x68] sm:$0xff] %v6828_v0 }
  0x28   : > { %434 = vst [vmem:[#allocation4 + $0x70] sm:$0xff] %v6828_v0  ;;  %435 = vst [vmem:[#allocation4 + $0x78] sm:$0xff] %v6828_v0 }
  0x29   : > { %436 = vst [vmem:[#allocation4 + $0x80] sm:$0xff] %v6828_v0  ;;  %437 = vst [vmem:[#allocation4 + $0x88] sm:$0xff] %v6828_v0 }
  0x2a   : > { %438 = vst [vmem:[#allocation4 + $0x90] sm:$0xff] %v6828_v0  ;;  %439 = vst [vmem:[#allocation4 + $0x98] sm:$0xff] %v6828_v0 }
  0x2b   : > { %440 = vst [vmem:[#allocation4 + $0xa0] sm:$0xff] %v6828_v0  ;;  %441 = vst [vmem:[#allocation4 + $0xa8] sm:$0xff] %v6828_v0 }
  0x2c   : > { %442 = vst [vmem:[#allocation4 + $0xb0] sm:$0xff] %v6828_v0  ;;  %443 = vst [vmem:[#allocation4 + $0xb8] sm:$0xff] %v6828_v0 }
  0x2d   : > { %444 = vst [vmem:[#allocation4 + $0xc0] sm:$0xff] %v6828_v0  ;;  %445 = vst [vmem:[#allocation4 + $0xc8] sm:$0xff] %v6828_v0 }
  0x2e   : > { %446 = vst [vmem:[#allocation4 + $0xd0] sm:$0xff] %v6828_v0  ;;  %447 = vst [vmem:[#allocation4 + $0xd8] sm:$0xff] %v6828_v0 }
  0x2f   : > { %448 = vst [vmem:[#allocation4 + $0xe0] sm:$0xff] %v6828_v0  ;;  %449 = vst [vmem:[#allocation4 + $0xe8] sm:$0xff] %v6828_v0 }
  0x30   : > { %450 = vst [vmem:[#allocation4 + $0xf0] sm:$0xff] %v6828_v0  ;;  %451 = vst [vmem:[#allocation4 + $0xf8] sm:$0xff] %v6828_v0 }
  0x31   : > { %452 = vst [vmem:[#allocation4 + $0x100] sm:$0xff] %v6828_v0  ;;  %453 = vst [vmem:[#allocation4 + $0x108] sm:$0xff] %v6828_v0 }
  0x32   : > { %454 = vst [vmem:[#allocation4 + $0x110] sm:$0xff] %v6828_v0  ;;  %455 = vst [vmem:[#allocation4 + $0x118] sm:$0xff] %v6828_v0 }
  0x33   : > { %456 = vst [vmem:[#allocation4 + $0x120] sm:$0xff] %v6828_v0  ;;  %457 = vst [vmem:[#allocation4 + $0x128] sm:$0xff] %v6828_v0 }
  0x34   : > { %458 = vst [vmem:[#allocation4 + $0x130] sm:$0xff] %v6828_v0  ;;  %459 = vst [vmem:[#allocation4 + $0x138] sm:$0xff] %v6828_v0 }
  0x35   : > { %460 = vst [vmem:[#allocation4 + $0x140] sm:$0xff] %v6828_v0  ;;  %461 = vst [vmem:[#allocation4 + $0x148] sm:$0xff] %v6828_v0 }
  0x36   : > { %378 = vst.msk [vmem:[#allocation3] sm:$0xff] %vm10005_vm1, %v6828_v0  ;;  %379 = vst.msk [vmem:[#allocation3 + $0x8] sm:$0xff] %vm10005_vm1, %v6828_v0 }
  0x37   : > { %380 = vst.msk [vmem:[#allocation3 + $0x10] sm:$0xff] %vm10005_vm1, %v6828_v0  ;;  %381 = vst.msk [vmem:[#allocation3 + $0x18] sm:$0xff] %vm10005_vm1, %v6828_v0 }
  0x38   : > { %382 = vst.msk [vmem:[#allocation3 + $0x20] sm:$0xff] %vm10005_vm1, %v6828_v0  ;;  %383 = vst.msk [vmem:[#allocation3 + $0x28] sm:$0xff] %vm10005_vm1, %v6828_v0 }
  0x39   : > { %384 = vst.msk [vmem:[#allocation3 + $0x30] sm:$0xff] %vm10005_vm1, %v6828_v0  ;;  %385 = vst.msk [vmem:[#allocation3 + $0x38] sm:$0xff] %vm10005_vm1, %v6828_v0 }
  0x3a   : > { %386 = vst.msk [vmem:[#allocation3 + $0x40] sm:$0xff] %vm10005_vm1, %v6828_v0  ;;  %387 = vst.msk [vmem:[#allocation3 + $0x48] sm:$0xff] %vm10005_vm1, %v6828_v0 }
  0x3b   : > { %388 = vst.msk [vmem:[#allocation3 + $0x50] sm:$0xff] %vm10005_vm1, %v6828_v0  ;;  %389 = vst.msk [vmem:[#allocation3 + $0x58] sm:$0xff] %vm10005_vm1, %v6828_v0 }
  0x3c   : > { %390 = vst.msk [vmem:[#allocation3 + $0x60] sm:$0xff] %vm10005_vm1, %v6828_v0  ;;  %391 = vst.msk [vmem:[#allocation3 + $0x68] sm:$0xff] %vm10005_vm1, %v6828_v0 }
  0x3d   : > { %392 = vst.msk [vmem:[#allocation3 + $0x70] sm:$0xff] %vm10005_vm1, %v6828_v0  ;;  %393 = vst.msk [vmem:[#allocation3 + $0x78] sm:$0xff] %vm10005_vm1, %v6828_v0 }
  0x3e   : > { %394 = vst.msk [vmem:[#allocation3 + $0x80] sm:$0xff] %vm10005_vm1, %v6828_v0  ;;  %395 = vst.msk [vmem:[#allocation3 + $0x88] sm:$0xff] %vm10005_vm1, %v6828_v0 }
  0x3f   : > { %396 = vst.msk [vmem:[#allocation3 + $0x90] sm:$0xff] %vm10005_vm1, %v6828_v0  ;;  %397 = vst.msk [vmem:[#allocation3 + $0x98] sm:$0xff] %vm10005_vm1, %v6828_v0 }
  0x40   : > { %398 = vst.msk [vmem:[#allocation3 + $0xa0] sm:$0xff] %vm10005_vm1, %v6828_v0  ;;  %399 = vst.msk [vmem:[#allocation3 + $0xa8] sm:$0xff] %vm10005_vm1, %v6828_v0 }
  0x41   : > { %400 = vst.msk [vmem:[#allocation3 + $0xb0] sm:$0xff] %vm10005_vm1, %v6828_v0  ;;  %401 = vst.msk [vmem:[#allocation3 + $0xb8] sm:$0xff] %vm10005_vm1, %v6828_v0 }
  0x42   : > { %402 = vst.msk [vmem:[#allocation3 + $0xc0] sm:$0xff] %vm10005_vm1, %v6828_v0  ;;  %403 = vst.msk [vmem:[#allocation3 + $0xc8] sm:$0xff] %vm10005_vm1, %v6828_v0 }
  0x43   : > { %404 = vst.msk [vmem:[#allocation3 + $0xd0] sm:$0xff] %vm10005_vm1, %v6828_v0  ;;  %405 = vst.msk [vmem:[#allocation3 + $0xd8] sm:$0xff] %vm10005_vm1, %v6828_v0 }
  0x44   : > { %406 = vst.msk [vmem:[#allocation3 + $0xe0] sm:$0xff] %vm10005_vm1, %v6828_v0  ;;  %407 = vst.msk [vmem:[#allocation3 + $0xe8] sm:$0xff] %vm10005_vm1, %v6828_v0 }
  0x45   : > { %408 = vst.msk [vmem:[#allocation3 + $0xf0] sm:$0xff] %vm10005_vm1, %v6828_v0  ;;  %409 = vst.msk [vmem:[#allocation3 + $0xf8] sm:$0xff] %vm10005_vm1, %v6828_v0 }
  0x46   : > { %410 = vst.msk [vmem:[#allocation3 + $0x100] sm:$0xff] %vm10005_vm1, %v6828_v0  ;;  %411 = vst.msk [vmem:[#allocation3 + $0x108] sm:$0xff] %vm10005_vm1, %v6828_v0 }
  0x47   : > { %412 = vst.msk [vmem:[#allocation3 + $0x110] sm:$0xff] %vm10005_vm1, %v6828_v0  ;;  %413 = vst.msk [vmem:[#allocation3 + $0x118] sm:$0xff] %vm10005_vm1, %v6828_v0 }
  0x48   : > { %414 = vst.msk [vmem:[#allocation3 + $0x120] sm:$0xff] %vm10005_vm1, %v6828_v0  ;;  %415 = vst.msk [vmem:[#allocation3 + $0x128] sm:$0xff] %vm10005_vm1, %v6828_v0 }
  0x49   : > { %416 = vst.msk [vmem:[#allocation3 + $0x130] sm:$0xff] %vm10005_vm1, %v6828_v0  ;;  %417 = vst.msk [vmem:[#allocation3 + $0x138] sm:$0xff] %vm10005_vm1, %v6828_v0 }
  0x4a   : > { %418 = vst.msk [vmem:[#allocation3 + $0x140] sm:$0xff] %vm10005_vm1, %v6828_v0  ;;  %419 = vst.msk [vmem:[#allocation3 + $0x148] sm:$0xff] %vm10005_vm1, %v6828_v0 }
  0x4b LB: >> { %v6620_v1 = vld [vmem:[%s9996_s1 + $0x8] sm:$0x3f]   ;;  %vm556_vm2 = vcmask 1044480   ;;  %vm557_vm3 = vcmask 1045504   ;;  %v6829_v2 = vmov 65535   ;;  %s7131_s23 = smul.u32 96, %s6814_s20  ;;  %v680_v13 = vlaneseq  ;;  %s6814_s20 = sphi %s7122_s20, %s467_s20  }
  0x4c   : >> { %v558_v3 = vsel %vm556_vm2, 4294967295, %v6829_v2  ;;  %v6621_v6 = vld [vmem:[%s9996_s1] sm:$0xff]   ;;  %vm537_vm4 = vcmask 220160   ;;  %s467_s20 = sadd.s32 1, %s6814_s20  }
  0x4d   : >> { %v559_v4 = vsel %vm557_vm3, %v558_v3, 0  ;;  %s469_s26 = sshra.s32 %s7131_s23, 3  ;;  %v7144_v14 = vshrl.u32 %v680_v13, 7  ;;  %v693_v16 = vstv %s7131_s23  ;;  %s7631_s11 = scalar_lea.vmem [#allocation2], %s7131_s23 }
  0x4e   : >> { %v561_v5 = vand.u32 %v6620_v1, %v559_v4  ;;  %s5119_s27 = sshll.u32 %s469_s26, 2  ;;  %p464_p4 = scmp.ge.s32.totalorder %s467_s20, 3  }
  0x4f   : >> { %s472_s28 = scalar_lea.vmem %s7115_s16, %s5119_s27  ;;  %10040 = vst [vmem:[#allocation5_spill] sm:$0xff] %v7144_v14  ;;  %v7147_v15 = vadd.s32 48, %v7144_v14  ;;  %v7155_v19 = vadd.s32 16, %v7144_v14  ;;  %v7159_v21 = vadd.s32 32, %v7144_v14  ;;  %v7171_v26 = vadd.s32 56, %v7144_v14  ;;  %s7748_s12 = smov (%p464_p4), 0  }
  0x50   : >> { %6448 = vmatprep.subr.bf16.mxu0 %v561_v5  ;;  %6464 = vmatprep.subr.bf16.mxu1 %v561_v5  ;;  %v6622_v7 = vld [vmem:[%s472_s28] sm:$0xff]   ;;  %v6623_v8 = vld [vmem:[%s472_s28 + $0x10] sm:$0xff]   ;;  %v6624_v9 = vld [vmem:[%s472_s28 + $0x8] sm:$0xff]   ;;  %v7175_v28 = vadd.s32 %v693_v16, %v7144_v14  ;;  %v7178_v29 = vadd.s32 24, %v7144_v14  ;;  %v7181_v30 = vadd.s32 8, %v7144_v14  ;;  %v7190_v35 = vadd.s32 40, %v7144_v14 }
  0x51   : >> { %6449 = vmatpush3.bf16.msra.mxu0 %v561_v5  ;;  %6466 = vmatpush3.bf16.msra.mxu1 %v561_v5  ;;  %v6625_v10 = vld [vmem:[%s472_s28 + $0x18] sm:$0xff]   ;;  %v6626_v11 = vld [vmem:[%s472_s28 + $0x20] sm:$0xff]   ;;  %v6627_v12 = vld [vmem:[%s472_s28 + $0x28] sm:$0xff]   ;;  %10041 = vst [vmem:[#allocation6_spill] sm:$0xff] %v7147_v15  ;;  %v7151_v17 = vadd.s32 %v693_v16, %v7147_v15  ;;  %v7162_v22 = vadd.s32 %v693_v16, %v7155_v19  ;;  %v7196_v37 = vadd.s32 80, %v7144_v14  ;;  %v7202_v39 = vadd.s32 64, %v7144_v14 }
  0x52   : >> { %6450 = vmatprep.subr.bf16.mxu0 %v6621_v6  ;;  %6465 = vmatprep.subr.bf16.mxu1 %v6621_v6  ;;  %10042 = vst [vmem:[#allocation7_spill] sm:$0xff] %v7155_v19  ;;  %10043 = vst [vmem:[#allocation8_spill] sm:$0xff] %v7159_v21  ;;  %v7168_v25 = vadd.s32 %v693_v16, %v7159_v21  ;;  %v7185_v32 = vadd.s32 %v693_v16, %v7171_v26  ;;  %v707_v34 = vsub.s32 0, %v7175_v28 }
  0x53   : >> { %6452 = vmatprep.mubr.msk.bf16.mxu0 %vm537_vm4, %v6622_v7  ;;  %6456 = vmatprep.mubr.msk.bf16.mxu1 %vm537_vm4, %v6623_v8  ;;  %v773_v18 = vsub.s32 0, %v7151_v17  ;;  %10044 = vst [vmem:[#allocation9_spill] sm:$0xff] %v7171_v26  ;;  %v729_v27 = vsub.s32 0, %v7162_v22  ;;  %10045 = vst [vmem:[#allocation10_spill] sm:$0xff] %v7178_v29  ;;  %v7193_v36 = vadd.s32 %v693_v16, %v7178_v29  ;;  %v7219_v49 = vadd.s32 88, %v7144_v14 }
  0x54   : >> { %10046 = vst [vmem:[#allocation11_spill] sm:$0xff] %v7181_v30  ;;  %v751_v31 = vsub.s32 0, %v7168_v25  ;;  %10047 = vst [vmem:[#allocation12_spill] sm:$0xff] %v7190_v35  ;;  %v7199_v38 = vadd.s32 %v693_v16, %v7181_v30  ;;  %v784_v42 = vsub.s32 0, %v7185_v32  ;;  %v5135_v45 = vmin.u32 %v707_v34, %v7175_v28 }
  0x55   : >> { %6451 = vmatpush3.bf16.msra.mxu0 %v6621_v6  ;;  %6467 = vmatpush3.bf16.msra.mxu1 %v6621_v6  ;;  %v5141_v20 = vmin.u32 %v773_v18, %v7151_v17  ;;  %v5137_v33 = vmin.u32 %v729_v27, %v7162_v22  ;;  %10048 = vst [vmem:[#allocation13_spill] sm:$0xff] %v7196_v37  ;;  %10049 = vst [vmem:[#allocation14_spill] sm:$0xff] %v7202_v39  ;;  %v740_v47 = vsub.s32 0, %v7193_v36 }
  0x56   : >> { %v5139_v41 = vmin.u32 %v751_v31, %v7168_v25  ;;  %v7212_v46 = vadd.s32 %v693_v16, %v7190_v35  ;;  %v7216_v48 = vadd.s32 %v693_v16, %v7196_v37  ;;  %10050 = vst [vmem:[#allocation15_spill] sm:$0xff] %v7219_v49  ;;  %v718_v50 = vsub.s32 0, %v7199_v38 }
  0x57   : >> { %v7164_v23 = vmul.u32.u64.low 3817748708, %v5141_v20  ;;  %v7165_v24 = vmul.u32.u64.high 3817748708, %v5141_v20, %v7164_v23  ;;  %v7207_v43 = vmul.u32.u64.low 3817748708, %v5137_v33  ;;  %v7208_v44 = vmul.u32.u64.high 3817748708, %v5137_v33, %v7207_v43 }
  0x58   : >> { %6453 = vmatmul.mubr.msk.bf16.vlgmr.msra.gmra.mxu0 %vm537_vm4, %v6624_v9  ;;  %6457 = vmatmul.mubr.msk.bf16.vlgmr.msra.gmra.mxu1 %vm537_vm4, %v6625_v10  ;;  %v7223_v51 = vadd.s32 %v693_v16, %v7202_v39  ;;  %v7226_v52 = vadd.s32 72, %v7144_v14  ;;  %v7228_v54 = vmul.u32.u64.low 3817748708, %v5139_v41  ;;  %v7229_v55 = vmul.u32.u64.high 3817748708, %v5139_v41, %v7228_v54 }
  0x59   : >> { %6460 = vmatprep.mubr.msk.bf16.mxu1 %vm537_vm4, %v6626_v11  ;;  %v778_v40 = vshrl.u32 %v7165_v24, 4  ;;  %v7231_v56 = vmul.u32.u64.low 3817748708, %v5135_v45  ;;  %v7232_v57 = vmul.u32.u64.high 3817748708, %v5135_v45, %v7231_v56  ;;  %v7235_v58 = vmin.u32 %v784_v42, %v7185_v32 }
  0x5a   : >> { %10051 = vst [vmem:[#allocation16_spill] sm:$0xff] %v7226_v52  ;;  %v762_v59 = vsub.s32 0, %v7212_v46  ;;  %v7239_v60 = vmin.u32 %v740_v47, %v7193_v36  ;;  %v817_v61 = vsub.s32 0, %v7216_v48  ;;  %v7243_v62 = vadd.s32 %v693_v16, %v7219_v49 }
  0x5b   : >> { %v779_v53 = vmul.u32 18, %v778_v40  ;;  %v7246_v63 = vmin.u32 %v718_v50, %v7199_v38  ;;  %v795_v0 = vsub.s32 0, %v7223_v51  ;;  %v7250_v1 = vadd.s32 %v693_v16, %v7226_v52 }
  0x5c   : >> { %v734_v3 = vshrl.u32 %v7208_v44, 4  ;;  %v7254_v4 = vmul.u32.u64.low 3817748708, %v7235_v58  ;;  %v7255_v5 = vmul.u32.u64.high 3817748708, %v7235_v58, %v7254_v4  ;;  %v7258_v6 = vmin.u32 %v762_v59, %v7212_v46 }
  0x5d   : >> { %v780_v2 = vsub.s32 %v5141_v20, %v779_v53  ;;  %v7261_v7 = vmul.u32.u64.low 3817748708, %v7239_v60  ;;  %v7262_v8 = vmul.u32.u64.high 3817748708, %v7239_v60, %v7261_v7  ;;  %v7265_v9 = vmin.u32 %v817_v61, %v7216_v48 }
  0x5e   : >> { %v828_v10 = vsub.s32 0, %v7243_v62  ;;  %v7273_v13 = vmin.u32 %v795_v0, %v7223_v51  ;;  %v806_v16 = vsub.s32 0, %v7250_v1  ;;  %v756_v20 = vshrl.u32 %v7229_v55, 4 }
  0x5f   : >> { %v781_v18 = vsub.s32 0, %v780_v2  ;;  %v735_v23 = vmul.u32 18, %v734_v3  ;;  %v712_v24 = vshrl.u32 %v7232_v57, 4  ;;  %vm772_vm5 = vcmp.lt.s32.totalorder %v7151_v17, 0 }
  0x60   : >> { %6461 = vmatmul.mubr.msk.bf16.gmra.mxu1 %vm537_vm4, %v6627_v12  ;;  %v7269_v11 = vmul.u32.u64.low 3817748708, %v7246_v63  ;;  %v7270_v12 = vmul.u32.u64.high 3817748708, %v7246_v63, %v7269_v11  ;;  %v7279_v27 = vmul.u32.u64.low 3817748708, %v7258_v6  ;;  %v7280_v31 = vmul.u32.u64.high 3817748708, %v7258_v6, %v7279_v27 }
  0x61   : >> { %v7284_v34 = vmul.u32.u64.low 3817748708, %v7265_v9  ;;  %v7285_v40 = vmul.u32.u64.high 3817748708, %v7265_v9, %v7284_v34  ;;  %v7288_v42 = vmin.u32 %v828_v10, %v7243_v62  ;;  %v7295_v47 = vmin.u32 %v806_v16, %v7250_v1 }
  0x62   : >> { %v7291_v43 = vmul.u32.u64.low 3817748708, %v7273_v13  ;;  %v7292_v44 = vmul.u32.u64.high 3817748708, %v7273_v13, %v7291_v43  ;;  %v757_v50 = vmul.u32 18, %v756_v20  ;;  %v736_v53 = vsub.s32 %v5137_v33, %v735_v23 }
  0x63   : >> { %v7297_v54 = vsel %vm772_vm5, %v781_v18, %v780_v2  ;;  %v713_v55 = vmul.u32 18, %v712_v24  ;;  %v745_v56 = vshrl.u32 %v7262_v8, 4  ;;  %v789_v57 = vshrl.u32 %v7255_v5, 4 }
  0x64   : >> { %v7302_v59 = vmul.u32.u64.low 3817748708, %v7288_v42  ;;  %v7303_v61 = vmul.u32.u64.high 3817748708, %v7288_v42, %v7302_v59  ;;  %v723_v0 = vshrl.u32 %v7270_v12, 4  ;;  %vm844_vm6 = vcmp.ne.s32.totalorder %v7297_v54, 0 }
  0x65   : >> { %v7307_v3 = vmul.u32.u64.low 3817748708, %v7295_v47  ;;  %v7308_v4 = vmul.u32.u64.high 3817748708, %v7295_v47, %v7307_v3  ;;  %v758_v33 = vsub.s32 %v5139_v41, %v757_v50  ;;  %v737_v2 = vsub.s32 0, %v736_v53 }
  0x66   : >> { %vm856_vm7 = vcmp.lt.s32.totalorder %v7297_v54, 0  ;;  %v714_v7 = vsub.s32 %v5135_v45, %v713_v55  ;;  %v767_v8 = vshrl.u32 %v7280_v31, 4  ;;  %vm728_vm8 = vcmp.lt.s32.totalorder %v7162_v22, 0 }
  0x67   : >> { %v746_v5 = vmul.u32 18, %v745_v56  ;;  %v790_v10 = vmul.u32 18, %v789_v57  ;;  %v822_v11 = vshrl.u32 %v7285_v40, 4  ;;  %v800_v16 = vshrl.u32 %v7292_v44, 4  ;;  %vm7324_vm10 = vmand %vm856_vm7, %vm844_vm6 }
  0x68   : >> { %v724_v12 = vmul.u32 18, %v723_v0  ;;  %v880_v18 = vadd.s32 18, %v7297_v54  ;;  %vm750_vm9 = vcmp.lt.s32.totalorder %v7168_v25, 0  ;;  %v759_v41 = vsub.s32 0, %v758_v33 }
  0x69   : >> { %v7318_v20 = vsel %vm728_vm8, %v737_v2, %v736_v53  ;;  %vm706_vm11 = vcmp.lt.s32.totalorder %v7175_v28, 0  ;;  %v715_v23 = vsub.s32 0, %v714_v7  ;;  %v768_v24 = vmul.u32 18, %v767_v8 }
  0x6a   : >> { %v747_v27 = vsub.s32 %v7239_v60, %v746_v5  ;;  %v791_v31 = vsub.s32 %v7235_v58, %v790_v10  ;;  %v823_v34 = vmul.u32 18, %v822_v11  ;;  %v833_v40 = vshrl.u32 %v7303_v61, 4 }
  0x6b   : >> { %v725_v43 = vsub.s32 %v7246_v63, %v724_v12  ;;  %v801_v44 = vmul.u32 18, %v800_v16  ;;  %v811_v50 = vshrl.u32 %v7308_v4, 4  ;;  %v892_v53 = vsel %vm7324_vm10, %v880_v18, %v7297_v54 }
  0x6c   : >> { %v7337_v55 = vsel %vm750_vm9, %v759_v41, %v758_v33  ;;  %vm783_vm12 = vcmp.lt.s32.totalorder %v7185_v32, 0  ;;  %vm840_vm13 = vcmp.ne.s32.totalorder %v7318_v20, 0  ;;  %vm852_vm14 = vcmp.lt.s32.totalorder %v7318_v20, 0 }
  0x6d   : >> { %v7342_v58 = vsel %vm706_vm11, %v715_v23, %v714_v7  ;;  %v769_v60 = vsub.s32 %v7258_v6, %v768_v24  ;;  %v748_v63 = vsub.s32 0, %v747_v27  ;;  %v792_v56 = vsub.s32 0, %v791_v31  ;;  %vm7356_vm5 = vmand %vm852_vm14, %vm840_vm13 }
  0x6e   : >> { %v824_v57 = vsub.s32 %v7265_v9, %v823_v34  ;;  %v834_v59 = vmul.u32 18, %v833_v40  ;;  %vm739_vm15 = vcmp.lt.s32.totalorder %v7193_v36, 0  ;;  %v726_v54 = vsub.s32 0, %v725_v43 }
  0x6f   : >> { %v802_v61 = vsub.s32 %v7273_v13, %v801_v44  ;;  %v812_v0 = vmul.u32 18, %v811_v50  ;;  %v876_v3 = vadd.s32 18, %v7318_v20  ;;  %vm838_vm2 = vcmp.ne.s32.totalorder %v7342_v58, 0 }
  0x70   : >> { %vm850_vm3 = vcmp.lt.s32.totalorder %v7342_v58, 0  ;;  %vm717_vm4 = vcmp.lt.s32.totalorder %v7199_v38, 0  ;;  %vm842_vm6 = vcmp.ne.s32.totalorder %v7337_v55, 0  ;;  %vm854_vm7 = vcmp.lt.s32.totalorder %v7337_v55, 0 }
  0x71   : >> { %vm761_vm8 = vcmp.lt.s32.totalorder %v7212_v46, 0  ;;  %v770_v9 = vsub.s32 0, %v769_v60  ;;  %v7363_v13 = vsel %vm739_vm15, %v748_v63, %v747_v27  ;;  %v7367_v4 = vsel %vm783_vm12, %v792_v56, %v791_v31  ;;  %vm7384_vm11 = vmand %vm850_vm3, %vm838_vm2 }
  0x72   : >> { %v825_v33 = vsub.s32 0, %v824_v57  ;;  %v835_v2 = vsub.s32 %v7288_v42, %v834_v59  ;;  %v7370_v7 = vsel %vm717_vm4, %v726_v54, %v725_v43  ;;  %vm816_vm9 = vcmp.lt.s32.totalorder %v7216_v48, 0  ;;  %vm7399_vm15 = vmand %vm854_vm7, %vm842_vm6 }
  0x73   : >> { %v803_v8 = vsub.s32 0, %v802_v61  ;;  %v813_v5 = vsub.s32 %v7295_v47, %v812_v0  ;;  %v888_v10 = vsel %vm7356_vm5, %v876_v3, %v7318_v20  ;;  %v874_v11 = vadd.s32 18, %v7342_v58  ;;  %v7508_v3 = vld [vmem:[%s9997_s2] ss:$0 sm:$0xff] }
  0x74   : >> { %v878_v12 = vadd.s32 18, %v7337_v55  ;;  %vm794_vm10 = vcmp.lt.s32.totalorder %v7223_v51, 0  ;;  %vm841_vm12 = vcmp.ne.s32.totalorder %v7363_v13, 0  ;;  %vm853_vm13 = vcmp.lt.s32.totalorder %v7363_v13, 0 }
  0x75   : >> { %vm845_vm14 = vcmp.ne.s32.totalorder %v7367_v4, 0  ;;  %v7393_v47 = vsel %vm761_vm8, %v770_v9, %v769_v60  ;;  %vm857_vm2 = vcmp.lt.s32.totalorder %v7367_v4, 0  ;;  %vm839_vm3 = vcmp.ne.s32.totalorder %v7370_v7, 0 }
  0x76   : >> { %v7405_v18 = vsel %vm816_vm9, %v825_v33, %v824_v57  ;;  %v836_v41 = vsub.s32 0, %v835_v2  ;;  %vm7407_vm4 = vcmp.lt.s32.totalorder %v892_v53, 16  ;;  %vm851_vm8 = vcmp.lt.s32.totalorder %v7370_v7, 0  ;;  %vm7424_vm9 = vmand %vm853_vm13, %vm841_vm12 }
  0x77   : >> { %v7413_v45 = vsel %vm794_vm10, %v803_v8, %v802_v61  ;;  %vm827_vm6 = vcmp.lt.s32.totalorder %v7243_v62, 0  ;;  %v814_v23 = vsub.s32 0, %v813_v5  ;;  %v886_v24 = vsel %vm7384_vm11, %v874_v11, %v7342_v58  ;;  %vm7439_vm11 = vmand %vm857_vm2, %vm845_vm14 }
  0x78   : >> { %vm843_vm10 = vcmp.ne.s32.totalorder %v7393_v47, 0  ;;  %vm855_vm1 = vcmp.lt.s32.totalorder %v7393_v47, 0  ;;  %vm805_vm0 = vcmp.lt.s32.totalorder %v7250_v1, 0  ;;  %v890_v31 = vsel %vm7399_vm15, %v878_v12, %v7337_v55  ;;  %vm7451_vm15 = vmand %vm851_vm8, %vm839_vm3 }
  0x79   : >> { %v877_v34 = vadd.s32 18, %v7363_v13  ;;  %vm848_vm12 = vcmp.ne.s32.totalorder %v7405_v18, 0  ;;  %vm860_vm13 = vcmp.lt.s32.totalorder %v7405_v18, 0  ;;  %v881_v43 = vadd.s32 18, %v7367_v4  ;;  %vm7464_vm7 = vmand %vm855_vm1, %vm843_vm10 }
  0x7a   : >> { %vm846_vm14 = vcmp.ne.s32.totalorder %v7413_v45, 0  ;;  %vm858_vm2 = vcmp.lt.s32.totalorder %v7413_v45, 0  ;;  %v7459_v50 = vsel %vm827_vm6, %v836_v41, %v835_v2  ;;  %v875_v53 = vadd.s32 18, %v7370_v7  ;;  %vm7487_vm6 = vmand %vm860_vm13, %vm848_vm12 }
  0x7b   : >> { %v879_v58 = vadd.s32 18, %v7393_v47  ;;  %v884_v60 = vadd.s32 18, %v7405_v18  ;;  %v7472_v63 = vsel %vm805_vm0, %v814_v23, %v813_v5  ;;  %vm7474_vm3 = vcmp.lt.s32.totalorder %v888_v10, 16  ;;  %vm7499_vm5 = vmand %vm858_vm2, %vm846_vm14 }
  0x7c   : >> { %vm7478_vm8 = vcmp.lt.s32.totalorder %v886_v24, 16  ;;  %v882_v54 = vadd.s32 18, %v7413_v45  ;;  %vm7492_vm0 = vcmp.lt.s32.totalorder %v890_v31, 16  ;;  %vm849_vm1 = vcmp.ne.s32.totalorder %v7459_v50, 0 }
  0x7d   : >> { %vm861_vm12 = vcmp.lt.s32.totalorder %v7459_v50, 0  ;;  %v889_v6 = vsel %vm7424_vm9, %v877_v34, %v7363_v13  ;;  %vm847_vm14 = vcmp.ne.s32.totalorder %v7472_v63, 0  ;;  %vm859_vm2 = vcmp.lt.s32.totalorder %v7472_v63, 0 }
  0x7e   : >> { %v893_v9 = vsel %vm7439_vm11, %v881_v43, %v7367_v4  ;;  %v887_v33 = vsel %vm7451_vm15, %v875_v53, %v7370_v7  ;;  %v891_v2 = vsel %vm7464_vm7, %v879_v58, %v7393_v47  ;;  %v896_v13 = vsel %vm7487_vm6, %v884_v60, %v7405_v18  ;;  %vm7534_vm11 = vmand %vm861_vm12, %vm849_vm1 }
  0x7f   : >> { %v894_v4 = vsel %vm7499_vm5, %v882_v54, %v7413_v45  ;;  %v7539_v10 = vadd.s32 18, %v7459_v50  ;;  %v7542_v11 = vadd.s32 18, %v7472_v63  ;;  %vm7546_vm7 = vcmp.lt.s32.totalorder %v889_v6, 16  ;;  %vm7555_vm15 = vmand %vm859_vm2, %vm847_vm14 }
  0x80   : >> { %vm10086_vm1 = vcmp.lt.s32.totalorder %v7151_v17, 288  ;;  %vm7567_vm12 = vcmp.lt.s32.totalorder %v893_v9, 16  ;;  %vm7571_vm5 = vcmp.lt.s32.totalorder %v887_v33, 16  ;;  %v10091_v24 = vmov 0 }
  0x81   : >> { %vm7563_vm6 = vmand %vm7407_vm4, %vm10086_vm1  ;;  %v10092_v24 = vsel %vm7571_vm5, 4294967295, %v10091_v24  ;;  %vm7575_vm14 = vcmp.lt.s32.totalorder %v891_v2, 16  ;;  %vm7579_vm2 = vcmp.lt.s32.totalorder %v896_v13, 16  ;;  %v10095_v17 = vmov 0 }
  0x82   : >> { %v10096_v17 = vsel %vm7579_vm2, 4294967295, %v10095_v17  ;;  %vm920_vm4 = vcmp.lt.s32.totalorder %v7216_v48, 288  ;;  %vm10097_vm9 = vcmp.lt.s32.totalorder %v7162_v22, 288  ;;  %vm7592_vm5 = vcmp.lt.s32.totalorder %v894_v4, 16 }
  0x83   : >> { %vm7588_vm13 = vmand %vm7474_vm3, %vm10097_vm9  ;;  %v897_v55 = vsel %vm7534_vm11, %v7539_v10, %v7459_v50  ;;  %vm921_vm3 = vcmp.lt.s32.totalorder %v7243_v62, 288  ;;  %v895_v58 = vsel %vm7555_vm15, %v7542_v11, %v7472_v63  ;;  %vm10102_vm9 = vcmp.lt.s32.totalorder %v7175_v28, 288 }
  0x84   : >> { %vm7612_vm2 = vmand %vm7478_vm8, %vm10102_vm9  ;;  %vm10108_vm15 = vcmask 261120  }
 0x118   : >> { %v6454_v8 = vpop.f32.mrf.mxu0  ;;  %v6458_v5 = vpop.f32.mrf.mxu1 }
 0x119   : >> { %v606_v12 = vadd.f32 %v6454_v8, %v7508_v3  ;;  %v622_v42 = vadd.f32 %v6458_v5, %v7508_v3 }
 0x11a   : >> { %v597_v41 = vpop.f32.mrf.mxu0  ;;  %v613_v45 = vpop.f32.mrf.mxu1 }
 0x11b   : >> { %vm646_vm1 = vcmp.ge.f32.partialorder %v606_v12, 0.0  ;;  %v658_v20 = vmul.f32 0.2, %v606_v12  ;;  %vm650_vm10 = vcmp.ge.f32.partialorder %v622_v42, 0.0  ;;  %v662_v34 = vmul.f32 0.2, %v622_v42 }
 0x11c   : >> { %v598_v43 = vadd.f32 %v7508_v3, %v597_v41  ;;  %v614_v44 = vadd.f32 %v7508_v3, %v613_v45  ;;  %v6455_v53 = vpop.f32.mrf.mxu0  ;;  %v6459_v22 = vpop.f32.mrf.mxu1 }
 0x11d   : >> { %v670_v60 = vsel %vm646_vm1, %v606_v12, %v658_v20  ;;  %v674_v56 = vsel %vm650_vm10, %v622_v42, %v662_v34  ;;  %v609_v54 = vadd.f32 %v6455_v53, %v7508_v3  ;;  %v625_v50 = vadd.f32 %v6459_v22, %v7508_v3 }
 0x11e   : >> { %v960_v0 = vsel %vm7588_vm13, %v670_v60, 0.0  ;;  %v964_v63 = vsel %vm7563_vm6, %v674_v56, 0.0  ;;  %vm644_vm11 = vcmp.ge.f32.partialorder %v598_v43, 0.0  ;;  %v656_v6 = vmul.f32 0.2, %v598_v43  ;;  %v600_v57 = vpop.f32.mrf.mxu0  ;;  %v616_v9 = vpop.f32.mrf.mxu1  ;;  %vm10109_vm13 = vmmov %vm10108_vm15 }
 0x11f   : >> { %vm10105_vm10 = vcmp.lt.s32.totalorder %v7168_v25, 288  ;;  %5149 = vst.msk [vmem:[%s7631_s11 + $0x28] sm:$0xff] %vm10108_vm15, %v960_v0  ;;  %vm648_vm6 = vcmp.ge.f32.partialorder %v614_v44, 0.0  ;;  %v660_v33 = vmul.f32 0.2, %v614_v44  ;;  %vm647_vm1 = vcmp.ge.f32.partialorder %v609_v54, 0.0 }
 0x120   : >> { %vm7626_vm8 = vmand %vm7492_vm0, %vm10105_vm10  ;;  %5153 = vst.msk [vmem:[%s7631_s11 + $0x48] sm:$0xff] %vm10109_vm13, %v964_v63  ;;  %v659_v25 = vmul.f32 0.2, %v609_v54  ;;  %vm10110_vm0 = vcmp.lt.s32.totalorder %v7193_v36, 288  ;;  %v668_v2 = vsel %vm644_vm11, %v598_v43, %v656_v6  ;;  %vm651_vm10 = vcmp.ge.f32.partialorder %v625_v50, 0.0  ;;  %v6462_v5 = vpop.f32.mrf.mxu1 }
 0x121   : >> { %vm7641_vm9 = vmand %vm7546_vm7, %vm10110_vm0  ;;  %v663_v13 = vmul.f32 0.2, %v625_v50  ;;  %vm10113_vm15 = vcmp.lt.s32.totalorder %v7185_v32, 288  ;;  %v601_v36 = vadd.f32 %v7508_v3, %v600_v57  ;;  %v958_v4 = vsel %vm7612_vm2, %v668_v2, 0.0 }
 0x122   : >> { %vm7649_vm13 = vmand %vm7567_vm12, %vm10113_vm15  ;;  %v672_v7 = vsel %vm648_vm6, %v614_v44, %v660_v33  ;;  %v671_v10 = vsel %vm647_vm1, %v609_v54, %v659_v25  ;;  %v617_v11 = vadd.f32 %v7508_v3, %v616_v9  ;;  %vm10116_vm7 = vcmask 261120   ;;  %v629_v16 = vpop.f32.mrf.mxu1 }
 0x123   : >> { %5147 = vst.msk [vmem:[%s7631_s11 + $0x18] sm:$0xff] %vm10116_vm7, %v958_v4  ;;  %v962_v32 = vsel %vm7626_vm8, %v672_v7, 0.0  ;;  %v961_v12 = vsel %vm7641_vm9, %v671_v10, 0.0  ;;  %v675_v42 = vsel %vm651_vm10, %v625_v50, %v663_v13  ;;  %vm645_vm12 = vcmp.ge.f32.partialorder %v601_v36, 0.0  ;;  %vm10121_vm6 = vmmov %vm10116_vm7 }
 0x124   : >> { %vm10117_vm11 = vcmp.lt.s32.totalorder %v7199_v38, 288  ;;  %vm10118_vm0 = vnez %v10092_v24  ;;  %5151 = vst.msk [vmem:[%s7631_s11 + $0x38] sm:$0xff] %vm10121_vm6, %v962_v32  ;;  %vm10122_vm1 = vmmov %vm10121_vm6  ;;  %v965_v18 = vsel %vm7649_vm13, %v675_v42, 0.0  ;;  %v657_v41 = vmul.f32 0.2, %v601_v36  ;;  %v6463_v20 = vpop.f32.mrf.mxu1 }
 0x125   : >> { %vm7667_vm2 = vmand %vm10118_vm0, %vm10117_vm11  ;;  %5150 = vst.msk [vmem:[%s7631_s11 + $0x30] sm:$0xff] %vm10122_vm1, %v961_v12  ;;  %vm649_vm8 = vcmp.ge.f32.partialorder %v617_v11, 0.0  ;;  %v661_v45 = vmul.f32 0.2, %v617_v11  ;;  %vm10123_vm9 = vcmp.lt.s32.totalorder %v7212_v46, 288  ;;  %v638_v23 = vadd.f32 %v6462_v5, %v7508_v3 }
 0x126   : >> { %vm7681_vm10 = vmand %vm7575_vm14, %vm10123_vm9  ;;  %v630_v24 = vadd.f32 %v7508_v3, %v629_v16  ;;  %vm7689_vm13 = vcmp.lt.s32.totalorder %v897_v55, 16  ;;  %vm919_vm7 = vcmp.lt.s32.totalorder %v7250_v1, 288  ;;  %v669_v46 = vsel %vm645_vm12, %v601_v36, %v657_v41  ;;  %v632_v55 = vpop.f32.mrf.mxu1 }
 0x127   : >> { %vm10126_vm15 = vmmov %vm10122_vm1  ;;  %v673_v27 = vsel %vm649_vm8, %v617_v11, %v661_v45  ;;  %vm10129_vm14 = vnez %v10096_v17  ;;  %v641_v43 = vadd.f32 %v6463_v20, %v7508_v3  ;;  %vm7704_vm0 = vcmp.lt.s32.totalorder %v895_v58, 16 }
 0x128   : >> { %5154 = vst.msk [vmem:[%s7631_s11 + $0x50] sm:$0xff] %vm10126_vm15, %v965_v18  ;;  %vm7699_vm11 = vmand %vm10129_vm14, %vm920_vm4  ;;  %v959_v53 = vsel %vm7667_vm2, %v669_v46, 0.0  ;;  %v963_v22 = vsel %vm7681_vm10, %v673_v27, 0.0  ;;  %vm654_vm12 = vcmp.ge.f32.partialorder %v638_v23, 0.0  ;;  %v666_v48 = vmul.f32 0.2, %v638_v23 }
 0x129   : >> { %vm10134_vm4 = vcmp.lt.s32.totalorder %v7223_v51, 288  ;;  %5148 = vst.msk [vmem:[%s7631_s11 + $0x20] sm:$0xff] %vm10122_vm1, %v959_v53  ;;  %vm10137_vm8 = vmmov %vm10122_vm1  ;;  %vm652_vm2 = vcmp.ge.f32.partialorder %v630_v24, 0.0  ;;  %v664_v58 = vmul.f32 0.2, %v630_v24  ;;  %vm655_vm9 = vcmp.ge.f32.partialorder %v641_v43, 0.0 }
 0x12a   : >> { %vm7716_vm6 = vmand %vm7592_vm5, %vm10134_vm4  ;;  %5152 = vst.msk [vmem:[%s7631_s11 + $0x40] sm:$0xff] %vm10137_vm8, %v963_v22  ;;  %v667_v60 = vmul.f32 0.2, %v641_v43  ;;  %v678_v51 = vsel %vm654_vm12, %v638_v23, %v666_v48  ;;  %v633_v40 = vadd.f32 %v7508_v3, %v632_v55 }
 0x12b   : >> { %vm933_vm10 = vmand %vm7689_vm13, %vm921_vm3  ;;  %v968_v56 = vsel %vm7699_vm11, %v678_v51, 0.0  ;;  %v676_v59 = vsel %vm652_vm2, %v630_v24, %v664_v58 }
 0x12c   : >> { %v679_v54 = vsel %vm655_vm9, %v641_v43, %v667_v60  ;;  %vm10138_vm5 = vmmov %vm10122_vm1  ;;  %v966_v50 = vsel %vm7716_vm6, %v676_v59, 0.0  ;;  %vm653_vm15 = vcmp.ge.f32.partialorder %v633_v40, 0.0  ;;  %v665_v62 = vmul.f32 0.2, %v633_v40 }
 0x12d   : >> { %5157 = vst.msk [vmem:[%s7631_s11 + $0x68] sm:$0xff] %vm10138_vm5, %v968_v56  ;;  %v969_v0 = vsel %vm933_vm10, %v679_v54, 0.0  ;;  %vm931_vm3 = vmand %vm7704_vm0, %vm919_vm7  ;;  %466 = sbr.rel (!%p464_p4) target bundleno = 75 (0x4b), region = 153 }
 0x12e   : >> { %vm10139_vm13 = vmmov %vm10122_vm1  ;;  %v677_v3 = vsel %vm653_vm15, %v633_v40, %v665_v62 }
 0x12f   : >> { %5155 = vst.msk [vmem:[%s7631_s11 + $0x58] sm:$0xff] %vm10139_vm13, %v966_v50  ;;  %vm10140_vm14 = vmmov %vm10122_vm1  ;;  %v967_v63 = vsel %vm931_vm3, %v677_v3, 0.0 }
 0x130   : >> { %5158 = vst.msk [vmem:[%s7631_s11 + $0x70] sm:$0xff] %vm10140_vm14, %v969_v0  ;;  %vm10141_vm11 = vmmov %vm10122_vm1 }
 0x131   : >> { %5156 = vst.msk [vmem:[%s7631_s11 + $0x60] sm:$0xff] %vm10141_vm11, %v967_v63 }
 0x132 LB: >> { %v6628_v1 = vld [vmem:[%s9998_s3 + $0xf8] sm:$0xff]   ;;  %s7760_s18 = smul.u32 96, %s6818_s12  ;;  %v6631_v57 = vld [vmem:[%s9998_s3 + $0xf0] sm:$0xff]   ;;  %s6830_s24 = smov 32   ;;  %v6635_v55 = vld [vmem:[%s9998_s3 + $0xe8] sm:$0xff]   ;;  %vm1289_vm7 = vcmask 785408   ;;  %s6818_s12 = sphi %s7748_s12, %s989_s12  }
 0x133   : >> { %v6629_v6 = vld [vmem:[%s9998_s3 + $0xb8] sm:$0xff]   ;;  %5928 = vmatprep.subr.bf16.mxu0 %v6628_v1  ;;  %s6831_s25 = smov 64   ;;  %s6832_s26 = smov 96   ;;  %v6633_v44 = vld [vmem:[%s9998_s3 + $0xb0] sm:$0xff]   ;;  %v6637_v60 = vld [vmem:[%s9998_s3 + $0xa8] sm:$0xff]   ;;  %vm10142_vm0 = vcmask 261120  }
 0x134   : >> { %5929 = vmatpush3.bf16.msra.mxu0 %v6629_v6  ;;  %v6630_v28 = vld [vmem:[%s9998_s3 + $0x78] sm:$0xff]   ;;  %s7769_s23 = scalar_lea.vmem [#allocation2], %s7760_s18  ;;  %v6634_v53 = vld [vmem:[%s9998_s3 + $0x70] sm:$0xff]   ;;  %v6638_v56 = vld [vmem:[%s9998_s3 + $0x68] sm:$0xff]   ;;  %vm10144_vm4 = vcmask 523264   ;;  %s989_s12 = sadd.s32 1, %s6818_s12  }
 0x135   : >> { %5980 = vmatprep.subr.bf16.mxu1 %v6630_v28  ;;  %5930 = vmatprep.subr.bf16.mxu0 %v6631_v57  ;;  %v6632_v43 = vld [vmem:[%s9998_s3 + $0x38] sm:$0xff]   ;;  %v6636_v58 = vld [vmem:[%s9998_s3 + $0x30] sm:$0xff]   ;;  %v6639_v54 = vld [vmem:[%s9998_s3 + $0xe0] sm:$0xff]   ;;  %p986_p5 = scmp.ge.s32.totalorder %s989_s12, 3  }
 0x136   : >> { %5981 = vmatpush3.bf16.msra.mxu1 %v6632_v43  ;;  %v6640_v50 = vld [vmem:[%s9998_s3 + $0x28] sm:$0xff]   ;;  %v6641_v0 = vld [vmem:[%s9998_s3 + $0xa0] sm:$0xff]   ;;  %v6643_v6 = vld [vmem:[%s9998_s3 + $0xd8] sm:$0xff]  }
 0x137   : >> { %5982 = vmatprep.subr.bf16.mxu1 %v6634_v53  ;;  %v6642_v63 = vld [vmem:[%s9998_s3 + $0x60] sm:$0xff]   ;;  %vm10143_vm12 = vmmov %vm10142_vm0 }
 0x138   : >> { %v5219_v9 = vld [vmem:[%s7769_s23 + $0x19] sm:$0xff]  ;;  %v5220_v33 = vld [vmem:[%s7769_s23 + $0x21] sm:$0xff]  ;;  %v5172_v2 = vld [vmem:[%s7769_s23 + $0xe] sm:$0xff]  ;;  %5931 = vmatpush3.bf16.msra.mxu0 %v6633_v44 }
 0x139   : >> { %v5171_v25 = vld [vmem:[%s7769_s23 + $0x6] sm:$0xff]  ;;  %v1105_v61 = vpack.c.bf16 %v5220_v33, %v5219_v9  ;;  %v5256_v8 = vld [vmem:[%s7769_s23 + $0x33] sm:$0xff]  ;;  %v5257_v38 = vld [vmem:[%s7769_s23 + $0x3b] sm:$0xff]  ;;  %5932 = vmatprep.subr.bf16.mxu0 %v6635_v55 }
 0x13a   : >> { %v5255_v13 = vld [vmem:[%s7769_s23 + $0x2b] sm:$0xff]  ;;  %v1025_v36 = vpack.c.bf16 %v5172_v2, %v5171_v25  ;;  %v5195_v18 = vld [vmem:[%s7769_s23 + $0x17] sm:$0xff]  ;;  %v5196_v41 = vld [vmem:[%s7769_s23 + $0x1f] sm:$0xff]  ;;  %5983 = vmatpush3.bf16.msra.mxu1 %v6636_v58 }
 0x13b   : >> { %v5231_v5 = vld [vmem:[%s7769_s23 + $0x29] sm:$0xff]  ;;  %v5232_v4 = vld [vmem:[%s7769_s23 + $0x31] sm:$0xff]  ;;  %1211 = vrot.lane.b32.xlu0 %v1105_v61, %s6830_s24  ;;  %v7780_v7 = vpack.c.bf16 %v5256_v8, %v5255_v13  ;;  %v1065_v45 = vpack.c.bf16 %v5196_v41, %v5195_v18  ;;  %v5174_v20 = vld [vmem:[%s7769_s23 + $0x1e] sm:$0xff]  ;;  %5984 = vmatprep.subr.bf16.mxu1 %v6638_v56 }
 0x13c   : >> { %1157 = vrot.lane.b32.xlu1 %v1025_v36, %s6830_s24  ;;  %v1125_v10 = vpack.c.bf16 %v5232_v4, %v5231_v5  ;;  %v5183_v11 = vld [vmem:[%s7769_s23 + $0x7] sm:$0xff]  ;;  %v5184_v32 = vld [vmem:[%s7769_s23 + $0xf] sm:$0xff]  ;;  %v5233_v27 = vld [vmem:[%s7769_s23 + $0x39] sm:$0xff]  ;;  %5933 = vmatpush3.bf16.msra.mxu0 %v6637_v60 }
 0x13d   : >> { %v1045_v12 = vpack.c.bf16 %v5184_v32, %v5183_v11  ;;  %v5243_v42 = vld [vmem:[%s7769_s23 + $0x2a] sm:$0xff]  ;;  %v5244_v47 = vld [vmem:[%s7769_s23 + $0x32] sm:$0xff]  ;;  %v5234_v34 = vld [vmem:[%s7769_s23 + $0x41] sm:$0xff]  ;;  %5934 = vmatprep.subr.bf16.mxu0 %v6639_v54 }
 0x13e   : >> { %v1145_v16 = vpack.c.bf16 %v5244_v47, %v5243_v42  ;;  %v5258_v23 = vld [vmem:[%s7769_s23 + $0x43] sm:$0xff]  ;;  %v5173_v24 = vld [vmem:[%s7769_s23 + $0x16] sm:$0xff]  ;;  %v1126_v22 = vpack.c.bf16 %v5234_v34, %v5233_v27  ;;  %v5259_v62 = vld [vmem:[%s7769_s23 + $0x4b] sm:$0xff]  ;;  %5985 = vmatpush3.bf16.msra.mxu1 %v6640_v50 }
 0x13f   : >> { %1414 = vrot.lane.b32.xlu0 %v7780_v7, %s6830_s24  ;;  %v7803_v31 = vpack.c.bf16 %v5258_v23, %v5257_v38  ;;  %v1026_v46 = vpack.c.bf16 %v5174_v20, %v5173_v24  ;;  %v5245_v48 = vld [vmem:[%s7769_s23 + $0x3a] sm:$0xff]  ;;  %v5246_v17 = vld [vmem:[%s7769_s23 + $0x42] sm:$0xff]  ;;  %v5198_v40 = vld [vmem:[%s7769_s23 + $0x2f] sm:$0xff]  ;;  %5986 = vmatprep.subr.bf16.mxu1 %v6642_v63 }
 0x140   : >> { %1229 = vrot.lane.b32.xlu1 %v1125_v10, %s6831_s25  ;;  %v5197_v51 = vld [vmem:[%s7769_s23 + $0x27] sm:$0xff]  ;;  %v1146_v59 = vpack.c.bf16 %v5246_v17, %v5245_v48  ;;  %v5260_v3 = vld [vmem:[%s7769_s23 + $0x53] sm:$0xff]  ;;  %5935 = vmatpush3.bf16.msra.mxu0 %v6641_v0  ;;  %v5200_v38 = vld [vmem:[%s7769_s23 + $0x3f] sm:$0xff] }
 0x141   : >> { %v1066_v1 = vpack.c.bf16 %v5198_v40, %v5197_v51  ;;  %v6644_v28 = vld [vmem:[%s9998_s3 + $0x20] sm:$0xff]   ;;  %5936 = vmatprep.subr.bf16.mxu0 %v6643_v6  ;;  %v6645_v9 = vld [vmem:[%s9998_s3 + $0x98] sm:$0xff]   ;;  %v5176_v33 = vld [vmem:[%s7769_s23 + $0x2e] sm:$0xff]  ;;  %v7871_v2 = vpack.c.bf16 %v5260_v3, %v5259_v62 }
 0x142   : >> { %v5175_v57 = vld [vmem:[%s7769_s23 + $0x26] sm:$0xff]  ;;  %v5236_v61 = vld [vmem:[%s7769_s23 + $0x51] sm:$0xff]  ;;  %5987 = vmatpush3.bf16.msra.mxu1 %v6644_v28  ;;  %v5261_v43 = vld [vmem:[%s7769_s23 + $0x5b] sm:$0xff] }
 0x143   : >> { %1426 = vrot.lane.b32.xlu0 %v7780_v7, %s6831_s25  ;;  %v5235_v25 = vld [vmem:[%s7769_s23 + $0x49] sm:$0xff]  ;;  %v6646_v13 = vld [vmem:[%s9998_s3 + $0x58] sm:$0xff]   ;;  %v1027_v5 = vpack.c.bf16 %v5176_v33, %v5175_v57  ;;  %v6655_v41 = vld [vmem:[%s9998_s3 + $0xc0] sm:$0xff]  }
 0x144   : >> { %1175 = vrot.lane.b32.xlu1 %v1045_v12, %s6831_s25  ;;  %5937 = vmatpush3.bf16.msra.mxu0 %v6645_v9  ;;  %v6647_v8 = vld [vmem:[%s9998_s3 + $0xd0] sm:$0xff]   ;;  %v6648_v36 = vld [vmem:[%s9998_s3 + $0x18] sm:$0xff]   ;;  %v6651_v32 = vld [vmem:[%s9998_s3 + $0xc8] sm:$0xff]  }
 0x145   : >> { %5988 = vmatprep.subr.bf16.mxu1 %v6646_v13  ;;  %5938 = vmatprep.subr.bf16.mxu0 %v6647_v8  ;;  %v6649_v4 = vld [vmem:[%s9998_s3 + $0x90] sm:$0xff]   ;;  %v6654_v18 = vld [vmem:[%s9998_s3 + $0x48] sm:$0xff]   ;;  %v6657_v20 = vld [vmem:[%s9998_s3 + $0x80] sm:$0xff]  }
 0x146   : >> { %5989 = vmatpush3.bf16.msra.mxu1 %v6648_v36  ;;  %v6650_v11 = vld [vmem:[%s9998_s3 + $0x50] sm:$0xff]   ;;  %v6656_v23 = vld [vmem:[%s9998_s3 + $0x8] sm:$0xff]   ;;  %v6659_v27 = vld [vmem:[%s9998_s3] sm:$0xff]  }
 0x147   : >> { %1247 = vrot.lane.b32.xlu0 %v1145_v16, %s6832_s26  ;;  %v5247_v12 = vld [vmem:[%s7769_s23 + $0x4a] sm:$0xff]  ;;  %v5248_v42 = vld [vmem:[%s7769_s23 + $0x52] sm:$0xff]  ;;  %5990 = vmatprep.subr.bf16.mxu1 %v6650_v11  ;;  %v5238_v58 = vld [vmem:[%s7769_s23 + $0x61] sm:$0xff] }
 0x148   : >> { %1438 = vrot.lane.b32.xlu1 %v7780_v7, %s6832_s26  ;;  %5939 = vmatpush3.bf16.msra.mxu0 %v6649_v4  ;;  %v6652_v47 = vld [vmem:[%s9998_s3 + $0x10] sm:$0xff]   ;;  %v6653_v16 = vld [vmem:[%s9998_s3 + $0x88] sm:$0xff]   ;;  %v1147_v24 = vpack.c.bf16 %v5248_v42, %v5247_v12  ;;  %v5237_v55 = vld [vmem:[%s7769_s23 + $0x59] sm:$0xff] }
 0x149   : >> { %5940 = vmatprep.subr.bf16.mxu0 %v6651_v32  ;;  %v5262_v44 = vld [vmem:[%s7769_s23 + $0x63] sm:$0xff]  ;;  %v5177_v53 = vld [vmem:[%s7769_s23 + $0x36] sm:$0xff]  ;;  %v1128_v60 = vpack.c.bf16 %v5238_v58, %v5237_v55  ;;  %v5263_v0 = vld [vmem:[%s7769_s23 + $0x6b] sm:$0xff] }
 0x14a   : >> { %5991 = vmatpush3.bf16.msra.mxu1 %v6652_v47  ;;  %v7935_v48 = vpack.c.bf16 %v5262_v44, %v5261_v43  ;;  %v5249_v51 = vld [vmem:[%s7769_s23 + $0x5a] sm:$0xff]  ;;  %v5250_v40 = vld [vmem:[%s7769_s23 + $0x62] sm:$0xff]  ;;  %v5202_v54 = vld [vmem:[%s7769_s23 + $0x4f] sm:$0xff] }
 0x14b   : >> { %1193 = vrot.lane.b32.xlu0 %v1065_v45, %s6832_s26  ;;  %5992 = vmatprep.subr.bf16.mxu1 %v6654_v18  ;;  %v1148_v56 = vpack.c.bf16 %v5250_v40, %v5249_v51  ;;  %v5264_v62 = vld [vmem:[%s7769_s23 + $0x73] sm:$0xff]  ;;  %v5179_v63 = vld [vmem:[%s7769_s23 + $0x46] sm:$0xff]  ;;  %v5182_v11 = vld [vmem:[%s7769_s23 + $0x5e] sm:$0xff] }
 0x14c   : >> { %1213 = vrot.lane.b32.xlu1 %v1125_v10, %s6830_s24  ;;  %v1127_v10 = vpack.c.bf16 %v5236_v61, %v5235_v25  ;;  %5941 = vmatpush3.bf16.msra.mxu0 %v6653_v16  ;;  %v7957_v3 = vpack.c.bf16 %v5264_v62, %v5263_v0  ;;  %v5239_v6 = vld [vmem:[%s7769_s23 + $0x69] sm:$0xff]  ;;  %v5240_v28 = vld [vmem:[%s7769_s23 + $0x71] sm:$0xff]  ;;  %v5204_v8 = vld [vmem:[%s7769_s23 + $0x5f] sm:$0xff] }
 0x14d   : >> { %5942 = vmatprep.subr.bf16.mxu0 %v6655_v41  ;;  %v1129_v9 = vpack.c.bf16 %v5240_v28, %v5239_v6  ;;  %v5251_v33 = vld [vmem:[%s7769_s23 + $0x6a] sm:$0xff]  ;;  %v5252_v25 = vld [vmem:[%s7769_s23 + $0x72] sm:$0xff]  ;;  %v5242_v47 = vld [vmem:[%s7769_s23 + $0x81] sm:$0xff] }
 0x14e   : >> { %5993 = vmatpush3.bf16.msra.mxu1 %v6656_v23  ;;  %v1149_v61 = vpack.c.bf16 %v5252_v25, %v5251_v33  ;;  %v5203_v13 = vld [vmem:[%s7769_s23 + $0x57] sm:$0xff]  ;;  %v5266_v4 = vld [vmem:[%s7769_s23 + $0x83] sm:$0xff]  ;;  %v5206_v23 = vld [vmem:[%s7769_s23 + $0x6f] sm:$0xff] }
 0x14f   : >> { %1416 = vrot.lane.b32.xlu0 %v7803_v31, %s6830_s24  ;;  %v1069_v36 = vpack.c.bf16 %v5204_v8, %v5203_v13  ;;  %v5241_v42 = vld [vmem:[%s7769_s23 + $0x79] sm:$0xff]  ;;  %v5254_v41 = vld [vmem:[%s7769_s23 + $0x82] sm:$0xff]  ;;  %vm10145_vm6 = vmmov %vm10144_vm4 }
 0x150   : >> { %1159 = vrot.lane.b32.xlu1 %v1026_v46, %s6830_s24  ;;  %v6658_v46 = vld [vmem:[%s9998_s3 + $0x40] sm:$0xff]   ;;  %5943 = vmatpush3.bf16.msra.mxu0 %v6657_v20  ;;  %v1130_v16 = vpack.c.bf16 %v5242_v47, %v5241_v42  ;;  %vm10146_vm1 = vmmov %vm10142_vm0  ;;  %v5210_v33 = vld [vmem:[%s7769_s23 + $0x30] sm:$0xff] }
 0x151   : >> { %5994 = vmatprep.subr.bf16.mxu1 %v6658_v46  ;;  %v5253_v18 = vld [vmem:[%s7769_s23 + $0x7a] sm:$0xff]  ;;  %vm10147_vm8 = vmmov %vm10144_vm4 }
 0x152   : >> { %5995 = vmatpush3.bf16.msra.mxu1 %v6659_v27  ;;  %v5207_v27 = vld [vmem:[%s7769_s23 + $0x18] sm:$0xff]  ;;  %vm10148_vm2 = vmmov %vm10142_vm0 }
 0x153   : >> { %1231 = vrot.lane.b32.xlu0 %v1126_v22, %s6831_s25  ;;  %v5161_v8 = vld [vmem:[%s7769_s23 + $0x15] sm:$0xff]  ;;  %vm10149_vm9 = vmmov %vm10144_vm4 }
 0x154   : >> { %1428 = vrot.lane.b32.xlu1 %v7803_v31, %s6831_s25  ;;  %vm10150_vm10 = vmmov %vm10142_vm0 }
 0x155   : >> { %vm10151_vm5 = vmmov %vm10142_vm0 }
 0x156   : >> { %vm10152_vm15 = vmmov %vm10144_vm4 }
 0x157   : >> { %1177 = vrot.lane.b32.xlu0 %v1065_v45, %s6831_s25  ;;  %v5199_v45 = vld [vmem:[%s7769_s23 + $0x37] sm:$0xff]  ;;  %vm10153_vm3 = vmmov %vm10144_vm4 }
 0x158   : >> { %1249 = vrot.lane.b32.xlu1 %v1146_v59, %s6832_s26  ;;  %v1067_v34 = vpack.c.bf16 %v5200_v38, %v5199_v45  ;;  %v5201_v59 = vld [vmem:[%s7769_s23 + $0x47] sm:$0xff]  ;;  %v1150_v45 = vpack.c.bf16 %v5254_v41, %v5253_v18  ;;  %vm10154_vm13 = vmmov %vm10142_vm0 }
 0x159   : >> { %v1068_v50 = vpack.c.bf16 %v5202_v54, %v5201_v59  ;;  %v5205_v38 = vld [vmem:[%s7769_s23 + $0x67] sm:$0xff]  ;;  %vm10155_vm14 = vmmov %vm10142_vm0 }
 0x15a   : >> { %vm10156_vm11 = vmmov %vm10153_vm3 }
 0x15b   : >> { %1440 = vrot.lane.b32.xlu0 %v7803_v31, %s6832_s26 }
 0x15c   : >> { %1195 = vrot.lane.b32.xlu1 %v1066_v1, %s6832_s26 }
 0x15f   : >> { %1215 = vrot.lane.b32.xlu0 %v1126_v22, %s6830_s24  ;;  %v5178_v22 = vld [vmem:[%s7769_s23 + $0x3e] sm:$0xff] }
 0x160   : >> { %1418 = vrot.lane.b32.xlu1 %v7871_v2, %s6830_s24  ;;  %v1028_v17 = vpack.c.bf16 %v5178_v22, %v5177_v53  ;;  %v5159_v22 = vld [vmem:[%s7769_s23 + $0x5] sm:$0xff] }
 0x163   : >> { %1161 = vrot.lane.b32.xlu0 %v1027_v5, %s6830_s24  ;;  %v5265_v5 = vld [vmem:[%s7769_s23 + $0x7b] sm:$0xff] }
 0x164   : >> { %1233 = vrot.lane.b32.xlu1 %v1127_v10, %s6831_s25  ;;  %v7983_v32 = vpack.c.bf16 %v5266_v4, %v5265_v5 }
 0x167   : >> { %1430 = vrot.lane.b32.xlu0 %v7871_v2, %s6831_s25 }
 0x168   : >> { %1179 = vrot.lane.b32.xlu1 %v1066_v1, %s6831_s25  ;;  %v5180_v1 = vld [vmem:[%s7769_s23 + $0x4e] sm:$0xff] }
 0x169   : >> { %v1029_v57 = vpack.c.bf16 %v5180_v1, %v5179_v63 }
 0x16b   : >> { %1251 = vrot.lane.b32.xlu0 %v1147_v24, %s6832_s26  ;;  %v1070_v24 = vpack.c.bf16 %v5206_v23, %v5205_v38 }
 0x16c   : >> { %1442 = vrot.lane.b32.xlu1 %v7871_v2, %s6832_s26 }
 0x16f   : >> { %1197 = vrot.lane.b32.xlu0 %v1067_v34, %s6832_s26 }
 0x170   : >> { %1217 = vrot.lane.b32.xlu1 %v1127_v10, %s6830_s24  ;;  %v5181_v10 = vld [vmem:[%s7769_s23 + $0x56] sm:$0xff] }
 0x171   : >> { %v1030_v12 = vpack.c.bf16 %v5182_v11, %v5181_v10 }
 0x173   : >> { %1420 = vrot.lane.b32.xlu0 %v7935_v48, %s6830_s24 }
 0x174   : >> { %1163 = vrot.lane.b32.xlu1 %v1028_v17, %s6830_s24  ;;  %v5160_v17 = vld [vmem:[%s7769_s23 + $0xd] sm:$0xff] }
 0x175   : >> { %v1005_v51 = vpack.c.bf16 %v5160_v17, %v5159_v22  ;;  %v5163_v22 = vld [vmem:[%s7769_s23 + $0x25] sm:$0xff]  ;;  %v5164_v17 = vld [vmem:[%s7769_s23 + $0x2d] sm:$0xff] }
 0x177   : >> { %1235 = vrot.lane.b32.xlu0 %v1128_v60, %s6831_s25 }
 0x178   : >> { %1432 = vrot.lane.b32.xlu1 %v7935_v48, %s6831_s25 }
 0x17b   : >> { %1181 = vrot.lane.b32.xlu0 %v1067_v34, %s6831_s25  ;;  %v5208_v34 = vld [vmem:[%s7769_s23 + $0x20] sm:$0xff] }
 0x17c   : >> { %1253 = vrot.lane.b32.xlu1 %v1148_v56, %s6832_s26  ;;  %v1085_v53 = vpack.c.bf16 %v5208_v34, %v5207_v27  ;;  %v5211_v27 = vld [vmem:[%s7769_s23 + $0x38] sm:$0xff]  ;;  %v5212_v34 = vld [vmem:[%s7769_s23 + $0x40] sm:$0xff] }
 0x17f   : >> { %1444 = vrot.lane.b32.xlu0 %v7935_v48, %s6832_s26 }
 0x180   : >> { %1199 = vrot.lane.b32.xlu1 %v1068_v50, %s6832_s26 }
 0x183   : >> { %1219 = vrot.lane.b32.xlu0 %v1128_v60, %s6830_s24 }
 0x184   : >> { %1422 = vrot.lane.b32.xlu1 %v7957_v3, %s6830_s24 }
 0x187   : >> { %1165 = vrot.lane.b32.xlu0 %v1029_v57, %s6830_s24 }
 0x188   : >> { %1237 = vrot.lane.b32.xlu1 %v1129_v9, %s6831_s25 }
 0x18b   : >> { %1434 = vrot.lane.b32.xlu0 %v7957_v3, %s6831_s25 }
 0x18c   : >> { %1183 = vrot.lane.b32.xlu1 %v1068_v50, %s6831_s25 }
 0x18f   : >> { %1255 = vrot.lane.b32.xlu0 %v1149_v61, %s6832_s26 }
 0x190   : >> { %1446 = vrot.lane.b32.xlu1 %v7957_v3, %s6832_s26 }
 0x193   : >> { %1201 = vrot.lane.b32.xlu0 %v1069_v36, %s6832_s26 }
 0x194   : >> { %1221 = vrot.lane.b32.xlu1 %v1129_v9, %s6830_s24  ;;  %v5209_v9 = vld [vmem:[%s7769_s23 + $0x28] sm:$0xff] }
 0x195   : >> { %v1086_v61 = vpack.c.bf16 %v5210_v33, %v5209_v9  ;;  %v5214_v9 = vld [vmem:[%s7769_s23 + $0x50] sm:$0xff] }
 0x197   : >> { %1424 = vrot.lane.b32.xlu0 %v7983_v32, %s6830_s24 }
 0x198   : >> { %1167 = vrot.lane.b32.xlu1 %v1030_v12, %s6830_s24 }
 0x19b   : >> { %1239 = vrot.lane.b32.xlu0 %v1130_v16, %s6831_s25 }
 0x19c   : >> { %1436 = vrot.lane.b32.xlu1 %v7983_v32, %s6831_s25 }
 0x19f   : >> { %1185 = vrot.lane.b32.xlu0 %v1069_v36, %s6831_s25  ;;  %v5162_v36 = vld [vmem:[%s7769_s23 + $0x1d] sm:$0xff]  ;;  %s8184_s25 = scalar_lea.vmem [#allocation3], %s7760_s18 }
 0x1a0   : >> { %1257 = vrot.lane.b32.xlu1 %v1150_v45, %s6832_s26  ;;  %v1006_v10 = vpack.c.bf16 %v5162_v36, %v5161_v8  ;;  %v5166_v8 = vld [vmem:[%s7769_s23 + $0x3d] sm:$0xff] }
 0x1a3   : >> { %1448 = vrot.lane.b32.xlu0 %v7983_v32, %s6832_s26 }
 0x1a4   : >> { %1203 = vrot.lane.b32.xlu1 %v1070_v24, %s6832_s26 }
 0x1ad   : >> { %v1212_v20 = vpop.permute.xlu0 %1211 }
 0x1ae   : >> { %v1158_v46 = vpop.permute.xlu1 %1157  ;;  %v1310_v60 = vsel %vm10142_vm0, %v1085_v53, %v1212_v20  ;;  %v1087_v53 = vpack.c.bf16 %v5212_v34, %v5211_v27  ;;  %vm10157_vm0 = vmmov %vm10153_vm3 }
 0x1af   : >> { %v1261_v63 = vsel %vm10146_vm1, %v1005_v51, %v1158_v46  ;;  %v1007_v51 = vpack.c.bf16 %v5164_v17, %v5163_v22 }
 0x1b1   : >> { %v1415_v43 = vpop.permute.xlu0 %1414 }
 0x1b2   : >> { %v1230_v44 = vpop.permute.xlu1 %1229  ;;  %v1452_v40 = vsel %vm10143_vm12, %v7780_v7, %v1415_v43  ;;  %vm10158_vm12 = vmmov %vm10146_vm1 }
 0x1b3   : >> { %v1327_v56 = vsel %vm10144_vm4, %v1310_v60, %v1230_v44  ;;  %vm10159_vm4 = vmmov %vm10157_vm0 }
 0x1b5   : >> { %v1427_v55 = vpop.permute.xlu0 %1426 }
 0x1b6   : >> { %v1176_v58 = vpop.permute.xlu1 %1175  ;;  %v1469_v54 = vsel %vm10145_vm6, %v1452_v40, %v1427_v55  ;;  %vm10160_vm6 = vmmov %vm10146_vm1 }
 0x1b7   : >> { %v1278_v7 = vsel %vm10147_vm8, %v1261_v63, %v1176_v58  ;;  %vm10161_vm1 = vmmov %vm10157_vm0 }
 0x1b8   : >> { %vm10162_vm8 = vmmov %vm10148_vm2 }
 0x1b9   : >> { %v1248_v59 = vpop.permute.xlu0 %1247 }
 0x1ba   : >> { %v1439_v50 = vpop.permute.xlu1 %1438  ;;  %v1339_v0 = vsel %vm1289_vm7, %v1327_v56, %v1248_v59 }
 0x1bb   : >> { %v1481_v62 = vsel %vm1289_vm7, %v1469_v54, %v1439_v50  ;;  %1836 = vmatprep.mubr.bf16.mxu1 %v1339_v0 }
 0x1bc   : >> { %1659 = vmatprep.mubr.bf16.mxu0 %v1481_v62 }
 0x1bd   : >> { %1660 = vmatmul.mubr.bf16.vlgmr.msra.gmra.mxu0 %v1481_v62  ;;  %v1194_v1 = vpop.permute.xlu0 %1193 }
 0x1be   : >> { %v1214_v6 = vpop.permute.xlu1 %1213  ;;  %v1291_v28 = vsel %vm1289_vm7, %v1278_v7, %v1194_v1 }
 0x1bf   : >> { %1837 = vmatmul.mubr.bf16.vlgmr.msra.gmra.mxu1 %v1291_v28  ;;  %v1313_v4 = vsel %vm10148_vm2, %v1086_v61, %v1214_v6 }
 0x1c1   : >> { %v1417_v57 = vpop.permute.xlu0 %1416 }
 0x1c2   : >> { %v1160_v25 = vpop.permute.xlu1 %1159  ;;  %v1455_v16 = vsel %vm10150_vm10, %v7803_v31, %v1417_v57  ;;  %v5213_v57 = vld [vmem:[%s7769_s23 + $0x48] sm:$0xff]  ;;  %vm10164_vm10 = vmmov %vm10157_vm0 }
 0x1c3   : >> { %v1264_v18 = vsel %vm10151_vm5, %v1006_v10, %v1160_v25  ;;  %v1088_v25 = vpack.c.bf16 %v5214_v9, %v5213_v57  ;;  %vm10165_vm5 = vmmov %vm10148_vm2 }
 0x1c5   : >> { %v1232_v13 = vpop.permute.xlu0 %1231 }
 0x1c6   : >> { %v1429_v5 = vpop.permute.xlu1 %1428  ;;  %v1329_v12 = vsel %vm10149_vm9, %v1313_v4, %v1232_v13  ;;  %v5165_v13 = vld [vmem:[%s7769_s23 + $0x35] sm:$0xff]  ;;  %vm10163_vm9 = vmmov %vm10157_vm0 }
 0x1c7   : >> { %v1471_v41 = vsel %vm10152_vm15, %v1455_v16, %v1429_v5  ;;  %v1008_v4 = vpack.c.bf16 %v5166_v8, %v5165_v13  ;;  %vm10166_vm15 = vmmov %vm10148_vm2 }
 0x1c9   : >> { %v1178_v11 = vpop.permute.xlu0 %1177 }
 0x1ca   : >> { %v1250_v42 = vpop.permute.xlu1 %1249  ;;  %v1280_v38 = vsel %vm10153_vm3, %v1264_v18, %v1178_v11  ;;  %vm10167_vm3 = vmmov %vm10157_vm0 }
 0x1cb   : >> { %v1342_v47 = vsel %vm1289_vm7, %v1329_v12, %v1250_v42 }
 0x1cc   : >> { %1844 = vmatprep.mubr.bf16.mxu1 %v1342_v47 }
 0x1cd   : >> { %v1441_v45 = vpop.permute.xlu0 %1440 }
 0x1ce   : >> { %v1196_v23 = vpop.permute.xlu1 %1195  ;;  %v1484_v24 = vsel %vm1289_vm7, %v1471_v41, %v1441_v45 }
 0x1cf   : >> { %1667 = vmatprep.mubr.bf16.mxu0 %v1484_v24  ;;  %v1294_v20 = vsel %vm1289_vm7, %v1280_v38, %v1196_v23 }
 0x1d0   : >> { %1845 = vmatmul.mubr.bf16.gmra.mxu1 %v1294_v20  ;;  %1668 = vmatmul.mubr.bf16.gmra.mxu0 %v1484_v24 }
 0x1d1   : >> { %v1216_v46 = vpop.permute.xlu0 %1215 }
 0x1d2   : >> { %v1419_v31 = vpop.permute.xlu1 %1418  ;;  %v1316_v60 = vsel %vm10154_vm13, %v1087_v53, %v1216_v46  ;;  %v5215_v46 = vld [vmem:[%s7769_s23 + $0x58] sm:$0xff]  ;;  %v5168_v53 = vld [vmem:[%s7769_s23 + $0x4d] sm:$0xff]  ;;  %vm10168_vm13 = vmmov %vm10157_vm0 }
 0x1d3   : >> { %v1458_v40 = vsel %vm10155_vm14, %v7871_v2, %v1419_v31  ;;  %v5216_v31 = vld [vmem:[%s7769_s23 + $0x60] sm:$0xff]  ;;  %vm10169_vm14 = vmmov %vm10148_vm2 }
 0x1d5   : >> { %v1162_v43 = vpop.permute.xlu0 %1161 }
 0x1d6   : >> { %v1234_v44 = vpop.permute.xlu1 %1233  ;;  %v1267_v63 = vsel %vm10158_vm12, %v1007_v51, %v1162_v43  ;;  %v1089_v43 = vpack.c.bf16 %v5216_v31, %v5215_v46  ;;  %vm10172_vm12 = vmmov %vm10161_vm1 }
 0x1d7   : >> { %v1331_v56 = vsel %vm10156_vm11, %v1316_v60, %v1234_v44  ;;  %v5167_v44 = vld [vmem:[%s7769_s23 + $0x45] sm:$0xff]  ;;  %vm10170_vm11 = vmmov %vm10157_vm0 }
 0x1d9   : >> { %v1431_v55 = vpop.permute.xlu0 %1430 }
 0x1da   : >> { %v1180_v58 = vpop.permute.xlu1 %1179  ;;  %v1473_v54 = vsel %vm10157_vm0, %v1458_v40, %v1431_v55  ;;  %vm10171_vm0 = vmmov %vm10148_vm2 }
 0x1db   : >> { %v1282_v2 = vsel %vm10159_vm4, %v1267_v63, %v1180_v58  ;;  %v1009_v58 = vpack.c.bf16 %v5168_v53, %v5167_v44  ;;  %vm10173_vm4 = vmmov %vm10171_vm0 }
 0x1dd   : >> { %v1252_v59 = vpop.permute.xlu0 %1251 }
 0x1de   : >> { %v1443_v50 = vpop.permute.xlu1 %1442  ;;  %v1345_v0 = vsel %vm1289_vm7, %v1331_v56, %v1252_v59 }
 0x1df   : >> { %v1487_v62 = vsel %vm1289_vm7, %v1473_v54, %v1443_v50  ;;  %1852 = vmatprep.mubr.bf16.mxu1 %v1345_v0 }
 0x1e0   : >> { %1675 = vmatprep.mubr.bf16.mxu0 %v1487_v62 }
 0x1e1   : >> { %1676 = vmatmul.mubr.bf16.gmra.mxu0 %v1487_v62  ;;  %v1198_v7 = vpop.permute.xlu0 %1197 }
 0x1e2   : >> { %v1218_v1 = vpop.permute.xlu1 %1217  ;;  %v1297_v6 = vsel %vm1289_vm7, %v1282_v2, %v1198_v7 }
 0x1e3   : >> { %1853 = vmatmul.mubr.bf16.gmra.mxu1 %v1297_v6  ;;  %v1319_v5 = vsel %vm10160_vm6, %v1088_v25, %v1218_v1  ;;  %v5217_v1 = vld [vmem:[%s7769_s23 + $0x68] sm:$0xff]  ;;  %v5218_v6 = vld [vmem:[%s7769_s23 + $0x70] sm:$0xff]  ;;  %v5170_v25 = vld [vmem:[%s7769_s23 + $0x5d] sm:$0xff] }
 0x1e4   : >> { %v1090_v57 = vpack.c.bf16 %v5218_v6, %v5217_v1  ;;  %vm10174_vm6 = vmmov %vm10171_vm0 }
 0x1e5   : >> { %v1421_v28 = vpop.permute.xlu0 %1420 }
 0x1e6   : >> { %v1164_v33 = vpop.permute.xlu1 %1163  ;;  %v1461_v47 = vsel %vm10162_vm8, %v7935_v48, %v1421_v28  ;;  %vm10175_vm8 = vmmov %vm10161_vm1 }
 0x1e7   : >> { %v1270_v16 = vsel %vm10148_vm2, %v1008_v4, %v1164_v33  ;;  %v5169_v33 = vld [vmem:[%s7769_s23 + $0x55] sm:$0xff] }
 0x1e8   : >> { %v1010_v8 = vpack.c.bf16 %v5170_v25, %v5169_v33 }
 0x1e9   : >> { %v1236_v61 = vpop.permute.xlu0 %1235 }
 0x1ea   : >> { %v1433_v36 = vpop.permute.xlu1 %1432  ;;  %v1333_v11 = vsel %vm10161_vm1, %v1319_v5, %v1236_v61 }
 0x1eb   : >> { %v1475_v18 = vsel %vm10163_vm9, %v1461_v47, %v1433_v36 }
 0x1ed   : >> { %v1182_v10 = vpop.permute.xlu0 %1181 }
 0x1ee   : >> { %v1254_v12 = vpop.permute.xlu1 %1253  ;;  %v1284_v45 = vsel %vm10164_vm10, %v1270_v16, %v1182_v10 }
 0x1ef   : >> { %v1348_v42 = vsel %vm1289_vm7, %v1333_v11, %v1254_v12 }
 0x1f0   : >> { %1860 = vmatprep.mubr.bf16.mxu1 %v1348_v42 }
 0x1f1   : >> { %v1445_v41 = vpop.permute.xlu0 %1444 }
 0x1f2   : >> { %v1200_v38 = vpop.permute.xlu1 %1199  ;;  %v1490_v23 = vsel %vm1289_vm7, %v1475_v18, %v1445_v41 }
 0x1f3   : >> { %1683 = vmatprep.mubr.bf16.mxu0 %v1490_v23  ;;  %v1300_v24 = vsel %vm1289_vm7, %v1284_v45, %v1200_v38  ;;  %v8088_v38 = vstv %s7760_s18  ;;  %s8367_s18 = smov (%p986_p5), 0  }
 0x1f4   : >> { %1861 = vmatmul.mubr.bf16.gmra.mxu1 %v1300_v24  ;;  %1684 = vmatmul.mubr.bf16.gmra.mxu0 %v1490_v23  ;;  %v8096_v23 = vadd.s32 %v8088_v38, %v7181_v30  ;;  %v8110_v44 = vadd.s32 %v8088_v38, %v7155_v19 }
 0x1f5   : >> { %v1220_v20 = vpop.permute.xlu0 %1219 }
 0x1f6   : >> { %v1423_v48 = vpop.permute.xlu1 %1422  ;;  %v1322_v55 = vsel %vm10165_vm5, %v1089_v43, %v1220_v20  ;;  %v1978_v20 = vsub.s32 0, %v8096_v23  ;;  %vm1977_vm2 = vcmp.lt.s32.totalorder %v8096_v23, 0 }
 0x1f7   : >> { %v1464_v60 = vsel %vm10166_vm15, %v7957_v3, %v1423_v48 }
 0x1f8   : >> { %v5333_v46 = vmin.u32 %v1978_v20, %v8096_v23  ;;  %v8158_v20 = vld [vmem:[%s9999_s4] ss:$0 sm:$0xff] }
 0x1f9   : >> { %v1166_v27 = vpop.permute.xlu0 %1165 }
 0x1fa   : >> { %v1238_v34 = vpop.permute.xlu1 %1237  ;;  %v1273_v0 = vsel %vm10169_vm14, %v1009_v58, %v1166_v27 }
 0x1fb   : >> { %v1335_v51 = vsel %vm10167_vm3, %v1322_v55, %v1238_v34  ;;  %v8105_v34 = vmul.u32.u64.low 3817748708, %v5333_v46  ;;  %v8106_v43 = vmul.u32.u64.high 3817748708, %v5333_v46, %v8105_v34 }
 0x1fd   : >> { %v1435_v22 = vpop.permute.xlu0 %1434  ;;  %v1983_v55 = vshrl.u32 %v8106_v43, 4 }
 0x1fe   : >> { %v1184_v17 = vpop.permute.xlu1 %1183  ;;  %v1477_v56 = vsel %vm10168_vm13, %v1464_v60, %v1435_v22  ;;  %v8115_v22 = vadd.s32 %v8088_v38, %v7178_v29 }
 0x1ff   : >> { %v1286_v3 = vsel %vm10170_vm11, %v1273_v0, %v1184_v17  ;;  %v1989_v17 = vsub.s32 0, %v8110_v44 }
 0x200   : >> { %v2000_v60 = vsub.s32 0, %v8115_v22 }
 0x201   : >> { %v1256_v40 = vpop.permute.xlu0 %1255 }
 0x202   : >> { %v1447_v59 = vpop.permute.xlu1 %1446  ;;  %v1351_v54 = vsel %vm1289_vm7, %v1335_v51, %v1256_v40  ;;  %v5334_v51 = vmin.u32 %v1989_v17, %v8110_v44  ;;  %v1984_v40 = vmul.u32 18, %v1983_v55 }
 0x203   : >> { %v1493_v50 = vsel %vm1289_vm7, %v1477_v56, %v1447_v59  ;;  %1868 = vmatprep.mubr.bf16.mxu1 %v1351_v54  ;;  %v5335_v59 = vmin.u32 %v2000_v60, %v8115_v22 }
 0x204   : >> { %1691 = vmatprep.mubr.bf16.mxu0 %v1493_v50  ;;  %v1985_v0 = vsub.s32 %v5333_v46, %v1984_v40 }
 0x205   : >> { %1692 = vmatmul.mubr.bf16.gmra.mxu0 %v1493_v50  ;;  %v1202_v62 = vpop.permute.xlu0 %1201  ;;  %v8122_v54 = vmul.u32.u64.low 3817748708, %v5334_v51  ;;  %v8123_v50 = vmul.u32.u64.high 3817748708, %v5334_v51, %v8122_v54 }
 0x206   : >> { %v1222_v63 = vpop.permute.xlu1 %1221  ;;  %v1303_v2 = vsel %vm1289_vm7, %v1286_v3, %v1202_v62 }
 0x207   : >> { %1869 = vmatmul.mubr.bf16.gmra.mxu1 %v1303_v2  ;;  %v1325_v13 = vsel %vm10171_vm0, %v1090_v57, %v1222_v63  ;;  %v8125_v62 = vmul.u32.u64.low 3817748708, %v5335_v59  ;;  %v8126_v63 = vmul.u32.u64.high 3817748708, %v5335_v59, %v8125_v62  ;;  %v1986_v2 = vsub.s32 0, %v1985_v0 }
 0x208   : >> { %v1994_v6 = vshrl.u32 %v8123_v50, 4  ;;  %vm1988_vm0 = vcmp.lt.s32.totalorder %v8110_v44, 0 }
 0x209   : >> { %v1425_v7 = vpop.permute.xlu0 %1424  ;;  %v1987_v57 = vsel %vm1977_vm2, %v1986_v2, %v1985_v0  ;;  %v2005_v25 = vshrl.u32 %v8126_v63, 4 }
 0x20a   : >> { %v1168_v28 = vpop.permute.xlu1 %1167  ;;  %v1467_v11 = vsel %vm10173_vm4, %v7983_v32, %v1425_v7  ;;  %v8092_v32 = vadd.s32 %v8088_v38, %v7144_v14  ;;  %v8131_v7 = vadd.s32 %v8088_v38, %v7159_v21  ;;  %vm2099_vm15 = vcmp.ne.s32.totalorder %v1987_v57, 0 }
 0x20b   : >> { %v1276_v12 = vsel %vm10174_vm6, %v1010_v8, %v1168_v28  ;;  %v8137_v28 = vadd.s32 %v8088_v38, %v7190_v35  ;;  %vm2111_vm3 = vcmp.lt.s32.totalorder %v1987_v57, 0 }
 0x20c   : >> { %v1967_v24 = vsub.s32 0, %v8092_v32  ;;  %vm8151_vm13 = vmand %vm2111_vm3, %vm2099_vm15  ;;  %vm2170_vm11 = vcmp.lt.s32.totalorder %v8092_v32, 288 }
 0x20d   : >> { %v1240_v9 = vpop.permute.xlu0 %1239 }
 0x20e   : >> { %v1437_v61 = vpop.permute.xlu1 %1436  ;;  %v1337_v5 = vsel %vm10172_vm12, %v1325_v13, %v1240_v9  ;;  %v5332_v48 = vmin.u32 %v1967_v24, %v8092_v32  ;;  %v2011_v9 = vsub.s32 0, %v8131_v7  ;;  %v1995_v13 = vmul.u32 18, %v1994_v6 }
 0x20f   : >> { %v1479_v42 = vsel %vm10161_vm1, %v1467_v11, %v1437_v61  ;;  %vm2171_vm1 = vcmp.lt.s32.totalorder %v8096_v23, 288 }
 0x210   : >> { %v8102_v31 = vmul.u32.u64.low 3817748708, %v5332_v48  ;;  %v8103_v27 = vmul.u32.u64.high 3817748708, %v5332_v48, %v8102_v31  ;;  %v1996_v24 = vsub.s32 %v5334_v51, %v1995_v13 }
 0x211   : >> { %v1186_v36 = vpop.permute.xlu0 %1185 }
 0x212   : >> { %v1258_v4 = vpop.permute.xlu1 %1257  ;;  %v1288_v16 = vsel %vm10175_vm8, %v1276_v12, %v1186_v36  ;;  %v1972_v53 = vshrl.u32 %v8103_v27, 4  ;;  %v1997_v40 = vsub.s32 0, %v1996_v24  ;;  %vm1999_vm8 = vcmp.lt.s32.totalorder %v8115_v22, 0 }
 0x213   : >> { %v1354_v10 = vsel %vm1289_vm7, %v1337_v5, %v1258_v4  ;;  %v2022_v4 = vsub.s32 0, %v8137_v28 }
 0x214   : >> { %1876 = vmatprep.mubr.bf16.mxu1 %v1354_v10  ;;  %v1973_v58 = vmul.u32 18, %v1972_v53  ;;  %v8147_v10 = vmin.u32 %v2011_v9, %v8131_v7  ;;  %v1998_v62 = vsel %vm1988_vm0, %v1997_v40, %v1996_v24 }
 0x215   : >> { %v1449_v47 = vpop.permute.xlu0 %1448  ;;  %v8161_v31 = vmin.u32 %v2022_v4, %v8137_v28 }
 0x216   : >> { %v1204_v18 = vpop.permute.xlu1 %1203  ;;  %v1496_v41 = vsel %vm1289_vm7, %v1479_v42, %v1449_v47  ;;  %v1974_v56 = vsub.s32 %v5332_v48, %v1973_v58  ;;  %v2135_v42 = vadd.s32 18, %v1987_v57  ;;  %v2006_v47 = vmul.u32 18, %v2005_v25 }
 0x217   : >> { %1699 = vmatprep.mubr.bf16.mxu0 %v1496_v41  ;;  %v1306_v45 = vsel %vm1289_vm7, %v1288_v16, %v1204_v18  ;;  %vm1966_vm7 = vcmp.lt.s32.totalorder %v8092_v32, 0  ;;  %v8164_v34 = vmul.u32.u64.low 3817748708, %v8147_v10  ;;  %v8165_v43 = vmul.u32.u64.high 3817748708, %v8147_v10, %v8164_v34 }
 0x218   : >> { %1877 = vmatmul.mubr.bf16.gmra.mxu1 %v1306_v45  ;;  %1700 = vmatmul.mubr.bf16.gmra.mxu0 %v1496_v41  ;;  %v1975_v3 = vsub.s32 0, %v1974_v56  ;;  %v2147_v17 = vsel %vm8151_vm13, %v2135_v42, %v1987_v57  ;;  %v2007_v55 = vsub.s32 %v5335_v59, %v2006_v47  ;;  %v8179_v59 = vadd.s32 %v8088_v38, %v7147_v15 }
 0x219   : >> { %vm2159_vm6 = vcmp.lt.s32.totalorder %v2147_v17, 16 }
 0x21a   : >> { %v1976_v1 = vsel %vm1966_vm7, %v1975_v3, %v1974_v56  ;;  %v8173_v56 = vmul.u32.u64.low 3817748708, %v8161_v31  ;;  %v8174_v54 = vmul.u32.u64.high 3817748708, %v8161_v31, %v8173_v56  ;;  %v2008_v63 = vsub.s32 0, %v2007_v55 }
 0x21b   : >> { %vm2098_vm9 = vcmp.ne.s32.totalorder %v1976_v1, 0  ;;  %vm2110_vm10 = vcmp.lt.s32.totalorder %v1976_v1, 0  ;;  %v2134_v61 = vadd.s32 18, %v1976_v1  ;;  %vm10180_vm7 = vcmask 523264  }
 0x21c   : >> { %vm8141_vm5 = vmand %vm2110_vm10, %vm2098_vm9  ;;  %vm2100_vm10 = vcmp.ne.s32.totalorder %v1998_v62, 0  ;;  %v2033_v6 = vsub.s32 0, %v8179_v59  ;;  %v2009_v9 = vsel %vm1999_vm8, %v2008_v63, %v2007_v55  ;;  %v2027_v4 = vshrl.u32 %v8174_v54, 4 }
 0x21d   : >> { %v2146_v41 = vsel %vm8141_vm5, %v2134_v61, %v1976_v1  ;;  %vm2183_vm9 = vmand %vm2159_vm6, %vm2171_vm1  ;;  %v2016_v1 = vshrl.u32 %v8165_v43, 4  ;;  %vm2112_vm5 = vcmp.lt.s32.totalorder %v1998_v62, 0  ;;  %v2136_v61 = vadd.s32 18, %v1998_v62 }
 0x21e   : >> { %vm2158_vm14 = vcmp.lt.s32.totalorder %v2146_v41, 16  ;;  %vm10181_vm15 = vmmov %vm10180_vm7  ;;  %vm2101_vm13 = vcmp.ne.s32.totalorder %v2009_v9, 0  ;;  %v2137_v45 = vadd.s32 18, %v2009_v9  ;;  %v2028_v34 = vmul.u32 18, %v2027_v4 }
 0x21f   : >> { %vm2182_vm4 = vmand %vm2158_vm14, %vm2170_vm11  ;;  %v2017_v5 = vmul.u32 18, %v2016_v1  ;;  %vm2113_vm14 = vcmp.lt.s32.totalorder %v2009_v9, 0  ;;  %vm2010_vm1 = vcmp.lt.s32.totalorder %v8131_v7, 0  ;;  %v8233_v1 = vadd.s32 %v8088_v38, %v7202_v39 }
 0x220   : >> { %vm8196_vm3 = vmand %vm2112_vm5, %vm2100_vm10  ;;  %vm2021_vm5 = vcmp.lt.s32.totalorder %v8137_v28, 0 }
 0x221   : >> { %v2148_v41 = vsel %vm8196_vm3, %v2136_v61, %v1998_v62  ;;  %vm8207_vm11 = vmand %vm2113_vm14, %vm2101_vm13 }
 0x222   : >> { %vm2160_vm0 = vcmp.lt.s32.totalorder %v2148_v41, 16 }
 0x27d   : >> { %v5944_v33 = vpop.f32.mrf.mxu0 }
 0x27f   : >> { %v5945_v8 = vpop.f32.mrf.mxu0  ;;  %v5996_v36 = vpop.f32.mrf.mxu1 }
 0x280   : >> { %v5946_v16 = vadd.f32 %v5945_v8, %v5944_v33  ;;  %v8192_v33 = vadd.s32 %v8088_v38, %v7171_v26 }
 0x281   : >> { %v5947_v11 = vpop.f32.mrf.mxu0  ;;  %v5997_v12 = vpop.f32.mrf.mxu1 }
 0x282   : >> { %v5998_v18 = vadd.f32 %v5997_v12, %v5996_v36  ;;  %v2044_v47 = vsub.s32 0, %v8192_v33 }
 0x283   : >> { %v5948_v48 = vpop.f32.mrf.mxu0  ;;  %v5999_v46 = vpop.f32.mrf.mxu1 }
 0x284   : >> { %v1839_v27 = vadd.f32 %v5998_v18, %v5946_v16  ;;  %v5949_v60 = vadd.f32 %v5948_v48, %v5947_v11  ;;  %v8202_v11 = vmin.u32 %v2033_v6, %v8179_v59 }
 0x285   : >> { %v6000_v53 = vpop.f32.mrf.mxu1 }
 0x286   : >> { %v1892_v58 = vadd.f32 %v8158_v20, %v1839_v27  ;;  %v6001_v51 = vadd.f32 %v6000_v53, %v5999_v46  ;;  %v2018_v27 = vsub.s32 %v8147_v10, %v2017_v5  ;;  %v2149_v10 = vsel %vm8207_vm11, %v2137_v45, %v2009_v9 }
 0x287   : >> { %v8213_v53 = vmul.u32.u64.low 3817748708, %v8202_v11  ;;  %v8214_v17 = vmul.u32.u64.high 3817748708, %v8202_v11, %v8213_v53  ;;  %vm2161_vm8 = vcmp.lt.s32.totalorder %v2149_v10, 16  ;;  %v8241_v9 = vadd.s32 %v8088_v38, %v7226_v52 }
 0x288   : >> { %vm1904_vm12 = vcmp.ge.f32.partialorder %v1892_v58, 0.0  ;;  %v1916_v50 = vmul.f32 0.2, %v1892_v58  ;;  %v1842_v32 = vadd.f32 %v6001_v51, %v5949_v60  ;;  %v8218_v60 = vmin.u32 %v2044_v47, %v8192_v33 }
 0x289   : >> { %v2019_v54 = vsub.s32 0, %v2018_v27 }
 0x28a   : >> { %v1928_v0 = vsel %vm1904_vm12, %v1892_v58, %v1916_v50  ;;  %v1893_v3 = vadd.f32 %v8158_v20, %v1842_v32  ;;  %vm2172_vm12 = vcmp.lt.s32.totalorder %v8110_v44, 288  ;;  %v2029_v50 = vsub.s32 %v8161_v31, %v2028_v34 }
 0x28b   : >> { %v2218_v2 = vsel %vm2182_vm4, %v1928_v0, 0.0  ;;  %vm2184_vm6 = vmand %vm2160_vm0, %vm2172_vm12 }
 0x28c   : >> { %5344 = vst.msk [vmem:[%s8184_s25 + $0x18] sm:$0xff] %vm10180_vm7, %v2218_v2  ;;  %vm1905_vm2 = vcmp.ge.f32.partialorder %v1893_v3, 0.0  ;;  %v1917_v23 = vmul.f32 0.2, %v1893_v3  ;;  %vm2173_vm7 = vcmp.lt.s32.totalorder %v8115_v22, 288  ;;  %v2030_v31 = vsub.s32 0, %v2029_v50 }
 0x28d   : >> { %vm2185_vm10 = vmand %vm2161_vm8, %vm2173_vm7  ;;  %v2038_v22 = vshrl.u32 %v8214_v17, 4 }
 0x28e   : >> { %v1929_v57 = vsel %vm1905_vm2, %v1893_v3, %v1917_v23  ;;  %v8227_v0 = vmul.u32.u64.low 3817748708, %v8218_v60  ;;  %v8228_v3 = vmul.u32.u64.high 3817748708, %v8218_v60, %v8227_v0  ;;  %v2020_v23 = vsel %vm2010_vm1, %v2019_v54, %v2018_v27  ;;  %vm10186_vm2 = vmmov %vm10181_vm15 }
 0x28f   : >> { %v2219_v25 = vsel %vm2183_vm9, %v1929_v57, 0.0  ;;  %vm2114_vm3 = vcmp.lt.s32.totalorder %v2020_v23, 0  ;;  %v2031_v61 = vsel %vm2021_vm5, %v2030_v31, %v2029_v50  ;;  %vm10187_vm13 = vmmov %vm10186_vm2  ;;  %v2039_v36 = vmul.u32 18, %v2038_v22 }
 0x290   : >> { %5345 = vst.msk [vmem:[%s8184_s25 + $0x20] sm:$0xff] %vm10181_vm15, %v2219_v25  ;;  %v6002_v13 = vpop.f32.mrf.mxu1  ;;  %v5950_v8 = vpop.f32.mrf.mxu0  ;;  %vm2102_vm15 = vcmp.ne.s32.totalorder %v2020_v23, 0  ;;  %v2138_v5 = vadd.s32 18, %v2020_v23  ;;  %v2049_v4 = vshrl.u32 %v8228_v3, 4  ;;  %vm2103_vm11 = vcmp.ne.s32.totalorder %v2031_v61, 0  ;;  %vm10192_vm5 = vmmov %vm10187_vm13 }
 0x291   : >> { %vm8247_vm14 = vmand %vm2114_vm3, %vm2102_vm15  ;;  %vm2115_vm0 = vcmp.lt.s32.totalorder %v2031_v61, 0  ;;  %vm2032_vm1 = vcmp.lt.s32.totalorder %v8179_v59, 0 }
 0x292   : >> { %v6003_v12 = vpop.f32.mrf.mxu1  ;;  %v5951_v42 = vpop.f32.mrf.mxu0  ;;  %v2150_v34 = vsel %vm8247_vm14, %v2138_v5, %v2020_v23  ;;  %vm8258_vm12 = vmand %vm2115_vm0, %vm2103_vm11  ;;  %v2050_v53 = vmul.u32 18, %v2049_v4 }
 0x293   : >> { %v6004_v16 = vadd.f32 %v6003_v12, %v6002_v13  ;;  %v5952_v18 = vadd.f32 %v5951_v42, %v5950_v8  ;;  %v2055_v13 = vsub.s32 0, %v8233_v1  ;;  %vm10193_vm11 = vmmov %vm10192_vm5 }
 0x294   : >> { %v6005_v24 = vpop.f32.mrf.mxu1  ;;  %v5953_v48 = vpop.f32.mrf.mxu0  ;;  %v2051_v0 = vsub.s32 %v8218_v60, %v2050_v53 }
 0x295   : >> { %v1847_v43 = vadd.f32 %v6004_v16, %v5952_v18  ;;  %v2066_v16 = vsub.s32 0, %v8241_v9  ;;  %v8253_v18 = vmin.u32 %v2055_v13, %v8233_v1 }
 0x296   : >> { %v6006_v55 = vpop.f32.mrf.mxu1  ;;  %v5954_v58 = vpop.f32.mrf.mxu0 }
 0x297   : >> { %v1894_v51 = vadd.f32 %v8158_v20, %v1847_v43  ;;  %v6007_v40 = vadd.f32 %v6006_v55, %v6005_v24  ;;  %v5955_v56 = vadd.f32 %v5954_v58, %v5953_v48  ;;  %v2139_v24 = vadd.s32 18, %v2031_v61 }
 0x298   : >> { %v2040_v48 = vsub.s32 %v8202_v11, %v2039_v36  ;;  %v8263_v58 = vmin.u32 %v2066_v16, %v8241_v9 }
 0x299   : >> { %vm1906_vm4 = vcmp.ge.f32.partialorder %v1894_v51, 0.0  ;;  %v1918_v32 = vmul.f32 0.2, %v1894_v51  ;;  %v1850_v44 = vadd.f32 %v6007_v40, %v5955_v56  ;;  %v2151_v10 = vsel %vm8258_vm12, %v2139_v24, %v2031_v61 }
 0x29a   : >> { %v8266_v40 = vmul.u32.u64.low 3817748708, %v8253_v18  ;;  %v8267_v56 = vmul.u32.u64.high 3817748708, %v8253_v18, %v8266_v40  ;;  %v2041_v54 = vsub.s32 0, %v2040_v48 }
 0x29b   : >> { %v1930_v62 = vsel %vm1906_vm4, %v1894_v51, %v1918_v32  ;;  %v1895_v63 = vadd.f32 %v8158_v20, %v1850_v44  ;;  %vm2162_vm4 = vcmp.lt.s32.totalorder %v2150_v34, 16 }
 0x29c   : >> { %v2220_v2 = vsel %vm2184_vm6, %v1930_v62, 0.0  ;;  %vm2174_vm6 = vcmp.lt.s32.totalorder %v8131_v7, 288  ;;  %v8276_v3 = vmul.u32.u64.low 3817748708, %v8263_v58  ;;  %v8277_v62 = vmul.u32.u64.high 3817748708, %v8263_v58, %v8276_v3 }
 0x29d   : >> { %5346 = vst.msk [vmem:[%s8184_s25 + $0x28] sm:$0xff] %vm10186_vm2, %v2220_v2  ;;  %vm1907_vm9 = vcmp.ge.f32.partialorder %v1895_v63, 0.0  ;;  %v1919_v6 = vmul.f32 0.2, %v1895_v63  ;;  %vm2186_vm7 = vmand %vm2162_vm4, %vm2174_vm6  ;;  %vm2163_vm2 = vcmp.lt.s32.totalorder %v2151_v10, 16  ;;  %v8282_v2 = vadd.s32 %v8088_v38, %v7196_v37 }
 0x29e   : >> { %v2042_v31 = vsel %vm2032_vm1, %v2041_v54, %v2040_v48  ;;  %v2071_v16 = vshrl.u32 %v8277_v62, 4 }
 0x29f   : >> { %v1931_v57 = vsel %vm1907_vm9, %v1895_v63, %v1919_v6  ;;  %vm2175_vm9 = vcmp.lt.s32.totalorder %v8137_v28, 288  ;;  %v2052_v6 = vsub.s32 0, %v2051_v0  ;;  %v2060_v28 = vshrl.u32 %v8267_v56, 4 }
 0x2a0   : >> { %v2221_v25 = vsel %vm2185_vm10, %v1931_v57, 0.0  ;;  %vm2043_vm10 = vcmp.lt.s32.totalorder %v8192_v33, 0  ;;  %vm2187_vm3 = vmand %vm2163_vm2, %vm2175_vm9  ;;  %vm2116_vm14 = vcmp.lt.s32.totalorder %v2042_v31, 0  ;;  %v2140_v5 = vadd.s32 18, %v2042_v31 }
 0x2a1   : >> { %5347 = vst.msk [vmem:[%s8184_s25 + $0x30] sm:$0xff] %vm10187_vm13, %v2221_v25  ;;  %v5956_v8 = vpop.f32.mrf.mxu0  ;;  %vm2104_vm13 = vcmp.ne.s32.totalorder %v2042_v31, 0  ;;  %v2077_v25 = vsub.s32 0, %v8282_v2  ;;  %v2053_v13 = vsel %vm2043_vm10, %v2052_v6, %v2051_v0  ;;  %v2061_v47 = vmul.u32 18, %v2060_v28 }
 0x2a2   : >> { %vm8296_vm0 = vmand %vm2116_vm14, %vm2104_vm13  ;;  %vm2105_vm12 = vcmp.ne.s32.totalorder %v2053_v13, 0  ;;  %vm2117_vm4 = vcmp.lt.s32.totalorder %v2053_v13, 0  ;;  %v2141_v34 = vadd.s32 18, %v2053_v13  ;;  %vm2054_vm9 = vcmp.lt.s32.totalorder %v8233_v1, 0 }
 0x2a3   : >> { %v5957_v12 = vpop.f32.mrf.mxu0  ;;  %v6008_v42 = vpop.f32.mrf.mxu1  ;;  %vm8307_vm6 = vmand %vm2117_vm4, %vm2105_vm12  ;;  %vm2065_vm14 = vcmp.lt.s32.totalorder %v8241_v9, 0 }
 0x2a4   : >> { %v5958_v46 = vadd.f32 %v5957_v12, %v5956_v8  ;;  %v8292_v8 = vadd.s32 %v8088_v38, %v7219_v49 }
 0x2a5   : >> { %v5959_v41 = vpop.f32.mrf.mxu0  ;;  %v6009_v45 = vpop.f32.mrf.mxu1 }
 0x2a6   : >> { %v6010_v27 = vadd.f32 %v6009_v45, %v6008_v42  ;;  %v2088_v24 = vsub.s32 0, %v8292_v8 }
 0x2a7   : >> { %v5960_v17 = vpop.f32.mrf.mxu0  ;;  %v6011_v55 = vpop.f32.mrf.mxu1 }
 0x2a8   : >> { %v1855_v51 = vadd.f32 %v6010_v27, %v5958_v46  ;;  %v5961_v32 = vadd.f32 %v5960_v17, %v5959_v41  ;;  %v8302_v41 = vmin.u32 %v2077_v25, %v8282_v2  ;;  %v2152_v27 = vsel %vm8296_vm0, %v2140_v5, %v2042_v31 }
 0x2a9   : >> { %v6012_v11 = vpop.f32.mrf.mxu1  ;;  %vm2164_vm1 = vcmp.lt.s32.totalorder %v2152_v27, 16 }
 0x2aa   : >> { %v1896_v50 = vadd.f32 %v8158_v20, %v1855_v51  ;;  %v6013_v44 = vadd.f32 %v6012_v11, %v6011_v55  ;;  %v2062_v55 = vsub.s32 %v8253_v18, %v2061_v47  ;;  %v2072_v51 = vmul.u32 18, %v2071_v16 }
 0x2ab   : >> { %v8313_v56 = vmul.u32.u64.low 3817748708, %v8302_v41  ;;  %v8314_v11 = vmul.u32.u64.high 3817748708, %v8302_v41, %v8313_v56  ;;  %v2153_v18 = vsel %vm8307_vm6, %v2141_v34, %v2053_v13 }
 0x2ac   : >> { %vm1908_vm8 = vcmp.ge.f32.partialorder %v1896_v50, 0.0  ;;  %v1920_v7 = vmul.f32 0.2, %v1896_v50  ;;  %v1858_v63 = vadd.f32 %v6013_v44, %v5961_v32  ;;  %v2063_v3 = vsub.s32 0, %v2062_v55 }
 0x2ad   : >> { %v2073_v62 = vsub.s32 %v8263_v58, %v2072_v51  ;;  %vm2165_vm10 = vcmp.lt.s32.totalorder %v2153_v18, 16 }
 0x2ae   : >> { %v1932_v23 = vsel %vm1908_vm8, %v1896_v50, %v1920_v7  ;;  %v1897_v60 = vadd.f32 %v8158_v20, %v1858_v63  ;;  %vm2176_vm8 = vcmp.lt.s32.totalorder %v8179_v59, 288  ;;  %v8318_v50 = vmin.u32 %v2088_v24, %v8292_v8 }
 0x2af   : >> { %v2222_v22 = vsel %vm2186_vm7, %v1932_v23, 0.0  ;;  %vm2188_vm2 = vmand %vm2164_vm1, %vm2176_vm8  ;;  %v2074_v58 = vsub.s32 0, %v2073_v62 }
 0x2b0   : >> { %5348 = vst.msk [vmem:[%s8184_s25 + $0x38] sm:$0xff] %vm10192_vm5, %v2222_v22  ;;  %vm1909_vm15 = vcmp.ge.f32.partialorder %v1897_v60, 0.0  ;;  %v1921_v57 = vmul.f32 0.2, %v1897_v60  ;;  %vm2177_vm5 = vcmp.lt.s32.totalorder %v8192_v33, 288  ;;  %v2064_v22 = vsel %vm2054_vm9, %v2063_v3, %v2062_v55 }
 0x2b1   : >> { %v8327_v63 = vmul.u32.u64.low 3817748708, %v8318_v50  ;;  %v8328_v23 = vmul.u32.u64.high 3817748708, %v8318_v50, %v8327_v63  ;;  %vm2189_vm13 = vmand %vm2165_vm10, %vm2177_vm5  ;;  %v2082_v33 = vshrl.u32 %v8314_v11, 4  ;;  %vm2118_vm0 = vcmp.lt.s32.totalorder %v2064_v22, 0 }
 0x2b2   : >> { %v1933_v61 = vsel %vm1909_vm15, %v1897_v60, %v1921_v57  ;;  %vm10198_vm15 = vmmov %vm10193_vm11  ;;  %v2142_v5 = vadd.s32 18, %v2064_v22  ;;  %vm2076_vm9 = vcmp.lt.s32.totalorder %v8282_v2, 0 }
 0x2b3   : >> { %v2223_v36 = vsel %vm2187_vm3, %v1933_v61, 0.0  ;;  %v2075_v61 = vsel %vm2065_vm14, %v2074_v58, %v2073_v62  ;;  %vm10199_vm12 = vmmov %vm10198_vm15 }
 0x2b4   : >> { %5349 = vst.msk [vmem:[%s8184_s25 + $0x40] sm:$0xff] %vm10193_vm11, %v2223_v36  ;;  %v6014_v4 = vpop.f32.mrf.mxu1  ;;  %v5962_v12 = vpop.f32.mrf.mxu0  ;;  %vm2106_vm11 = vcmp.ne.s32.totalorder %v2064_v22, 0  ;;  %v2083_v36 = vmul.u32 18, %v2082_v33  ;;  %vm2107_vm6 = vcmp.ne.s32.totalorder %v2075_v61, 0  ;;  %vm2119_vm1 = vcmp.lt.s32.totalorder %v2075_v61, 0  ;;  %vm10202_vm14 = vmmov %vm10199_vm12 }
 0x2b5   : >> { %vm2130_vm4 = vmand %vm2118_vm0, %vm2106_vm11 }
 0x2b6   : >> { %v6015_v38 = vpop.f32.mrf.mxu1  ;;  %v5963_v45 = vpop.f32.mrf.mxu0  ;;  %vm8339_vm8 = vmand %vm2119_vm1, %vm2107_vm6 }
 0x2b7   : >> { %v6016_v48 = vadd.f32 %v6015_v38, %v6014_v4  ;;  %v5964_v46 = vadd.f32 %v5963_v45, %v5962_v12  ;;  %v2093_v4 = vshrl.u32 %v8328_v23, 4  ;;  %v2143_v38 = vadd.s32 18, %v2075_v61  ;;  %vm10203_vm6 = vmmov %vm10202_vm14 }
 0x2b8   : >> { %v6017_v43 = vpop.f32.mrf.mxu1  ;;  %v5965_v53 = vpop.f32.mrf.mxu0  ;;  %v2084_v45 = vsub.s32 %v8302_v41, %v2083_v36 }
 0x2b9   : >> { %v1863_v40 = vadd.f32 %v6016_v48, %v5964_v46  ;;  %v2154_v46 = vsel %vm2130_vm4, %v2142_v5, %v2064_v22  ;;  %v2094_v34 = vmul.u32 18, %v2093_v4  ;;  %v2155_v51 = vsel %vm8339_vm8, %v2143_v38, %v2075_v61 }
 0x2ba   : >> { %v6018_v10 = vpop.f32.mrf.mxu1  ;;  %v5966_v54 = vpop.f32.mrf.mxu0 }
 0x2bb   : >> { %v1898_v32 = vadd.f32 %v8158_v20, %v1863_v40  ;;  %v6019_v44 = vadd.f32 %v6018_v10, %v6017_v43  ;;  %v5967_v0 = vadd.f32 %v5966_v54, %v5965_v53  ;;  %v2085_v40 = vsub.s32 0, %v2084_v45 }
 0x2bc   : >> { %v2095_v10 = vsub.s32 %v8318_v50, %v2094_v34 }
 0x2bd   : >> { %vm1910_vm7 = vcmp.ge.f32.partialorder %v1898_v32, 0.0  ;;  %v1922_v7 = vmul.f32 0.2, %v1898_v32  ;;  %v1866_v59 = vadd.f32 %v6019_v44, %v5967_v0  ;;  %v2086_v0 = vsel %vm2076_vm9, %v2085_v40, %v2084_v45 }
 0x2be   : >> { %v2096_v18 = vsub.s32 0, %v2095_v10  ;;  %vm2120_vm4 = vcmp.lt.s32.totalorder %v2086_v0, 0 }
 0x2bf   : >> { %v1934_v60 = vsel %vm1910_vm7, %v1898_v32, %v1922_v7  ;;  %v1899_v31 = vadd.f32 %v8158_v20, %v1866_v59  ;;  %vm2166_vm7 = vcmp.lt.s32.totalorder %v2154_v46, 16 }
 0x2c0   : >> { %v2224_v6 = vsel %vm2188_vm2, %v1934_v60, 0.0  ;;  %vm2178_vm2 = vcmp.lt.s32.totalorder %v8233_v1, 288 }
 0x2c1   : >> { %5350 = vst.msk [vmem:[%s8184_s25 + $0x48] sm:$0xff] %vm10198_vm15, %v2224_v6  ;;  %vm1911_vm3 = vcmp.ge.f32.partialorder %v1899_v31, 0.0  ;;  %v1923_v57 = vmul.f32 0.2, %v1899_v31  ;;  %vm2190_vm5 = vmand %vm2166_vm7, %vm2178_vm2  ;;  %vm2167_vm15 = vcmp.lt.s32.totalorder %v2155_v51, 16 }
 0x2c3   : >> { %v1935_v28 = vsel %vm1911_vm3, %v1899_v31, %v1923_v57  ;;  %vm2179_vm3 = vcmp.lt.s32.totalorder %v8241_v9, 288  ;;  %v2144_v9 = vadd.s32 18, %v2086_v0 }
 0x2c4   : >> { %v2225_v25 = vsel %vm2189_vm13, %v1935_v28, 0.0  ;;  %vm2087_vm13 = vcmp.lt.s32.totalorder %v8292_v8, 0  ;;  %vm2191_vm0 = vmand %vm2167_vm15, %vm2179_vm3 }
 0x2c5   : >> { %5351 = vst.msk [vmem:[%s8184_s25 + $0x50] sm:$0xff] %vm10199_vm12, %v2225_v25  ;;  %v5968_v13 = vpop.f32.mrf.mxu0  ;;  %vm2108_vm12 = vcmp.ne.s32.totalorder %v2086_v0, 0  ;;  %v2097_v7 = vsel %vm2087_vm13, %v2096_v18, %v2095_v10  ;;  %vm2181_vm13 = vcmp.lt.s32.totalorder %v8292_v8, 288 }
 0x2c6   : >> { %vm2132_vm1 = vmand %vm2120_vm4, %vm2108_vm12  ;;  %vm2109_vm8 = vcmp.ne.s32.totalorder %v2097_v7, 0  ;;  %vm2121_vm7 = vcmp.lt.s32.totalorder %v2097_v7, 0  ;;  %v2145_v57 = vadd.s32 18, %v2097_v7 }
 0x2c7   : >> { %v5969_v12 = vpop.f32.mrf.mxu0  ;;  %v6020_v42 = vpop.f32.mrf.mxu1  ;;  %v2156_v58 = vsel %vm2132_vm1, %v2144_v9, %v2086_v0  ;;  %vm2133_vm2 = vmand %vm2121_vm7, %vm2109_vm8 }
 0x2c8   : >> { %v5970_v24 = vadd.f32 %v5969_v12, %v5968_v13  ;;  %vm2168_vm9 = vcmp.lt.s32.totalorder %v2156_v58, 16  ;;  %v2157_v12 = vsel %vm2133_vm2, %v2145_v57, %v2097_v7  ;;  %vm10205_vm12 = vmmov %vm10203_vm6 }
 0x2c9   : >> { %v5971_v47 = vpop.f32.mrf.mxu0  ;;  %v6021_v16 = vpop.f32.mrf.mxu1  ;;  %vm2169_vm3 = vcmp.lt.s32.totalorder %v2157_v12, 16 }
 0x2ca   : >> { %v6022_v48 = vadd.f32 %v6021_v16, %v6020_v42 }
 0x2cb   : >> { %v5972_v43 = vpop.f32.mrf.mxu0  ;;  %v6023_v53 = vpop.f32.mrf.mxu1 }
 0x2cc   : >> { %v1871_v17 = vadd.f32 %v6022_v48, %v5970_v24  ;;  %v5973_v56 = vadd.f32 %v5972_v43, %v5971_v47 }
 0x2cd   : >> { %v6024_v55 = vpop.f32.mrf.mxu1 }
 0x2ce   : >> { %v1900_v41 = vadd.f32 %v8158_v20, %v1871_v17  ;;  %v6025_v11 = vadd.f32 %v6024_v55, %v6023_v53 }
 0x2d0   : >> { %vm1912_vm10 = vcmp.ge.f32.partialorder %v1900_v41, 0.0  ;;  %v1924_v54 = vmul.f32 0.2, %v1900_v41  ;;  %v1874_v32 = vadd.f32 %v6025_v11, %v5973_v56 }
 0x2d2   : >> { %v1936_v1 = vsel %vm1912_vm10, %v1900_v41, %v1924_v54  ;;  %v1901_v44 = vadd.f32 %v8158_v20, %v1874_v32  ;;  %vm2180_vm10 = vcmp.lt.s32.totalorder %v8282_v2, 288 }
 0x2d3   : >> { %v2226_v3 = vsel %vm2190_vm5, %v1936_v1, 0.0  ;;  %vm2192_vm15 = vmand %vm2168_vm9, %vm2180_vm10 }
 0x2d4   : >> { %5352 = vst.msk [vmem:[%s8184_s25 + $0x58] sm:$0xff] %vm10202_vm14, %v2226_v3  ;;  %vm1913_vm11 = vcmp.ge.f32.partialorder %v1901_v44, 0.0  ;;  %v1925_v50 = vmul.f32 0.2, %v1901_v44  ;;  %vm10204_vm14 = vmmov %vm10203_vm6 }
 0x2d6   : >> { %v1937_v62 = vsel %vm1913_vm11, %v1901_v44, %v1925_v50 }
 0x2d7   : >> { %v2227_v59 = vsel %vm2191_vm0, %v1937_v62, 0.0  ;;  %vm2193_vm0 = vmand %vm2169_vm3, %vm2181_vm13 }
 0x2d8   : >> { %5353 = vst.msk [vmem:[%s8184_s25 + $0x60] sm:$0xff] %vm10203_vm6, %v2227_v59  ;;  %v6026_v63 = vpop.f32.mrf.mxu1  ;;  %v5974_v23 = vpop.f32.mrf.mxu0 }
 0x2da   : >> { %v6027_v60 = vpop.f32.mrf.mxu1  ;;  %v5975_v31 = vpop.f32.mrf.mxu0 }
 0x2db   : >> { %v6028_v6 = vadd.f32 %v6027_v60, %v6026_v63  ;;  %v5976_v22 = vadd.f32 %v5975_v31, %v5974_v23 }
 0x2dc   : >> { %v6029_v33 = vpop.f32.mrf.mxu1  ;;  %v5977_v28 = vpop.f32.mrf.mxu0 }
 0x2dd   : >> { %v1879_v25 = vadd.f32 %v6028_v6, %v5976_v22 }
 0x2de   : >> { %v6030_v61 = vpop.f32.mrf.mxu1  ;;  %v5978_v13 = vpop.f32.mrf.mxu0 }
 0x2df   : >> { %v1902_v36 = vadd.f32 %v8158_v20, %v1879_v25  ;;  %v6031_v5 = vadd.f32 %v6030_v61, %v6029_v33  ;;  %v5979_v4 = vadd.f32 %v5978_v13, %v5977_v28 }
 0x2e1   : >> { %vm1914_vm5 = vcmp.ge.f32.partialorder %v1902_v36, 0.0  ;;  %v1926_v42 = vmul.f32 0.2, %v1902_v36  ;;  %v1882_v47 = vadd.f32 %v6031_v5, %v5979_v4 }
 0x2e3   : >> { %v1938_v16 = vsel %vm1914_vm5, %v1902_v36, %v1926_v42  ;;  %v1903_v38 = vadd.f32 %v8158_v20, %v1882_v47 }
 0x2e4   : >> { %v2228_v2 = vsel %vm2192_vm15, %v1938_v16, 0.0 }
 0x2e5   : >> { %5354 = vst.msk [vmem:[%s8184_s25 + $0x68] sm:$0xff] %vm10204_vm14, %v2228_v2  ;;  %vm1915_vm11 = vcmp.ge.f32.partialorder %v1903_v38, 0.0  ;;  %v1927_v45 = vmul.f32 0.2, %v1903_v38  ;;  %988 = sbr.rel (!%p986_p5) target bundleno = 306 (0x132), region = 164 }
 0x2e7   : >> { %v1939_v24 = vsel %vm1915_vm11, %v1903_v38, %v1927_v45 }
 0x2e8   : >> { %v2229_v48 = vsel %vm2193_vm0, %v1939_v24, 0.0 }
 0x2e9   : >> { %5355 = vst.msk [vmem:[%s8184_s25 + $0x70] sm:$0xff] %vm10205_vm12, %v2229_v48 }
 0x2ea LB: >> { %v6660_v20 = vld [vmem:[%s10000_s5 + $0x78] sm:$0xff]   ;;  %s8379_s15 = smul.u32 96, %s6822_s18  ;;  %v6664_v34 = vld [vmem:[%s10000_s5 + $0x70] sm:$0xff]   ;;  %s6833_s28 = smov 64   ;;  %vm10206_vm4 = vcmask 523264   ;;  %v10239_v30 = vld [vmem:[#allocation11_spill] sm:$0xff]  ;;  %s6822_s18 = sphi %s8367_s18, %s2248_s18  }
 0x2eb   : >> { %v6661_v8 = vld [vmem:[%s10000_s5 + $0x38] sm:$0xff]   ;;  %6084 = vmatprep.subr.bf16.mxu1 %v6660_v20  ;;  %v6665_v47 = vld [vmem:[%s10000_s5 + $0x30] sm:$0xff]   ;;  %vm10207_vm6 = vmmov %vm10206_vm4  ;;  %s2248_s18 = sadd.s32 1, %s6822_s18  }
 0x2ec   : >> { %v6662_v46 = vld [vmem:[%s10000_s5 + $0xf8] sm:$0xff]   ;;  %6085 = vmatpush3.bf16.msra.mxu1 %v6661_v8  ;;  %s8391_s27 = scalar_lea.vmem [#allocation3], %s8379_s15  ;;  %v6666_v16 = vld [vmem:[%s10000_s5 + $0xf0] sm:$0xff]   ;;  %v6668_v8 = vld [vmem:[%s10000_s5 + $0x68] sm:$0xff]   ;;  %s9366_s17 = scalar_lea.vmem [#allocation4], %s8379_s15 }
 0x2ed   : >> { %v6663_v27 = vld [vmem:[%s10000_s5 + $0xb8] sm:$0xff]   ;;  %6032 = vmatprep.subr.bf16.mxu0 %v6662_v46  ;;  %6086 = vmatprep.subr.bf16.mxu1 %v6664_v34  ;;  %v6667_v45 = vld [vmem:[%s10000_s5 + $0xb0] sm:$0xff]   ;;  %v6670_v34 = vld [vmem:[%s10000_s5 + $0xe8] sm:$0xff]   ;;  %p2245_p6 = scmp.ge.s32.totalorder %s2248_s18, 3  }
 0x2ee   : >> { %6033 = vmatpush3.bf16.msra.mxu0 %v6663_v27  ;;  %v6669_v27 = vld [vmem:[%s10000_s5 + $0x28] sm:$0xff]   ;;  %vm10208_vm1 = vmmov %vm10206_vm4  ;;  %v10236_v15 = vld [vmem:[#allocation6_spill] sm:$0xff] }
 0x2ef   : >> { %6034 = vmatprep.subr.bf16.mxu0 %v6666_v16  ;;  %v6684_v16 = vld [vmem:[%s10000_s5 + $0x48] sm:$0xff]   ;;  %vm10209_vm8 = vmmov %vm10208_vm1  ;;  %v10237_v14 = vld [vmem:[#allocation5_spill] sm:$0xff] }
 0x2f0   : >> { %v5392_v43 = vld [vmem:[%s8391_s27 + $0x17] sm:$0xff]  ;;  %v5393_v53 = vld [vmem:[%s8391_s27 + $0x1f] sm:$0xff]  ;;  %v5369_v51 = vld [vmem:[%s8391_s27 + $0xe] sm:$0xff]  ;;  %6087 = vmatpush3.bf16.msra.mxu1 %v6665_v47 }
 0x2f1   : >> { %v5368_v17 = vld [vmem:[%s8391_s27 + $0x6] sm:$0xff]  ;;  %v8396_v55 = vpack.c.bf16 %v5393_v53, %v5392_v43  ;;  %v5441_v41 = vld [vmem:[%s8391_s27 + $0x32] sm:$0xff]  ;;  %v5442_v0 = vld [vmem:[%s8391_s27 + $0x3a] sm:$0xff]  ;;  %6088 = vmatprep.subr.bf16.mxu1 %v6668_v8 }
 0x2f2   : >> { %v5440_v40 = vld [vmem:[%s8391_s27 + $0x2a] sm:$0xff]  ;;  %v2284_v56 = vpack.c.bf16 %v5369_v51, %v5368_v17  ;;  %v5416_v11 = vld [vmem:[%s8391_s27 + $0x19] sm:$0xff]  ;;  %v5417_v10 = vld [vmem:[%s8391_s27 + $0x21] sm:$0xff]  ;;  %6035 = vmatpush3.bf16.msra.mxu0 %v6667_v45 }
 0x2f3   : >> { %2354 = vrot.lane.b32.xlu0 %v8396_v55, %s6833_s28  ;;  %v2520_v54 = vpack.c.bf16 %v5441_v41, %v5440_v40  ;;  %v2480_v32 = vpack.c.bf16 %v5417_v10, %v5416_v11  ;;  %v5394_v1 = vld [vmem:[%s8391_s27 + $0x27] sm:$0xff]  ;;  %v5395_v44 = vld [vmem:[%s8391_s27 + $0x2f] sm:$0xff]  ;;  %v5371_v7 = vld [vmem:[%s8391_s27 + $0x1e] sm:$0xff]  ;;  %6036 = vmatprep.subr.bf16.mxu0 %v6670_v34 }
 0x2f4   : >> { %2336 = vrot.lane.b32.xlu1 %v2284_v56, %s6833_s28  ;;  %v5443_v18 = vld [vmem:[%s8391_s27 + $0x42] sm:$0xff]  ;;  %v8411_v3 = vpack.c.bf16 %v5395_v44, %v5394_v1  ;;  %v5370_v62 = vld [vmem:[%s8391_s27 + $0x16] sm:$0xff]  ;;  %v5444_v6 = vld [vmem:[%s8391_s27 + $0x4a] sm:$0xff]  ;;  %6089 = vmatpush3.bf16.msra.mxu1 %v6669_v27 }
 0x2f5   : >> { %v2521_v50 = vpack.c.bf16 %v5443_v18, %v5442_v0  ;;  %v5418_v59 = vld [vmem:[%s8391_s27 + $0x29] sm:$0xff]  ;;  %v5419_v9 = vld [vmem:[%s8391_s27 + $0x31] sm:$0xff]  ;;  %v2285_v63 = vpack.c.bf16 %v5371_v7, %v5370_v62  ;;  %v5397_v31 = vld [vmem:[%s8391_s27 + $0x3f] sm:$0xff] }
 0x2f6   : >> { %v8421_v23 = vpack.c.bf16 %v5419_v9, %v5418_v59  ;;  %v5396_v60 = vld [vmem:[%s8391_s27 + $0x37] sm:$0xff]  ;;  %v5372_v33 = vld [vmem:[%s8391_s27 + $0x26] sm:$0xff]  ;;  %v5373_v28 = vld [vmem:[%s8391_s27 + $0x2e] sm:$0xff] }
 0x2f7   : >> { %2550 = vrot.lane.b32.xlu0 %v2520_v54, %s6833_s28  ;;  %v5445_v22 = vld [vmem:[%s8391_s27 + $0x52] sm:$0xff]  ;;  %v8428_v58 = vpack.c.bf16 %v5397_v31, %v5396_v60  ;;  %v5421_v61 = vld [vmem:[%s8391_s27 + $0x41] sm:$0xff]  ;;  %v2286_v36 = vpack.c.bf16 %v5373_v28, %v5372_v33  ;;  %v5422_v48 = vld [vmem:[%s8391_s27 + $0x49] sm:$0xff] }
 0x2f8   : >> { %2532 = vrot.lane.b32.xlu1 %v2480_v32, %s6833_s28  ;;  %v2522_v57 = vpack.c.bf16 %v5445_v22, %v5444_v6  ;;  %v5420_v25 = vld [vmem:[%s8391_s27 + $0x39] sm:$0xff]  ;;  %v5398_v13 = vld [vmem:[%s8391_s27 + $0x47] sm:$0xff]  ;;  %v5399_v5 = vld [vmem:[%s8391_s27 + $0x4f] sm:$0xff] }
 0x2f9   : >> { %v5446_v4 = vld [vmem:[%s8391_s27 + $0x5a] sm:$0xff]  ;;  %v5447_v12 = vld [vmem:[%s8391_s27 + $0x62] sm:$0xff]  ;;  %v8443_v42 = vpack.c.bf16 %v5421_v61, %v5420_v25  ;;  %v8457_v24 = vpack.c.bf16 %v5399_v5, %v5398_v13  ;;  %v5423_v20 = vld [vmem:[%s8391_s27 + $0x51] sm:$0xff] }
 0x2fa   : >> { %v5374_v38 = vld [vmem:[%s8391_s27 + $0x36] sm:$0xff]  ;;  %v5375_v2 = vld [vmem:[%s8391_s27 + $0x3e] sm:$0xff]  ;;  %v2523_v46 = vpack.c.bf16 %v5447_v12, %v5446_v4  ;;  %v6671_v17 = vld [vmem:[%s10000_s5 + $0xa8] sm:$0xff]   ;;  %v8485_v11 = vpack.c.bf16 %v5423_v20, %v5422_v48 }
 0x2fb   : >> { %2356 = vrot.lane.b32.xlu0 %v8411_v3, %s6833_s28  ;;  %v5400_v43 = vld [vmem:[%s8391_s27 + $0x57] sm:$0xff]  ;;  %v5401_v53 = vld [vmem:[%s8391_s27 + $0x5f] sm:$0xff]  ;;  %v2287_v51 = vpack.c.bf16 %v5375_v2, %v5374_v38  ;;  %v5448_v40 = vld [vmem:[%s8391_s27 + $0x6a] sm:$0xff]  ;;  %6037 = vmatpush3.bf16.msra.mxu0 %v6671_v17 }
 0x2fc   : >> { %2552 = vrot.lane.b32.xlu1 %v2521_v50, %s6833_s28  ;;  %v5449_v41 = vld [vmem:[%s8391_s27 + $0x72] sm:$0xff]  ;;  %v6672_v56 = vld [vmem:[%s10000_s5 + $0x60] sm:$0xff]   ;;  %v8499_v0 = vpack.c.bf16 %v5401_v53, %v5400_v43  ;;  %v5426_v12 = vld [vmem:[%s8391_s27 + $0x69] sm:$0xff] }
 0x2fd   : >> { %v6673_v10 = vld [vmem:[%s10000_s5 + $0x20] sm:$0xff]   ;;  %6090 = vmatprep.subr.bf16.mxu1 %v6672_v56  ;;  %v5377_v1 = vld [vmem:[%s8391_s27 + $0x4e] sm:$0xff]  ;;  %v6676_v62 = vld [vmem:[%s10000_s5 + $0x58] sm:$0xff]   ;;  %v2524_v7 = vpack.c.bf16 %v5449_v41, %v5448_v40 }
 0x2fe   : >> { %v6674_v54 = vld [vmem:[%s10000_s5 + $0xe0] sm:$0xff]   ;;  %6091 = vmatpush3.bf16.msra.mxu1 %v6673_v10  ;;  %v6677_v59 = vld [vmem:[%s10000_s5 + $0x18] sm:$0xff]   ;;  %v5403_v60 = vld [vmem:[%s8391_s27 + $0x6f] sm:$0xff] }
 0x2ff   : >> { %2338 = vrot.lane.b32.xlu0 %v2285_v63, %s6833_s28  ;;  %v5376_v32 = vld [vmem:[%s8391_s27 + $0x46] sm:$0xff]  ;;  %v5424_v18 = vld [vmem:[%s8391_s27 + $0x59] sm:$0xff]  ;;  %6038 = vmatprep.subr.bf16.mxu0 %v6674_v54  ;;  %v6680_v33 = vld [vmem:[%s10000_s5 + $0x50] sm:$0xff]  }
 0x300   : >> { %2534 = vrot.lane.b32.xlu1 %v8421_v23, %s6833_s28  ;;  %v6675_v44 = vld [vmem:[%s10000_s5 + $0xa0] sm:$0xff]   ;;  %6092 = vmatprep.subr.bf16.mxu1 %v6676_v62  ;;  %v6678_v9 = vld [vmem:[%s10000_s5 + $0xd8] sm:$0xff]   ;;  %v2288_v6 = vpack.c.bf16 %v5377_v1, %v5376_v32  ;;  %v6681_v25 = vld [vmem:[%s10000_s5 + $0x10] sm:$0xff]  }
 0x301   : >> { %v5425_v50 = vld [vmem:[%s8391_s27 + $0x61] sm:$0xff]  ;;  %6039 = vmatpush3.bf16.msra.mxu0 %v6675_v44  ;;  %v6679_v31 = vld [vmem:[%s10000_s5 + $0x98] sm:$0xff]   ;;  %v6682_v61 = vld [vmem:[%s10000_s5 + $0xd0] sm:$0xff]  }
 0x302   : >> { %v5402_v63 = vld [vmem:[%s8391_s27 + $0x67] sm:$0xff]  ;;  %6093 = vmatpush3.bf16.msra.mxu1 %v6677_v59  ;;  %v5450_v22 = vld [vmem:[%s8391_s27 + $0x7a] sm:$0xff]  ;;  %6040 = vmatprep.subr.bf16.mxu0 %v6678_v9  ;;  %v8527_v28 = vpack.c.bf16 %v5425_v50, %v5424_v18  ;;  %v6683_v5 = vld [vmem:[%s10000_s5 + $0x90] sm:$0xff]  }
 0x303   : >> { %2358 = vrot.lane.b32.xlu0 %v8428_v58, %s6833_s28  ;;  %6094 = vmatprep.subr.bf16.mxu1 %v6680_v33  ;;  %v5378_v13 = vld [vmem:[%s8391_s27 + $0x56] sm:$0xff]  ;;  %v2329_v4 = vpack.c.bf16 %v5403_v60, %v5402_v63  ;;  %v6685_v2 = vld [vmem:[%s10000_s5 + $0x8] sm:$0xff]   ;;  %v6688_v27 = vld [vmem:[%s10000_s5 + $0x40] sm:$0xff]  }
 0x304   : >> { %2554 = vrot.lane.b32.xlu1 %v2522_v57, %s6833_s28  ;;  %v5451_v57 = vld [vmem:[%s8391_s27 + $0x82] sm:$0xff]  ;;  %v5427_v47 = vld [vmem:[%s8391_s27 + $0x71] sm:$0xff]  ;;  %vm10210_vm7 = vmmov %vm10208_vm1 }
 0x305   : >> { %6041 = vmatpush3.bf16.msra.mxu0 %v6679_v31  ;;  %v2525_v38 = vpack.c.bf16 %v5451_v57, %v5450_v22  ;;  %v6686_v45 = vld [vmem:[%s10000_s5 + $0xc8] sm:$0xff]   ;;  %v5517_v20 = vld [vmem:[%s8391_s27 + $0x33] sm:$0xff]  ;;  %v8564_v34 = vpack.c.bf16 %v5427_v47, %v5426_v12  ;;  %v6689_v43 = vld [vmem:[%s10000_s5] sm:$0xff]  }
 0x306   : >> { %6095 = vmatpush3.bf16.msra.mxu1 %v6681_v25  ;;  %6042 = vmatprep.subr.bf16.mxu0 %v6682_v61  ;;  %v5516_v48 = vld [vmem:[%s8391_s27 + $0x2b] sm:$0xff]  ;;  %v5522_v53 = vld [vmem:[%s8391_s27 + $0x5b] sm:$0xff]  ;;  %v5523_v17 = vld [vmem:[%s8391_s27 + $0x63] sm:$0xff] }
 0x307   : >> { %2340 = vrot.lane.b32.xlu0 %v2286_v36, %s6833_s28  ;;  %v5379_v36 = vld [vmem:[%s8391_s27 + $0x5e] sm:$0xff]  ;;  %6096 = vmatprep.subr.bf16.mxu1 %v6684_v16  ;;  %v6687_v8 = vld [vmem:[%s10000_s5 + $0x88] sm:$0xff]   ;;  %v8575_v40 = vpack.c.bf16 %v5517_v20, %v5516_v48  ;;  %v5525_v56 = vld [vmem:[%s8391_s27 + $0x73] sm:$0xff]  ;;  %v8581_v10 = vpack.c.bf16 %v5523_v17, %v5522_v53 }
 0x308   : >> { %2536 = vrot.lane.b32.xlu1 %v8443_v42, %s6833_s28  ;;  %v5524_v41 = vld [vmem:[%s8391_s27 + $0x6b] sm:$0xff]  ;;  %v5518_v54 = vld [vmem:[%s8391_s27 + $0x3b] sm:$0xff]  ;;  %v5519_v32 = vld [vmem:[%s8391_s27 + $0x43] sm:$0xff] }
 0x309   : >> { %6043 = vmatpush3.bf16.msra.mxu0 %v6683_v5  ;;  %v6691_v1 = vld [vmem:[%s10000_s5 + $0x80] sm:$0xff]   ;;  %v6692_v44 = vld [vmem:[%s10000_s5 + $0x178] sm:$0xff]   ;;  %v8593_v18 = vpack.c.bf16 %v5519_v32, %v5518_v54  ;;  %v5520_v50 = vld [vmem:[%s8391_s27 + $0x4b] sm:$0xff]  ;;  %v8598_v62 = vpack.c.bf16 %v5525_v56, %v5524_v41 }
 0x30a   : >> { %6097 = vmatpush3.bf16.msra.mxu1 %v6685_v2  ;;  %6044 = vmatprep.subr.bf16.mxu0 %v6686_v45  ;;  %v5526_v59 = vld [vmem:[%s8391_s27 + $0x7b] sm:$0xff]  ;;  %v5527_v9 = vld [vmem:[%s8391_s27 + $0x83] sm:$0xff]  ;;  %v5357_v57 = vld [vmem:[%s8391_s27 + $0xd] sm:$0xff] }
 0x30b   : >> { %2360 = vrot.lane.b32.xlu0 %v8457_v24, %s6833_s28  ;;  %6098 = vmatprep.subr.bf16.mxu1 %v6688_v27  ;;  %v8609_v60 = vpack.c.bf16 %v5527_v9, %v5526_v59  ;;  %v5380_v31 = vld [vmem:[%s8391_s27 + $0x7] sm:$0xff]  ;;  %v5404_v61 = vld [vmem:[%s8391_s27 + $0x18] sm:$0xff]  ;;  %v6694_v47 = vld [vmem:[%s10000_s5 + $0x170] sm:$0xff]  }
 0x30c   : >> { %2556 = vrot.lane.b32.xlu1 %v2523_v46, %s6833_s28  ;;  %v2289_v46 = vpack.c.bf16 %v5379_v36, %v5378_v13  ;;  %v5356_v22 = vld [vmem:[%s8391_s27 + $0x5] sm:$0xff]  ;;  %v6693_v5 = vld [vmem:[%s10000_s5 + $0x138] sm:$0xff]   ;;  %v6695_v45 = vld [vmem:[%s10000_s5 + $0x130] sm:$0xff]  }
 0x30d   : >> { %6045 = vmatpush3.bf16.msra.mxu0 %v6687_v8  ;;  %v2264_v25 = vpack.c.bf16 %v5357_v57, %v5356_v22  ;;  %v5405_v13 = vld [vmem:[%s8391_s27 + $0x20] sm:$0xff]  ;;  %v6696_v8 = vld [vmem:[%s10000_s5 + $0x168] sm:$0xff]   ;;  %v5358_v27 = vld [vmem:[%s8391_s27 + $0x15] sm:$0xff] }
 0x30e   : >> { %6099 = vmatpush3.bf16.msra.mxu1 %v6689_v43  ;;  %v5359_v43 = vld [vmem:[%s8391_s27 + $0x1d] sm:$0xff]  ;;  %v5406_v53 = vld [vmem:[%s8391_s27 + $0x28] sm:$0xff]  ;;  %v5407_v17 = vld [vmem:[%s8391_s27 + $0x30] sm:$0xff] }
 0x30f   : >> { %2342 = vrot.lane.b32.xlu0 %v2287_v51, %s6833_s28  ;;  %v6690_v51 = vld [vmem:[%s10000_s5 + $0xc0] sm:$0xff]   ;;  %6468 = vmatprep.subr.bf16.mxu1 %v6692_v44  ;;  %v2265_v54 = vpack.c.bf16 %v5359_v43, %v5358_v27  ;;  %vm10211_vm2 = vmmov %vm10208_vm1  ;;  %v5408_v22 = vld [vmem:[%s8391_s27 + $0x38] sm:$0xff] }
 0x310   : >> { %2538 = vrot.lane.b32.xlu1 %v8485_v11, %s6833_s28  ;;  %6046 = vmatprep.subr.bf16.mxu0 %v6690_v51  ;;  %v6698_v32 = vld [vmem:[%s10000_s5 + $0x160] sm:$0xff]   ;;  %vm10212_vm9 = vmmov %vm10208_vm1  ;;  %v6705_v27 = vld [vmem:[%s10000_s5 + $0x108] sm:$0xff]  }
 0x311   : >> { %6047 = vmatpush3.bf16.msra.mxu0 %v6691_v1  ;;  %vm10213_vm10 = vmmov %vm10208_vm1  ;;  %v5409_v57 = vld [vmem:[%s8391_s27 + $0x40] sm:$0xff]  ;;  %v10238_v26 = vld [vmem:[#allocation9_spill] sm:$0xff] }
 0x312   : >> { %6136 = vmatprep.subr.bf16.mxu0 %v6692_v44  ;;  %v2461_v44 = vpack.c.bf16 %v5407_v17, %v5406_v53  ;;  %vm10214_vm5 = vmmov %vm10208_vm1  ;;  %v10241_v39 = vld [vmem:[#allocation14_spill] sm:$0xff]  ;;  %v10243_v19 = vld [vmem:[#allocation7_spill] sm:$0xff] }
 0x313   : >> { %2362 = vrot.lane.b32.xlu0 %v8499_v0, %s6833_s28  ;;  %vm10215_vm15 = vmmov %vm10208_vm1  ;;  %v10245_v52 = vld [vmem:[#allocation16_spill] sm:$0xff]  ;;  %v10247_v29 = vld [vmem:[#allocation10_spill] sm:$0xff] }
 0x314   : >> { %2558 = vrot.lane.b32.xlu1 %v2524_v7, %s6833_s28  ;;  %v5521_v7 = vld [vmem:[%s8391_s27 + $0x53] sm:$0xff]  ;;  %vm10216_vm3 = vmmov %vm10208_vm1  ;;  %v10251_v21 = vld [vmem:[#allocation8_spill] sm:$0xff] }
 0x315   : >> { %v8605_v63 = vpack.c.bf16 %v5521_v7, %v5520_v50  ;;  %vm10217_vm13 = vmmov %vm10208_vm1  ;;  %v10249_v37 = vld [vmem:[#allocation13_spill] sm:$0xff]  ;;  %v10253_v49 = vld [vmem:[#allocation15_spill] sm:$0xff] }
 0x316   : >> { %vm10218_vm14 = vmmov %vm10208_vm1  ;;  %v10255_v35 = vld [vmem:[#allocation12_spill] sm:$0xff] }
 0x317   : >> { %2344 = vrot.lane.b32.xlu0 %v2288_v6, %s6833_s28  ;;  %v5381_v6 = vld [vmem:[%s8391_s27 + $0xf] sm:$0xff]  ;;  %vm10219_vm11 = vmmov %vm10208_vm1 }
 0x318   : >> { %2540 = vrot.lane.b32.xlu1 %v8527_v28, %s6833_s28  ;;  %v2304_v33 = vpack.c.bf16 %v5381_v6, %v5380_v31  ;;  %v5360_v31 = vld [vmem:[%s8391_s27 + $0x25] sm:$0xff]  ;;  %v5361_v6 = vld [vmem:[%s8391_s27 + $0x2d] sm:$0xff]  ;;  %vm10220_vm0 = vmmov %vm10208_vm1 }
 0x319   : >> { %vm10221_vm12 = vmmov %vm10220_vm0 }
 0x31b   : >> { %2364 = vrot.lane.b32.xlu0 %v2329_v4, %s6833_s28 }
 0x31c   : >> { %2560 = vrot.lane.b32.xlu1 %v2525_v38, %s6833_s28  ;;  %v2460_v38 = vpack.c.bf16 %v5405_v13, %v5404_v61 }
 0x31f   : >> { %2346 = vrot.lane.b32.xlu0 %v2289_v46, %s6833_s28 }
 0x320   : >> { %2542 = vrot.lane.b32.xlu1 %v8564_v34, %s6833_s28 }
 0x323   : >> { %3023 = vrot.lane.b32.xlu0 %v8575_v40, %s6833_s28 }
 0x324   : >> { %3029 = vrot.lane.b32.xlu1 %v8581_v10, %s6833_s28 }
 0x327   : >> { %3025 = vrot.lane.b32.xlu0 %v8593_v18, %s6833_s28 }
 0x328   : >> { %3031 = vrot.lane.b32.xlu1 %v8598_v62, %s6833_s28 }
 0x32b   : >> { %3027 = vrot.lane.b32.xlu0 %v8605_v63, %s6833_s28 }
 0x32c   : >> { %3033 = vrot.lane.b32.xlu1 %v8609_v60, %s6833_s28 }
 0x365   : >> { %v2355_v36 = vpop.permute.xlu0 %2354 }
 0x366   : >> { %v2337_v4 = vpop.permute.xlu1 %2336  ;;  %v2392_v12 = vsel %vm10206_vm4, %v2304_v33, %v2355_v36  ;;  %v2266_v36 = vpack.c.bf16 %v5361_v6, %v5360_v31  ;;  %vm10222_vm4 = vmmov %vm10220_vm0 }
 0x367   : >> { %v2368_v16 = vsel %vm10207_vm6, %v2264_v25, %v2337_v4  ;;  %2948 = vmatprep.mubr.bf16.mxu1 %v2392_v12  ;;  %v6701_v25 = vld [vmem:[%s10000_s5 + $0x118] sm:$0xff]   ;;  %v2462_v12 = vpack.c.bf16 %v5409_v57, %v5408_v22  ;;  %vm10223_vm6 = vmmov %vm10220_vm0  ;;  %v5439_v57 = vld [vmem:[%s8391_s27 + $0x81] sm:$0xff] }
 0x368   : >> { %2949 = vmatmul.mubr.bf16.vlgmr.msra.gmra.mxu1 %v2368_v16  ;;  %v5438_v22 = vld [vmem:[%s8391_s27 + $0x79] sm:$0xff] }
 0x369   : >> { %v2551_v2 = vpop.permute.xlu0 %2550  ;;  %6476 = vmatpush3.bf16.msra.mxu1 %v6693_v5 }
 0x36a   : >> { %v2533_v48 = vpop.permute.xlu1 %2532  ;;  %v2588_v20 = vsel %vm10208_vm1, %v8421_v23, %v2551_v2  ;;  %6469 = vmatprep.subr.bf16.mxu1 %v6694_v47  ;;  %v6697_v23 = vld [vmem:[%s10000_s5 + $0x128] sm:$0xff]   ;;  %vm10224_vm1 = vmmov %vm10220_vm0 }
 0x36b   : >> { %v2564_v46 = vsel %vm10209_vm8, %v2460_v38, %v2533_v48  ;;  %2771 = vmatprep.mubr.bf16.mxu0 %v2588_v20  ;;  %v5363_v48 = vld [vmem:[%s8391_s27 + $0x3d] sm:$0xff]  ;;  %v5410_v20 = vld [vmem:[%s8391_s27 + $0x48] sm:$0xff]  ;;  %vm10225_vm8 = vmmov %vm10220_vm0 }
 0x36c   : >> { %2772 = vmatmul.mubr.bf16.vlgmr.msra.gmra.mxu0 %v2564_v46 }
 0x36d   : >> { %6137 = vmatpush3.bf16.msra.mxu0 %v6693_v5  ;;  %v2357_v51 = vpop.permute.xlu0 %2356  ;;  %6477 = vmatpush3.bf16.msra.mxu1 %v6695_v45  ;;  %v6702_v5 = vld [vmem:[%s10000_s5 + $0x150] sm:$0xff]  }
 0x36e   : >> { %v2396_v41 = vsel %vm10210_vm7, %v8396_v55, %v2357_v51  ;;  %v2553_v56 = vpop.permute.xlu1 %2552  ;;  %6138 = vmatprep.subr.bf16.mxu0 %v6694_v47  ;;  %6470 = vmatprep.subr.bf16.mxu1 %v6696_v8  ;;  %v6699_v55 = vld [vmem:[%s10000_s5 + $0x120] sm:$0xff]   ;;  %vm10226_vm7 = vmmov %vm10220_vm0 }
 0x36f   : >> { %v2592_v1 = vsel %vm10211_vm2, %v8443_v42, %v2553_v56  ;;  %2956 = vmatprep.mubr.bf16.mxu1 %v2396_v41  ;;  %v6700_v42 = vld [vmem:[%s10000_s5 + $0x158] sm:$0xff]   ;;  %v6706_v51 = vld [vmem:[%s10000_s5 + $0x140] sm:$0xff]   ;;  %vm10227_vm2 = vmmov %vm10220_vm0 }
 0x370   : >> { %2779 = vmatprep.mubr.bf16.mxu0 %v2592_v1 }
 0x371   : >> { %v2339_v50 = vpop.permute.xlu0 %2338  ;;  %6139 = vmatpush3.bf16.msra.mxu0 %v6695_v45  ;;  %6478 = vmatpush3.bf16.msra.mxu1 %v6697_v23  ;;  %v5362_v45 = vld [vmem:[%s8391_s27 + $0x35] sm:$0xff] }
 0x372   : >> { %v2372_v7 = vsel %vm10212_vm9, %v2265_v54, %v2339_v50  ;;  %v2535_v59 = vpop.permute.xlu1 %2534  ;;  %6140 = vmatprep.subr.bf16.mxu0 %v6696_v8  ;;  %6471 = vmatprep.subr.bf16.mxu1 %v6698_v32  ;;  %v5411_v8 = vld [vmem:[%s8391_s27 + $0x50] sm:$0xff]  ;;  %v2267_v17 = vpack.c.bf16 %v5363_v48, %v5362_v45  ;;  %v5412_v50 = vld [vmem:[%s8391_s27 + $0x58] sm:$0xff]  ;;  %vm10228_vm9 = vmmov %vm10220_vm0 }
 0x373   : >> { %v2568_v9 = vsel %vm10213_vm10, %v2461_v44, %v2535_v59  ;;  %2957 = vmatmul.mubr.bf16.gmra.mxu1 %v2372_v7  ;;  %v2463_v41 = vpack.c.bf16 %v5411_v8, %v5410_v20  ;;  %v5365_v44 = vld [vmem:[%s8391_s27 + $0x4d] sm:$0xff]  ;;  %vm10229_vm10 = vmmov %vm10220_vm0 }
 0x374   : >> { %2780 = vmatmul.mubr.bf16.gmra.mxu0 %v2568_v9 }
 0x375   : >> { %v2359_v33 = vpop.permute.xlu0 %2358  ;;  %6141 = vmatpush3.bf16.msra.mxu0 %v6697_v23  ;;  %6479 = vmatpush3.bf16.msra.mxu1 %v6699_v55 }
 0x376   : >> { %v2400_v61 = vsel %vm10214_vm5, %v8411_v3, %v2359_v33  ;;  %v2555_v13 = vpop.permute.xlu1 %2554  ;;  %6142 = vmatprep.subr.bf16.mxu0 %v6698_v32  ;;  %6472 = vmatprep.subr.bf16.mxu1 %v6700_v42  ;;  %v6703_v3 = vld [vmem:[%s10000_s5 + $0x110] sm:$0xff]   ;;  %vm10230_vm5 = vmmov %vm10220_vm0 }
 0x377   : >> { %v2596_v4 = vsel %vm10215_vm15, %v8485_v11, %v2555_v13  ;;  %2964 = vmatprep.mubr.bf16.mxu1 %v2400_v61  ;;  %v6704_v11 = vld [vmem:[%s10000_s5 + $0x148] sm:$0xff]   ;;  %v2505_v13 = vpack.c.bf16 %v5439_v57, %v5438_v22  ;;  %vm10231_vm15 = vmmov %vm10220_vm0 }
 0x378   : >> { %2787 = vmatprep.mubr.bf16.mxu0 %v2596_v4  ;;  %v5415_v4 = vld [vmem:[%s8391_s27 + $0x70] sm:$0xff] }
 0x379   : >> { %v2341_v47 = vpop.permute.xlu0 %2340  ;;  %6143 = vmatpush3.bf16.msra.mxu0 %v6699_v55  ;;  %6480 = vmatpush3.bf16.msra.mxu1 %v6701_v25  ;;  %v5413_v55 = vld [vmem:[%s8391_s27 + $0x60] sm:$0xff] }
 0x37a   : >> { %v2376_v16 = vsel %vm10216_vm3, %v2266_v36, %v2341_v47  ;;  %v2537_v38 = vpop.permute.xlu1 %2536  ;;  %6144 = vmatprep.subr.bf16.mxu0 %v6700_v42  ;;  %6473 = vmatprep.subr.bf16.mxu1 %v6702_v5  ;;  %v2464_v6 = vpack.c.bf16 %v5413_v55, %v5412_v50  ;;  %v5366_v36 = vld [vmem:[%s8391_s27 + $0x55] sm:$0xff]  ;;  %vm10232_vm3 = vmmov %vm10220_vm0 }
 0x37b   : >> { %v2572_v2 = vsel %vm10217_vm13, %v2462_v12, %v2537_v38  ;;  %2965 = vmatmul.mubr.bf16.gmra.mxu1 %v2376_v16  ;;  %vm10233_vm13 = vmmov %vm10220_vm0 }
 0x37c   : >> { %2788 = vmatmul.mubr.bf16.gmra.mxu0 %v2572_v2 }
 0x37d   : >> { %v2361_v46 = vpop.permute.xlu0 %2360  ;;  %6145 = vmatpush3.bf16.msra.mxu0 %v6701_v25  ;;  %6481 = vmatpush3.bf16.msra.mxu1 %v6703_v3 }
 0x37e   : >> { %v2404_v43 = vsel %vm10218_vm14, %v8428_v58, %v2361_v46  ;;  %v2557_v53 = vpop.permute.xlu1 %2556  ;;  %6146 = vmatprep.subr.bf16.mxu0 %v6702_v5  ;;  %6474 = vmatprep.subr.bf16.mxu1 %v6704_v11  ;;  %v6707_v58 = vld [vmem:[%s10000_s5 + $0x100] sm:$0xff]   ;;  %vm10234_vm14 = vmmov %vm10220_vm0 }
 0x37f   : >> { %v2600_v23 = vsel %vm10219_vm11, %v8527_v28, %v2557_v53  ;;  %2972 = vmatprep.mubr.bf16.mxu1 %v2404_v43  ;;  %v5364_v28 = vld [vmem:[%s8391_s27 + $0x45] sm:$0xff]  ;;  %v5367_v5 = vld [vmem:[%s8391_s27 + $0x5d] sm:$0xff]  ;;  %vm10235_vm11 = vmmov %vm10220_vm0 }
 0x380   : >> { %2795 = vmatprep.mubr.bf16.mxu0 %v2600_v23  ;;  %v2268_v9 = vpack.c.bf16 %v5365_v44, %v5364_v28  ;;  %v2269_v16 = vpack.c.bf16 %v5367_v5, %v5366_v36 }
 0x381   : >> { %v2343_v56 = vpop.permute.xlu0 %2342  ;;  %6147 = vmatpush3.bf16.msra.mxu0 %v6703_v3  ;;  %6482 = vmatpush3.bf16.msra.mxu1 %v6705_v27 }
 0x382   : >> { %v2380_v54 = vsel %vm10220_vm0, %v2267_v17, %v2343_v56  ;;  %v2539_v32 = vpop.permute.xlu1 %2538  ;;  %6148 = vmatprep.subr.bf16.mxu0 %v6704_v11  ;;  %6475 = vmatprep.subr.bf16.mxu1 %v6706_v51 }
 0x383   : >> { %v2576_v1 = vsel %vm10221_vm12, %v2463_v41, %v2539_v32  ;;  %2973 = vmatmul.mubr.bf16.gmra.mxu1 %v2380_v54 }
 0x384   : >> { %2796 = vmatmul.mubr.bf16.gmra.mxu0 %v2576_v1 }
 0x385   : >> { %v2363_v7 = vpop.permute.xlu0 %2362  ;;  %6149 = vmatpush3.bf16.msra.mxu0 %v6705_v27  ;;  %6483 = vmatpush3.bf16.msra.mxu1 %v6707_v58 }
 0x386   : >> { %v2408_v59 = vsel %vm10222_vm4, %v8457_v24, %v2363_v7  ;;  %v2559_v42 = vpop.permute.xlu1 %2558  ;;  %6150 = vmatprep.subr.bf16.mxu0 %v6706_v51 }
 0x387   : >> { %v2604_v31 = vsel %vm10223_vm6, %v8564_v34, %v2559_v42  ;;  %2980 = vmatprep.mubr.bf16.mxu1 %v2408_v59  ;;  %v5414_v34 = vld [vmem:[%s8391_s27 + $0x68] sm:$0xff] }
 0x388   : >> { %2803 = vmatprep.mubr.bf16.mxu0 %v2604_v31  ;;  %v2465_v11 = vpack.c.bf16 %v5415_v4, %v5414_v34 }
 0x389   : >> { %v2345_v33 = vpop.permute.xlu0 %2344  ;;  %6151 = vmatpush3.bf16.msra.mxu0 %v6707_v58 }
 0x38a   : >> { %v2384_v25 = vsel %vm10224_vm1, %v2268_v9, %v2345_v33  ;;  %v2541_v24 = vpop.permute.xlu1 %2540 }
 0x38b   : >> { %v2580_v61 = vsel %vm10225_vm8, %v2464_v6, %v2541_v24  ;;  %2981 = vmatmul.mubr.bf16.gmra.mxu1 %v2384_v25 }
 0x38c   : >> { %2804 = vmatmul.mubr.bf16.gmra.mxu0 %v2580_v61 }
 0x38d   : >> { %v2365_v12 = vpop.permute.xlu0 %2364 }
 0x38e   : >> { %v2412_v47 = vsel %vm10226_vm7, %v8499_v0, %v2365_v12  ;;  %v2561_v3 = vpop.permute.xlu1 %2560 }
 0x38f   : >> { %v2608_v38 = vsel %vm10227_vm2, %v2505_v13, %v2561_v3  ;;  %2988 = vmatprep.mubr.bf16.mxu1 %v2412_v47 }
 0x390   : >> { %2811 = vmatprep.mubr.bf16.mxu0 %v2608_v38 }
 0x391   : >> { %v2347_v2 = vpop.permute.xlu0 %2346 }
 0x392   : >> { %v2388_v45 = vsel %vm10228_vm9, %v2269_v16, %v2347_v2  ;;  %v2543_v48 = vpop.permute.xlu1 %2542 }
 0x393   : >> { %v2584_v20 = vsel %vm10229_vm10, %v2465_v11, %v2543_v48  ;;  %2989 = vmatmul.mubr.bf16.gmra.mxu1 %v2388_v45 }
 0x394   : >> { %2812 = vmatmul.mubr.bf16.gmra.mxu0 %v2584_v20 }
 0x395   : >> { %v3024_v8 = vpop.permute.xlu0 %3023 }
 0x396   : >> { %v3030_v46 = vpop.permute.xlu1 %3029  ;;  %v3037_v0 = vsel %vm10230_vm5, %v8575_v40, %v3024_v8 }
 0x397   : >> { %v3049_v27 = vsel %vm10231_vm15, %v8581_v10, %v3030_v46  ;;  %3220 = vmatprep.mubr.bf16.mxu0 %v3037_v0 }
 0x398   : >> { %3244 = vmatprep.mubr.bf16.mxu1 %v3049_v27 }
 0x399   : >> { %v3026_v43 = vpop.permute.xlu0 %3025 }
 0x39a   : >> { %v3032_v53 = vpop.permute.xlu1 %3031  ;;  %v3041_v17 = vsel %vm10232_vm3, %v8593_v18, %v3026_v43  ;;  %v3349_v18 = vstv %s8379_s15  ;;  %s9509_s15 = smov (%p2245_p6), 0  }
 0x39b   : >> { %3245 = vmatmul.mubr.bf16.vlgmr.msra.gmra.mxu1 %v3049_v27  ;;  %v3053_v51 = vsel %vm10233_vm13, %v8598_v62, %v3032_v53  ;;  %v8736_v62 = vadd.s32 %v3349_v18, %v10236_v15  ;;  %v8740_v58 = vadd.s32 %v3349_v18, %v10237_v14  ;;  %v8751_v1 = vadd.s32 %v3349_v18, %v10239_v30 }
 0x39c   : >> { %3221 = vmatmul.mubr.bf16.vlgmr.msra.gmra.mxu0 %v3037_v0  ;;  %3252 = vmatprep.mubr.bf16.mxu1 %v3053_v51  ;;  %v8754_v28 = vadd.s32 %v3349_v18, %v10241_v39  ;;  %v8757_v44 = vadd.s32 %v3349_v18, %v10243_v19  ;;  %v8773_v31 = vadd.s32 %v3349_v18, %v10245_v52 }
 0x39d   : >> { %3228 = vmatprep.mubr.bf16.mxu0 %v3041_v17  ;;  %v3028_v40 = vpop.permute.xlu0 %3027  ;;  %v3429_v56 = vsub.s32 0, %v8736_v62  ;;  %v3363_v54 = vsub.s32 0, %v8740_v58  ;;  %10240 = vst [vmem:[#allocation17_spill] sm:$0xff] %v8751_v1  ;;  %v3374_v9 = vsub.s32 0, %v8751_v1  ;;  %v8779_v57 = vadd.s32 %v3349_v18, %v10247_v29 }
 0x39e   : >> { %v3034_v23 = vpop.permute.xlu1 %3033  ;;  %v3045_v41 = vsel %vm10235_vm11, %v8605_v63, %v3028_v40  ;;  %10242 = vst [vmem:[#allocation18_spill] sm:$0xff] %v8754_v28  ;;  %10244 = vst [vmem:[#allocation19_spill] sm:$0xff] %v8757_v44  ;;  %v3451_v22 = vsub.s32 0, %v8754_v28  ;;  %v3385_v33 = vsub.s32 0, %v8757_v44  ;;  %v8783_v25 = vadd.s32 %v3349_v18, %v10249_v37 }
 0x39f   : >> { %v3057_v10 = vsel %vm10234_vm14, %v8609_v60, %v3034_v23  ;;  %v8743_v60 = vadd.s32 %v3349_v18, %v10238_v26  ;;  %v8746_v63 = vmin.u32 %v3429_v56, %v8736_v62  ;;  %v8766_v59 = vmin.u32 %v3363_v54, %v8740_v58  ;;  %10246 = vst [vmem:[#allocation20_spill] sm:$0xff] %v8773_v31 }
 0x3a0   : >> { %10248 = vst [vmem:[#allocation21_spill] sm:$0xff] %v8779_v57  ;;  %10250 = vst [vmem:[#allocation22_spill] sm:$0xff] %v8783_v25  ;;  %v8792_v36 = vadd.s32 %v3349_v18, %v10251_v21  ;;  %v8801_v12 = vmin.u32 %v3374_v9, %v8751_v1  ;;  %v3462_v47 = vsub.s32 0, %v8773_v31  ;;  %v8807_v16 = vmin.u32 %v3451_v22, %v8754_v28 }
 0x3a1   : >> { %v3440_v32 = vsub.s32 0, %v8743_v60  ;;  %v8762_v55 = vmul.u32.u64.low 3817748708, %v8746_v63  ;;  %v8763_v7 = vmul.u32.u64.high 3817748708, %v8746_v63, %v8762_v55  ;;  %v3396_v38 = vsub.s32 0, %v8779_v57 }
 0x3a2   : >> { %v8788_v61 = vmul.u32.u64.low 3817748708, %v8766_v59  ;;  %v8789_v13 = vmul.u32.u64.high 3817748708, %v8766_v59, %v8788_v61  ;;  %10252 = vst [vmem:[#allocation23_spill] sm:$0xff] %v8792_v36  ;;  %v8811_v11 = vadd.s32 %v3349_v18, %v10253_v49  ;;  %v8814_v2 = vmin.u32 %v3385_v33, %v8757_v44 }
 0x3a3   : >> { %3253 = vmatmul.mubr.bf16.gmra.mxu1 %v3053_v51  ;;  %v8769_v42 = vmin.u32 %v3440_v32, %v8743_v60  ;;  %v3473_v45 = vsub.s32 0, %v8783_v25  ;;  %v3434_v20 = vshrl.u32 %v8763_v7, 4  ;;  %v3407_v8 = vsub.s32 0, %v8792_v36 }
 0x3a4   : >> { %3229 = vmatmul.mubr.bf16.gmra.mxu0 %v3041_v17  ;;  %3260 = vmatprep.mubr.bf16.mxu1 %v3057_v10  ;;  %10254 = vst [vmem:[#allocation24_spill] sm:$0xff] %v8811_v11  ;;  %v8824_v0 = vmul.u32.u64.low 3817748708, %v8801_v12  ;;  %v8825_v27 = vmul.u32.u64.high 3817748708, %v8801_v12, %v8824_v0  ;;  %v8828_v43 = vmin.u32 %v3462_v47, %v8773_v31  ;;  %v8837_v23 = vmin.u32 %v3396_v38, %v8779_v57 }
 0x3a5   : >> { %3236 = vmatprep.mubr.bf16.mxu0 %v3045_v41  ;;  %v8797_v34 = vmul.u32.u64.low 3817748708, %v8769_v42  ;;  %v8798_v4 = vmul.u32.u64.high 3817748708, %v8769_v42, %v8797_v34  ;;  %v8833_v17 = vmul.u32.u64.low 3817748708, %v8807_v16  ;;  %v8834_v51 = vmul.u32.u64.high 3817748708, %v8807_v16, %v8833_v17 }
 0x3a6   : >> { %v3484_v40 = vsub.s32 0, %v8811_v11  ;;  %v8847_v54 = vmin.u32 %v3473_v45, %v8783_v25  ;;  %v8850_v32 = vadd.s32 %v3349_v18, %v10255_v35  ;;  %v3435_v7 = vmul.u32 18, %v3434_v20 }
 0x3a7   : >> { %v3368_v9 = vshrl.u32 %v8789_v13, 4  ;;  %v8856_v22 = vmin.u32 %v3407_v8, %v8792_v36  ;;  %v3445_v61 = vshrl.u32 %v8798_v4, 4  ;;  %v3379_v19 = vshrl.u32 %v8825_v27, 4 }
 0x3a8   : >> { %10256 = vst [vmem:[#allocation25_spill] sm:$0xff] %v8850_v32  ;;  %v8862_v34 = vmul.u32.u64.low 3817748708, %v8828_v43  ;;  %v8863_v47 = vmul.u32.u64.high 3817748708, %v8828_v43, %v8862_v34  ;;  %v8868_v18 = vmul.u32.u64.low 3817748708, %v8837_v23  ;;  %v8869_v45 = vmul.u32.u64.high 3817748708, %v8837_v23, %v8868_v18 }
 0x3a9   : >> { %v8872_v20 = vmin.u32 %v3484_v40, %v8811_v11  ;;  %v8877_v8 = vmul.u32.u64.low 3817748708, %v8847_v54  ;;  %v8878_v0 = vmul.u32.u64.high 3817748708, %v8847_v54, %v8877_v8  ;;  %v3418_v4 = vsub.s32 0, %v8850_v32 }
 0x3aa   : >> { %v3369_v34 = vmul.u32 18, %v3368_v9  ;;  %v8885_v14 = vmul.u32.u64.low 3817748708, %v8856_v22  ;;  %v8886_v15 = vmul.u32.u64.high 3817748708, %v8856_v22, %v8885_v14  ;;  %v3456_v8 = vshrl.u32 %v8834_v51, 4 }
 0x3ab   : >> { %3261 = vmatmul.mubr.bf16.gmra.mxu1 %v3057_v10  ;;  %v3446_v40 = vmul.u32 18, %v3445_v61  ;;  %v8895_v26 = vmul.u32.u64.low 3817748708, %v8872_v20  ;;  %v8896_v29 = vmul.u32.u64.high 3817748708, %v8872_v20, %v8895_v26  ;;  %vm3428_vm0 = vcmp.lt.s32.totalorder %v8736_v62, 0 }
 0x3ac   : >> { %3237 = vmatmul.mubr.bf16.gmra.mxu0 %v3045_v41  ;;  %v8843_v41 = vmul.u32.u64.low 3817748708, %v8814_v2  ;;  %v8844_v56 = vmul.u32.u64.high 3817748708, %v8814_v2, %v8843_v41  ;;  %v3370_v27 = vsub.s32 %v8766_v59, %v3369_v34  ;;  %v3380_v35 = vmul.u32 18, %v3379_v19 }
 0x3ad   : >> { %v3436_v41 = vsub.s32 %v8746_v63, %v3435_v7  ;;  %v8902_v7 = vmin.u32 %v3418_v4, %v8850_v32  ;;  %v3447_v51 = vsub.s32 %v8769_v42, %v3446_v40  ;;  %v3467_v26 = vshrl.u32 %v8863_v47, 4 }
 0x3ae   : >> { %v3390_v63 = vshrl.u32 %v8844_v56, 4  ;;  %v3457_v56 = vmul.u32 18, %v3456_v8  ;;  %v3401_v4 = vshrl.u32 %v8869_v45, 4  ;;  %v3478_v52 = vshrl.u32 %v8878_v0, 4 }
 0x3af   : >> { %v3437_v9 = vsub.s32 0, %v3436_v41  ;;  %v8919_v59 = vmul.u32.u64.low 3817748708, %v8902_v7  ;;  %v8920_v34 = vmul.u32.u64.high 3817748708, %v8902_v7, %v8919_v59  ;;  %v3371_v19 = vsub.s32 0, %v3370_v27 }
 0x3b0   : >> { %v3391_v49 = vmul.u32 18, %v3390_v63  ;;  %v3412_v47 = vshrl.u32 %v8886_v15, 4  ;;  %vm3362_vm12 = vcmp.lt.s32.totalorder %v8740_v58, 0  ;;  %v3448_v45 = vsub.s32 0, %v3447_v51 }
 0x3b1   : >> { %v8924_v42 = vsel %vm3428_vm0, %v3437_v9, %v3436_v41  ;;  %v3381_v8 = vsub.s32 %v8801_v12, %v3380_v35  ;;  %v3468_v63 = vmul.u32 18, %v3467_v26  ;;  %vm3439_vm4 = vcmp.lt.s32.totalorder %v8743_v60, 0 }
 0x3b2   : >> { %v3458_v59 = vsub.s32 %v8807_v16, %v3457_v56  ;;  %v3489_v41 = vshrl.u32 %v8896_v29, 4  ;;  %v3392_v15 = vsub.s32 %v8814_v2, %v3391_v49  ;;  %vm3500_vm6 = vcmp.ne.s32.totalorder %v8924_v42, 0 }
 0x3b3   : >> { %v3413_v35 = vmul.u32 18, %v3412_v47  ;;  %v8946_v26 = vsel %vm3362_vm12, %v3371_v19, %v3370_v27  ;;  %v8948_v16 = vsel %vm3439_vm4, %v3448_v45, %v3447_v51  ;;  %v3382_v56 = vsub.s32 0, %v3381_v8 }
 0x3b4   : >> { %v3469_v29 = vsub.s32 %v8828_v43, %v3468_v63  ;;  %vm3373_vm1 = vcmp.lt.s32.totalorder %v8751_v1, 0  ;;  %v3459_v49 = vsub.s32 0, %v3458_v59  ;;  %v3490_v2 = vmul.u32 18, %v3489_v41 }
 0x3b5   : >> { %vm3450_vm8 = vcmp.lt.s32.totalorder %v8754_v28, 0  ;;  %v3423_v51 = vshrl.u32 %v8920_v34, 4  ;;  %vm3512_vm7 = vcmp.lt.s32.totalorder %v8924_v42, 0  ;;  %vm3494_vm2 = vcmp.ne.s32.totalorder %v8946_v26, 0 }
 0x3b6   : >> { %vm3384_vm9 = vcmp.lt.s32.totalorder %v8757_v44, 0  ;;  %v3414_v43 = vsub.s32 %v8856_v22, %v3413_v35  ;;  %vm3506_vm10 = vcmp.lt.s32.totalorder %v8946_v26, 0  ;;  %vm3501_vm5 = vcmp.ne.s32.totalorder %v8948_v16, 0  ;;  %vm8996_vm0 = vmand %vm3512_vm7, %vm3500_vm6 }
 0x3b7   : >> { %vm3461_vm15 = vcmp.lt.s32.totalorder %v8773_v31, 0  ;;  %v3491_v22 = vsub.s32 %v8872_v20, %v3490_v2  ;;  %vm3395_vm3 = vcmp.lt.s32.totalorder %v8779_v57, 0  ;;  %v3424_v44 = vmul.u32 18, %v3423_v51  ;;  %vm9013_vm6 = vmand %vm3506_vm10, %vm3494_vm2 }
 0x3b8   : >> { %vm3513_vm13 = vcmp.lt.s32.totalorder %v8948_v16, 0  ;;  %vm3472_vm11 = vcmp.lt.s32.totalorder %v8783_v25, 0  ;;  %vm3483_vm10 = vcmp.lt.s32.totalorder %v8811_v11, 0  ;;  %v3536_v57 = vadd.s32 18, %v8924_v42 }
 0x3b9   : >> { %v3492_v2 = vsub.s32 0, %v3491_v22 }
 0x428   : >> { %v8759_v50 = vpop.f32.mrf.mxu1 }
 0x42a   : >> { %v8775_v6 = vpop.f32.mrf.mxu1 }
 0x42c   : >> { %v8785_v24 = vpop.f32.mrf.mxu0  ;;  %v8794_v5 = vpop.f32.mrf.mxu1 }
 0x42e   : >> { %v8804_v3 = vpop.f32.mrf.mxu0  ;;  %v8821_v46 = vpop.f32.mrf.mxu1 }
 0x430   : >> { %v8817_v48 = vpop.f32.mrf.mxu0 }
 0x432   : >> { %v8830_v53 = vpop.f32.mrf.mxu0 }
 0x433   : >> { %v8840_v10 = vpop.f32.mrf.mxu1 }
 0x434   : >> { %v8852_v55 = vpop.f32.mrf.mxu0 }
 0x435   : >> { %v8858_v33 = vpop.f32.mrf.mxu1 }
 0x436   : >> { %v8865_v38 = vpop.f32.mrf.mxu0 }
 0x437   : >> { %v8874_v13 = vpop.f32.mrf.mxu1 }
 0x438   : >> { %v8881_v17 = vpop.f32.mrf.mxu0 }
 0x439   : >> { %v8888_v18 = vpop.f32.mrf.mxu1 }
 0x43a   : >> { %v8891_v21 = vpop.f32.mrf.mxu0 }
 0x43b   : >> { %v8898_v30 = vpop.f32.mrf.mxu1 }
 0x43c   : >> { %v8904_v14 = vpop.f32.mrf.mxu0 }
 0x43d   : >> { %10257 = vst [vmem:[#allocation26_spill] sm:$0xff] %v8904_v14  ;;  %v8907_v61 = vpop.f32.mrf.mxu1 }
 0x43e   : >> { %v8912_v37 = vpop.f32.mrf.mxu0 }
 0x43f   : >> { %v8915_v39 = vpop.f32.mrf.mxu1 }
 0x440   : >> { %10258 = vst [vmem:[#allocation27_spill] sm:$0xff] %v8915_v39  ;;  %v8922_v14 = vpop.f32.mrf.mxu0 }
 0x441   : >> { %10259 = vst [vmem:[#allocation28_spill] sm:$0xff] %v8922_v14  ;;  %v8927_v40 = vpop.f32.mrf.mxu1  ;;  %v3402_v14 = vmul.u32 18, %v3401_v4 }
 0x442   : >> { %10260 = vst [vmem:[#allocation29_spill] sm:$0xff] %v8927_v40  ;;  %v8931_v0 = vpop.f32.mrf.mxu0  ;;  %v3479_v40 = vmul.u32 18, %v3478_v52 }
 0x443   : >> { %10261 = vst [vmem:[#allocation30_spill] sm:$0xff] %v8931_v0  ;;  %v8936_v9 = vpop.f32.mrf.mxu1  ;;  %v3403_v52 = vsub.s32 %v8837_v23, %v3402_v14  ;;  %v3393_v0 = vsub.s32 0, %v3392_v15  ;;  %v3470_v14 = vsub.s32 0, %v3469_v29 }
 0x444   : >> { %v8939_v39 = vpop.f32.mrf.mxu0  ;;  %v3480_v27 = vsub.s32 %v8847_v54, %v3479_v40  ;;  %v8972_v54 = vsel %vm3373_vm1, %v3382_v56, %v3381_v8  ;;  %v8976_v40 = vsel %vm3450_vm8, %v3459_v49, %v3458_v59  ;;  %v3415_v59 = vsub.s32 0, %v3414_v43 }
 0x445   : >> { %v8942_v12 = vpop.f32.mrf.mxu1  ;;  %v3404_v45 = vsub.s32 0, %v3403_v52  ;;  %v8982_v41 = vsel %vm3384_vm9, %v3393_v0, %v3392_v15  ;;  %vm3495_vm14 = vcmp.ne.s32.totalorder %v8972_v54, 0  ;;  %vm3507_vm12 = vcmp.lt.s32.totalorder %v8972_v54, 0  ;;  %vm9029_vm9 = vmand %vm3513_vm13, %vm3501_vm5 }
 0x446   : >> { %v8951_v4 = vpop.f32.mrf.mxu0  ;;  %v3481_v35 = vsub.s32 0, %v3480_v27  ;;  %vm3502_vm4 = vcmp.ne.s32.totalorder %v8976_v40, 0  ;;  %v9004_v0 = vsel %vm3461_vm15, %v3470_v14, %v3469_v29  ;;  %vm3406_vm1 = vcmp.lt.s32.totalorder %v8792_v36, 0  ;;  %vm9047_vm5 = vmand %vm3507_vm12, %vm3495_vm14 }
 0x447   : >> { %v8955_v47 = vpop.f32.mrf.mxu1  ;;  %vm3514_vm8 = vcmp.lt.s32.totalorder %v8976_v40, 0  ;;  %vm3496_vm7 = vcmp.ne.s32.totalorder %v8982_v41, 0  ;;  %v9021_v29 = vsel %vm3395_vm3, %v3404_v45, %v3403_v52  ;;  %vm3508_vm2 = vcmp.lt.s32.totalorder %v8982_v41, 0 }
 0x448   : >> { %10262 = vst [vmem:[#allocation31_spill] sm:$0xff] %v8955_v47  ;;  %v8960_v19 = vpop.f32.mrf.mxu0  ;;  %v9036_v31 = vsel %vm3472_vm11, %v3481_v35, %v3480_v27  ;;  %v3425_v52 = vsub.s32 %v8902_v7, %v3424_v44  ;;  %vm3503_vm15 = vcmp.ne.s32.totalorder %v9004_v0, 0  ;;  %vm3515_vm3 = vcmp.lt.s32.totalorder %v9004_v0, 0  ;;  %vm9067_vm13 = vmand %vm3514_vm8, %vm3502_vm4 }
 0x449   : >> { %10263 = vst [vmem:[#allocation32_spill] sm:$0xff] %v8960_v19  ;;  %v8966_v23 = vpop.f32.mrf.mxu1  ;;  %v9055_v27 = vsel %vm3406_vm1, %v3415_v59, %v3414_v43  ;;  %v3530_v7 = vadd.s32 18, %v8946_v26  ;;  %v9061_v35 = vadd.s32 18, %v8948_v16  ;;  %vm3497_vm14 = vcmp.ne.s32.totalorder %v9021_v29, 0  ;;  %vm9082_vm12 = vmand %vm3508_vm2, %vm3496_vm7 }
 0x44a   : >> { %10264 = vst [vmem:[#allocation33_spill] sm:$0xff] %v8966_v23  ;;  %v8974_v34 = vpop.f32.mrf.mxu0  ;;  %vm3509_vm11 = vcmp.lt.s32.totalorder %v9021_v29, 0  ;;  %v9076_v59 = vadd.s32 18, %v8972_v54  ;;  %vm3504_vm4 = vcmp.ne.s32.totalorder %v9036_v31, 0  ;;  %vm3516_vm1 = vcmp.lt.s32.totalorder %v9036_v31, 0  ;;  %vm9101_vm8 = vmand %vm3515_vm3, %vm3503_vm15 }
 0x44b   : >> { %10265 = vst [vmem:[#allocation34_spill] sm:$0xff] %v8974_v34  ;;  %v8980_v63 = vpop.f32.mrf.mxu1  ;;  %vm3498_vm7 = vcmp.ne.s32.totalorder %v9055_v27, 0  ;;  %vm3510_vm2 = vcmp.lt.s32.totalorder %v9055_v27, 0  ;;  %v3426_v11 = vsub.s32 0, %v3425_v52  ;;  %vm3417_vm15 = vcmp.lt.s32.totalorder %v8850_v32, 0  ;;  %vm9133_vm3 = vmand %vm3516_vm1, %vm3504_vm4 }
 0x44c   : >> { %10266 = vst [vmem:[#allocation35_spill] sm:$0xff] %v8980_v63  ;;  %v8985_v8 = vpop.f32.mrf.mxu0  ;;  %v9138_v63 = vadd.s32 18, %v9036_v31  ;;  %v9141_v1 = vadd.s32 18, %v9055_v27  ;;  %vm9154_vm4 = vmand %vm3510_vm2, %vm3498_vm7  ;;  %v3542_v23 = vsel %vm9013_vm6, %v3530_v7, %v8946_v26  ;;  %v3543_v20 = vsel %vm9047_vm5, %v9076_v59, %v8972_v54 }
 0x44d   : >> { %10267 = vst [vmem:[#allocation36_spill] sm:$0xff] %v8985_v8  ;;  %v8990_v56 = vpop.f32.mrf.mxu1  ;;  %v9124_v8 = vadd.s32 18, %v9021_v29  ;;  %v9166_v47 = vsel %vm3417_vm15, %v3426_v11, %v3425_v52  ;;  %v10299_v49 = vmov 0  ;;  %v6120_v52 = vadd.f32 %v8942_v12, %v8936_v9 }
 0x44e   : >> { %10268 = vst [vmem:[#allocation37_spill] sm:$0xff] %v8990_v56  ;;  %v9007_v15 = vpop.f32.mrf.mxu0  ;;  %vm9219_vm5 = vcmp.lt.s32.totalorder %v3542_v23, 16  ;;  %vm3499_vm1 = vcmp.ne.s32.totalorder %v9166_v47, 0  ;;  %vm3511_vm7 = vcmp.lt.s32.totalorder %v9166_v47, 0  ;;  %v6102_v59 = vadd.f32 %v8775_v6, %v8759_v50 }
 0x44f   : >> { %10271 = vst [vmem:[#allocation38_spill] sm:$0xff] %v9007_v15  ;;  %v9023_v51 = vpop.f32.mrf.mxu1  ;;  %v6050_v9 = vadd.f32 %v8804_v3, %v8785_v24  ;;  %v6105_v23 = vadd.f32 %v8821_v46, %v8794_v5  ;;  %v6108_v50 = vadd.f32 %v8858_v33, %v8840_v10  ;;  %v6056_v6 = vadd.f32 %v8865_v38, %v8852_v55  ;;  %v10305_v5 = vld [vmem:[#allocation26_spill] sm:$0xff] }
 0x450   : >> { %10274 = vst [vmem:[#allocation39_spill] sm:$0xff] %v9023_v51  ;;  %v9040_v45 = vpop.f32.mrf.mxu0  ;;  %v6111_v3 = vadd.f32 %v8888_v18, %v8874_v13  ;;  %v6114_v51 = vadd.f32 %v8907_v61, %v8898_v30  ;;  %v6062_v46 = vadd.f32 %v8912_v37, %v10305_v5  ;;  %v10310_v30 = vld [vmem:[#allocation31_spill] sm:$0xff]  ;;  %v10312_v37 = vld [vmem:[#allocation32_spill] sm:$0xff]  ;;  %v10363_v56 = vsel %vm9154_vm4, %v9141_v1, %v9055_v27 }
 0x451   : >> { %10277 = vst [vmem:[#allocation40_spill] sm:$0xff] %v9040_v45  ;;  %v9057_v44 = vpop.f32.mrf.mxu1  ;;  %v9090_v45 = vsel %vm3483_vm10, %v3492_v2, %v3491_v22  ;;  %v9110_v2 = vadd.s32 18, %v8982_v41  ;;  %vm9119_vm10 = vmand %vm3509_vm11, %vm3497_vm14  ;;  %v10311_v55 = vld [vmem:[#allocation33_spill] sm:$0xff]  ;;  %v2951_v5 = vadd.f32 %v6102_v59, %v6050_v9 }
 0x452   : >> { %10280 = vst [vmem:[#allocation41_spill] sm:$0xff] %v9057_v44  ;;  %v9073_v43 = vpop.f32.mrf.mxu0  ;;  %10286 = vst [vmem:[#allocation43_spill] sm:$0xff] %v9090_v45  ;;  %v9095_v44 = vadd.s32 18, %v8976_v40  ;;  %vm3505_vm14 = vcmp.ne.s32.totalorder %v9090_v45, 0  ;;  %vm3517_vm11 = vcmp.lt.s32.totalorder %v9090_v45, 0  ;;  %v6123_v33 = vadd.f32 %v10311_v55, %v10310_v30  ;;  %v10313_v38 = vld [vmem:[#allocation34_spill] sm:$0xff] }
 0x453   : >> { %10283 = vst [vmem:[#allocation42_spill] sm:$0xff] %v9073_v43  ;;  %v9092_v43 = vpop.f32.mrf.mxu1  ;;  %v6071_v13 = vadd.f32 %v10313_v38, %v10312_v37  ;;  %v9282_v30 = vld [vmem:[%s10001_s6] ss:$0 sm:$0xff]  ;;  %v2959_v55 = vadd.f32 %v6108_v50, %v6056_v6  ;;  %v10322_v9 = vld [vmem:[#allocation29_spill] sm:$0xff]  ;;  %v10326_v50 = vld [vmem:[#allocation28_spill] sm:$0xff]  ;;  %v10349_v28 = vsel %vm9119_vm10, %v9124_v8, %v9021_v29 }
 0x454   : >> { %10287 = vst [vmem:[#allocation44_spill] sm:$0xff] %v9092_v43  ;;  %v9107_v22 = vpop.f32.mrf.mxu0  ;;  %v9113_v43 = vadd.s32 18, %v9004_v0  ;;  %v3550_v26 = vsel %vm9067_vm13, %v9095_v44, %v8976_v40  ;;  %v6068_v44 = vadd.f32 %v8951_v4, %v8939_v39  ;;  %v9235_v4 = vadd.s32 18, %v9166_v47  ;;  %v10317_v40 = vld [vmem:[#allocation35_spill] sm:$0xff]  ;;  %v10319_v11 = vld [vmem:[#allocation36_spill] sm:$0xff]  ;;  %v10327_v6 = vld [vmem:[#allocation30_spill] sm:$0xff] }
 0x455   : >> { %10290 = vst [vmem:[#allocation45_spill] sm:$0xff] %v9107_v22  ;;  %v9127_v22 = vpop.f32.mrf.mxu1  ;;  %v6059_v39 = vadd.f32 %v8891_v21, %v8881_v17  ;;  %v10318_v54 = vld [vmem:[#allocation37_spill] sm:$0xff] }
 0x456   : >> { %10293 = vst [vmem:[#allocation46_spill] sm:$0xff] %v9127_v22  ;;  %v9145_v32 = vpop.f32.mrf.mxu0  ;;  %v3548_v22 = vsel %vm8996_vm0, %v3536_v57, %v8924_v42  ;;  %v3549_v42 = vsel %vm9029_vm9, %v9061_v35, %v8948_v16  ;;  %vm9186_vm0 = vmand %vm3517_vm11, %vm3505_vm14  ;;  %vm3572_vm9 = vcmp.lt.s32.totalorder %v8736_v62, 288  ;;  %v2975_v21 = vadd.f32 %v6120_v52, %v6068_v44  ;;  %v10320_v52 = vld [vmem:[#allocation38_spill] sm:$0xff] }
 0x457   : >> { %10296 = vst [vmem:[#allocation47_spill] sm:$0xff] %v9145_v32  ;;  %v9158_v19 = vpop.f32.mrf.mxu1  ;;  %v9164_v32 = vadd.s32 18, %v9090_v45  ;;  %v10300_v49 = vsel %vm9186_vm0, 4294967295, %v10299_v49  ;;  %vm9192_vm6 = vcmp.lt.s32.totalorder %v3548_v22, 16  ;;  %v6053_v22 = vadd.f32 %v8830_v53, %v8817_v48  ;;  %vm9262_vm14 = vmand %vm3511_vm7, %vm3499_vm1 }
 0x458   : >> { %v9168_v57 = vpop.f32.mrf.mxu0  ;;  %vm9253_vm2 = vcmp.lt.s32.totalorder %v3549_v42, 16  ;;  %vm9270_vm11 = vcmp.lt.s32.totalorder %v3543_v20, 16  ;;  %v10316_v42 = vld [vmem:[#allocation17_spill] sm:$0xff]  ;;  %v6126_v25 = vadd.f32 %v10318_v54, %v10317_v40  ;;  %v6074_v44 = vadd.f32 %v10320_v52, %v10319_v11  ;;  %v10321_v11 = vld [vmem:[#allocation27_spill] sm:$0xff] }
 0x459   : >> { %v9190_v16 = vpop.f32.mrf.mxu1  ;;  %v2954_v20 = vadd.f32 %v6105_v23, %v6053_v22  ;;  %v3547_v59 = vsel %vm9262_vm14, %v9235_v4, %v9166_v47  ;;  %v9288_v54 = vadd.f32 %v6111_v3, %v6059_v39  ;;  %v9290_v40 = vadd.f32 %v6114_v51, %v6062_v46  ;;  %v10325_v22 = vld [vmem:[#allocation18_spill] sm:$0xff] }
 0x45a   : >> { %v9217_v7 = vpop.f32.mrf.mxu0  ;;  %v9294_v52 = vadd.f32 %v10322_v9, %v10321_v11  ;;  %vm9296_vm1 = vcmp.lt.s32.totalorder %v3550_v26, 16  ;;  %v2978_v39 = vadd.f32 %v6123_v33, %v6071_v13  ;;  %v10333_v11 = vld [vmem:[#allocation41_spill] sm:$0xff]  ;;  %vm10340_vm14 = vcmp.lt.s32.totalorder %v8740_v58, 288 }
 0x45b   : >> { %v6170_v12 = vpop.f32.mrf.mxu1  ;;  %vm9335_vm0 = vmand %vm9219_vm5, %vm10340_vm14 }
 0x45c   : >> { %v6152_v24 = vpop.f32.mrf.mxu0  ;;  %v10347_v58 = vld [vmem:[#allocation45_spill] sm:$0xff] }
 0x45d   : >> { %v6171_v48 = vpop.f32.mrf.mxu1 }
 0x45e   : >> { %v6172_v17 = vadd.f32 %v6171_v48, %v6170_v12  ;;  %v6153_v18 = vpop.f32.mrf.mxu0  ;;  %v10348_v35 = vld [vmem:[#allocation47_spill] sm:$0xff] }
 0x45f   : >> { %v6154_v12 = vadd.f32 %v6153_v18, %v6152_v24  ;;  %v6173_v48 = vpop.f32.mrf.mxu1  ;;  %v10331_v18 = vld [vmem:[#allocation19_spill] sm:$0xff] }
 0x460   : >> { %v3275_v37 = vadd.f32 %v6172_v17, %v2975_v21  ;;  %v6155_v38 = vpop.f32.mrf.mxu0  ;;  %v9303_v21 = vadd.f32 %v10327_v6, %v10326_v50  ;;  %v10328_v17 = vsel %vm9082_vm12, %v9110_v2, %v8982_v41  ;;  %vm9325_vm12 = vmand %vm9192_vm6, %vm3572_vm9  ;;  %v10339_v6 = vld [vmem:[#allocation46_spill] sm:$0xff] }
 0x461   : >> { %v3269_v45 = vadd.f32 %v6154_v12, %v2951_v5  ;;  %v6174_v24 = vpop.f32.mrf.mxu1  ;;  %vm9311_vm15 = vcmp.lt.s32.totalorder %v10328_v17, 16  ;;  %v2983_v5 = vadd.f32 %v6126_v25, %v6074_v44  ;;  %v10332_v12 = vld [vmem:[#allocation39_spill] sm:$0xff]  ;;  %v10338_v44 = vld [vmem:[#allocation44_spill] sm:$0xff] }
 0x462   : >> { %v3294_v51 = vadd.f32 %v9282_v30, %v3275_v37  ;;  %v6175_v3 = vadd.f32 %v6174_v24, %v6173_v48  ;;  %v6156_v46 = vpop.f32.mrf.mxu0  ;;  %v6129_v9 = vadd.f32 %v10333_v11, %v10332_v12  ;;  %v10334_v37 = vld [vmem:[#allocation40_spill] sm:$0xff]  ;;  %v10335_v24 = vld [vmem:[#allocation42_spill] sm:$0xff]  ;;  %v6080_v12 = vadd.f32 %v10348_v35, %v10347_v58 }
 0x463   : >> { %v3288_v33 = vadd.f32 %v9282_v30, %v3269_v45  ;;  %v6157_v13 = vadd.f32 %v6156_v46, %v6155_v38  ;;  %v6176_v48 = vpop.f32.mrf.mxu1  ;;  %v6077_v36 = vadd.f32 %v10335_v24, %v10334_v37  ;;  %v6132_v45 = vadd.f32 %v10339_v6, %v10338_v44  ;;  %v10346_v17 = vld [vmem:[#allocation20_spill] sm:$0xff] }
 0x464   : >> { %vm3306_vm13 = vcmp.ge.f32.partialorder %v3294_v51, 0.0  ;;  %v3318_v50 = vmul.f32 0.2, %v3294_v51  ;;  %v3276_v2 = vadd.f32 %v6175_v3, %v2978_v39  ;;  %v6158_v25 = vpop.f32.mrf.mxu0  ;;  %v10343_v39 = vsel %vm9101_vm8, %v9113_v43, %v9004_v0  ;;  %v10352_v43 = vld [vmem:[#allocation21_spill] sm:$0xff] }
 0x465   : >> { %vm3300_vm7 = vcmp.ge.f32.partialorder %v3288_v33, 0.0  ;;  %v3312_v38 = vmul.f32 0.2, %v3288_v33  ;;  %v3270_v62 = vadd.f32 %v6157_v13, %v2954_v20  ;;  %v6177_v14 = vpop.f32.mrf.mxu1  ;;  %vm9344_vm6 = vcmp.lt.s32.totalorder %v10343_v39, 16 }
 0x466   : >> { %vm3575_vm9 = vcmp.lt.s32.totalorder %v10346_v17, 288  ;;  %v3330_v11 = vsel %vm3306_vm13, %v3294_v51, %v3318_v50  ;;  %v3295_v37 = vadd.f32 %v9282_v30, %v3276_v2  ;;  %v6178_v20 = vadd.f32 %v6177_v14, %v6176_v48  ;;  %v6159_v13 = vpop.f32.mrf.mxu0 }
 0x467   : >> { %vm9357_vm8 = vcmp.lt.s32.totalorder %v10349_v28, 16  ;;  %vm3569_vm5 = vcmp.lt.s32.totalorder %v10352_v43, 288  ;;  %v3620_v24 = vsel %vm9325_vm12, %v3330_v11, 0.0  ;;  %v3324_v44 = vsel %vm3300_vm7, %v3288_v33, %v3312_v38  ;;  %v6179_v48 = vpop.f32.mrf.mxu1 }
 0x468   : >> { %v3289_v51 = vadd.f32 %v9282_v30, %v3270_v62  ;;  %v6160_v50 = vadd.f32 %v6159_v13, %v6158_v25  ;;  %5595 = vst [vmem:[%s9366_s17 + $0x48] sm:$0xff] %v3620_v24  ;;  %v3614_v8 = vsel %vm9335_vm0, %v3324_v44, 0.0  ;;  %vm3307_vm10 = vcmp.ge.f32.partialorder %v3295_v37, 0.0  ;;  %v6161_v41 = vpop.f32.mrf.mxu0  ;;  %v10373_v13 = vld [vmem:[#allocation24_spill] sm:$0xff] }
 0x469   : >> { %v3319_v15 = vmul.f32 0.2, %v3295_v37  ;;  %vm10353_vm13 = vcmp.lt.s32.totalorder %v8743_v60, 288  ;;  %v3277_v33 = vadd.f32 %v6178_v20, %v2983_v5  ;;  %v2986_v2 = vadd.f32 %v6129_v9, %v6077_v36  ;;  %5589 = vst [vmem:[%s9366_s17 + $0x18] sm:$0xff] %v3614_v8  ;;  %v6180_v53 = vpop.f32.mrf.mxu1  ;;  %v10362_v36 = vld [vmem:[#allocation22_spill] sm:$0xff] }
 0x46a   : >> { %vm9375_vm14 = vmand %vm9253_vm2, %vm10353_vm13  ;;  %vm3301_vm7 = vcmp.ge.f32.partialorder %v3289_v51, 0.0  ;;  %v3313_v25 = vmul.f32 0.2, %v3289_v51  ;;  %vm10356_vm12 = vcmp.lt.s32.totalorder %v10316_v42, 288  ;;  %v3271_v60 = vadd.f32 %v6160_v50, %v2959_v55  ;;  %v6162_v62 = vpop.f32.mrf.mxu0 }
 0x46b   : >> { %vm9384_vm0 = vmand %vm9270_vm11, %vm10356_vm12  ;;  %v10359_v5 = vsel %vm9133_vm3, %v9138_v63, %v9036_v31  ;;  %vm3576_vm13 = vcmp.lt.s32.totalorder %v10362_v36, 288  ;;  %v2991_v42 = vadd.f32 %v6132_v45, %v6080_v12  ;;  %v3331_v61 = vsel %vm3307_vm10, %v3295_v37, %v3319_v15  ;;  %v10366_v63 = vld [vmem:[#allocation23_spill] sm:$0xff]  ;;  %v6182_v58 = vpop.f32.mrf.mxu1  ;;  %v10384_v31 = vld [vmem:[#allocation25_spill] sm:$0xff] }
 0x46c   : >> { %vm9393_vm2 = vcmp.lt.s32.totalorder %v10359_v5, 16  ;;  %v3296_v38 = vadd.f32 %v9282_v30, %v3277_v33  ;;  %v6181_v46 = vadd.f32 %v6180_v53, %v6179_v48  ;;  %vm9404_vm11 = vcmp.lt.s32.totalorder %v10363_v56, 16  ;;  %v6164_v12 = vpop.f32.mrf.mxu0  ;;  %v10381_v36 = vld [vmem:[#allocation43_spill] sm:$0xff] }
 0x46d   : >> { %vm3570_vm3 = vcmp.lt.s32.totalorder %v10366_v63, 288  ;;  %v3621_v55 = vsel %vm9375_vm14, %v3331_v61, 0.0  ;;  %v3325_v45 = vsel %vm3301_vm7, %v3289_v51, %v3313_v25  ;;  %v3290_v14 = vadd.f32 %v9282_v30, %v3271_v60  ;;  %v6183_v20 = vpop.f32.mrf.mxu1 }
 0x46e   : >> { %v6163_v39 = vadd.f32 %v6162_v62, %v6161_v41  ;;  %5596 = vst [vmem:[%s9366_s17 + $0x50] sm:$0xff] %v3621_v55  ;;  %v3615_v34 = vsel %vm9384_vm0, %v3325_v45, 0.0  ;;  %vm3308_vm4 = vcmp.ge.f32.partialorder %v3296_v38, 0.0  ;;  %v3320_v1 = vmul.f32 0.2, %v3296_v38 }
 0x46f   : >> { %vm10367_vm10 = vcmp.lt.s32.totalorder %v10325_v22, 288  ;;  %v3278_v35 = vadd.f32 %v6181_v46, %v2986_v2  ;;  %v6135_v11 = vadd.f32 %v9190_v16, %v9158_v19  ;;  %5590 = vst [vmem:[%s9366_s17 + $0x20] sm:$0xff] %v3615_v34  ;;  %vm3302_vm14 = vcmp.ge.f32.partialorder %v3290_v14, 0.0 }
 0x470   : >> { %vm9419_vm12 = vmand %vm9296_vm1, %vm10367_vm10  ;;  %v3314_v37 = vmul.f32 0.2, %v3290_v14  ;;  %vm10370_vm7 = vcmp.lt.s32.totalorder %v10331_v18, 288  ;;  %v3272_v23 = vadd.f32 %v6163_v39, %v9288_v54  ;;  %vm3577_vm1 = vcmp.lt.s32.totalorder %v10373_v13, 288  ;;  %v6165_v18 = vpop.f32.mrf.mxu0  ;;  %v6185_v54 = vpop.f32.mrf.mxu1 }
 0x471   : >> { %vm9430_vm0 = vmand %vm9311_vm15, %vm10370_vm7  ;;  %v6083_v19 = vadd.f32 %v9217_v7, %v9168_v57  ;;  %v3332_v16 = vsel %vm3308_vm4, %v3296_v38, %v3320_v1  ;;  %v3297_v28 = vadd.f32 %v9282_v30, %v3278_v35  ;;  %v6184_v24 = vadd.f32 %v6183_v20, %v6182_v58 }
 0x472   : >> { %v3622_v26 = vsel %vm9419_vm12, %v3332_v16, 0.0  ;;  %v3326_v44 = vsel %vm3302_vm14, %v3290_v14, %v3314_v37  ;;  %v3291_v51 = vadd.f32 %v9282_v30, %v3272_v23  ;;  %v6166_v50 = vadd.f32 %v6165_v18, %v6164_v12  ;;  %vm9449_vm4 = vmand %vm9344_vm6, %vm3575_vm9  ;;  %v6167_v15 = vpop.f32.mrf.mxu0  ;;  %v6186_v41 = vpop.f32.mrf.mxu1 }
 0x473   : >> { %5597 = vst [vmem:[%s9366_s17 + $0x58] sm:$0xff] %v3622_v26  ;;  %v3616_v48 = vsel %vm9430_vm0, %v3326_v44, 0.0  ;;  %vm3309_vm15 = vcmp.ge.f32.partialorder %v3297_v28, 0.0  ;;  %v3321_v57 = vmul.f32 0.2, %v3297_v28  ;;  %v3279_v8 = vadd.f32 %v6184_v24, %v2991_v42  ;;  %vm9460_vm12 = vmand %vm9357_vm8, %vm3569_vm5 }
 0x474   : >> { %v2970_v29 = vadd.f32 %v9294_v52, %v9303_v21  ;;  %5591 = vst [vmem:[%s9366_s17 + $0x28] sm:$0xff] %v3616_v48  ;;  %vm3303_vm10 = vcmp.ge.f32.partialorder %v3291_v51, 0.0  ;;  %v3315_v33 = vmul.f32 0.2, %v3291_v51  ;;  %v3273_v3 = vadd.f32 %v6166_v50, %v9290_v40  ;;  %v6168_v6 = vpop.f32.mrf.mxu0  ;;  %vm3588_vm9 = vmand %vm9393_vm2, %vm3576_vm13 }
 0x475   : >> { %v2994_v2 = vadd.f32 %v6135_v11, %v6083_v19  ;;  %v3333_v25 = vsel %vm3309_vm15, %v3297_v28, %v3321_v57  ;;  %v3298_v52 = vadd.f32 %v9282_v30, %v3279_v8  ;;  %v6187_v21 = vadd.f32 %v6186_v41, %v6185_v54  ;;  %vm9481_vm5 = vmand %vm9404_vm11, %vm3570_vm3 }
 0x476   : >> { %v3623_v60 = vsel %vm9449_vm4, %v3333_v25, 0.0  ;;  %v3327_v43 = vsel %vm3303_vm10, %v3291_v51, %v3315_v33  ;;  %v3292_v0 = vadd.f32 %v9282_v30, %v3273_v3  ;;  %v6169_v53 = vadd.f32 %v6168_v6, %v6167_v15 }
 0x477   : >> { %5598 = vst [vmem:[%s9366_s17 + $0x60] sm:$0xff] %v3623_v60  ;;  %v3617_v5 = vsel %vm9460_vm12, %v3327_v43, 0.0  ;;  %vm3310_vm6 = vcmp.ge.f32.partialorder %v3298_v52, 0.0  ;;  %v3322_v40 = vmul.f32 0.2, %v3298_v52  ;;  %v3280_v42 = vadd.f32 %v6187_v21, %v2994_v2 }
 0x478   : >> { %5592 = vst [vmem:[%s9366_s17 + $0x30] sm:$0xff] %v3617_v5  ;;  %vm3304_vm8 = vcmp.ge.f32.partialorder %v3292_v0, 0.0  ;;  %v3316_v61 = vmul.f32 0.2, %v3292_v0  ;;  %vm10380_vm14 = vnez %v10300_v49  ;;  %v3274_v46 = vadd.f32 %v6169_v53, %v2970_v29 }
 0x479   : >> { %v10382_v9 = vsel %vm10380_vm14, %v9164_v32, %v10381_v36  ;;  %v3334_v62 = vsel %vm3310_vm6, %v3298_v52, %v3322_v40  ;;  %v3299_v56 = vadd.f32 %v9282_v30, %v3280_v42  ;;  %vm3559_vm13 = vcmp.lt.s32.totalorder %v3547_v59, 16 }
 0x47a   : >> { %vm3565_vm7 = vcmp.lt.s32.totalorder %v10382_v9, 16  ;;  %vm3571_vm11 = vcmp.lt.s32.totalorder %v10384_v31, 288  ;;  %v3624_v63 = vsel %vm3588_vm9, %v3334_v62, 0.0  ;;  %v3328_v55 = vsel %vm3304_vm8, %v3292_v0, %v3316_v61 }
 0x47b   : >> { %v3293_v49 = vadd.f32 %v9282_v30, %v3274_v46  ;;  %5599 = vst [vmem:[%s9366_s17 + $0x68] sm:$0xff] %v3624_v63  ;;  %v3618_v32 = vsel %vm9481_vm5, %v3328_v55, 0.0  ;;  %vm3311_vm3 = vcmp.ge.f32.partialorder %v3299_v56, 0.0  ;;  %v3323_v45 = vmul.f32 0.2, %v3299_v56  ;;  %vm3589_vm0 = vmand %vm3565_vm7, %vm3577_vm1 }
 0x47c   : >> { %5593 = vst [vmem:[%s9366_s17 + $0x38] sm:$0xff] %v3618_v32  ;;  %vm3583_vm4 = vmand %vm3559_vm13, %vm3571_vm11 }
 0x47d   : >> { %vm3305_vm15 = vcmp.ge.f32.partialorder %v3293_v49, 0.0  ;;  %v3317_v47 = vmul.f32 0.2, %v3293_v49  ;;  %v3335_v4 = vsel %vm3311_vm3, %v3299_v56, %v3323_v45  ;;  %2247 = sbr.rel (!%p2245_p6) target bundleno = 746 (0x2ea), region = 175 }
 0x47e   : >> { %v3625_v10 = vsel %vm3589_vm0, %v3335_v4, 0.0 }
 0x47f   : >> { %v3329_v59 = vsel %vm3305_vm15, %v3293_v49, %v3317_v47  ;;  %5600 = vst [vmem:[%s9366_s17 + $0x70] sm:$0xff] %v3625_v10 }
 0x480   : >> { %v3619_v14 = vsel %vm3583_vm4, %v3329_v59, 0.0 }
 0x481   : >> { %5594 = vst [vmem:[%s9366_s17 + $0x40] sm:$0xff] %v3619_v14 }
 0x482 LB: >> { %v6708_v30 = vld [vmem:[%s10002_s7 + $0xf8] sm:$0xff]   ;;  %v6712_v1 = vld [vmem:[%s10002_s7 + $0xf0] sm:$0xff]   ;;  %v6716_v11 = vld [vmem:[%s10002_s7 + $0xe8] sm:$0xff]   ;;  %s3645_s12 = smul.u32 96, %s6826_s15  ;;  %s3644_s15 = sadd.s32 1, %s6826_s15   ;;  %s6826_s15 = sphi %s9509_s15, %s3644_s15  }
 0x483   : >> { %v6709_v39 = vld [vmem:[%s10002_s7 + $0x78] sm:$0xff]   ;;  %6188 = vmatprep.subr.bf16.mxu0 %v6708_v30  ;;  %v6713_v27 = vld [vmem:[%s10002_s7 + $0x70] sm:$0xff]   ;;  %v6717_v37 = vld [vmem:[%s10002_s7 + $0x68] sm:$0xff]   ;;  %p3641_p7 = scmp.ge.s32.totalorder %s3644_s15, 3  }
 0x484   : >> { %v6710_v58 = vld [vmem:[%s10002_s7 + $0xb8] sm:$0xff]   ;;  %6240 = vmatprep.subr.bf16.mxu1 %v6709_v39  ;;  %v6714_v35 = vld [vmem:[%s10002_s7 + $0xb0] sm:$0xff]   ;;  %v6718_v22 = vld [vmem:[%s10002_s7 + $0xa8] sm:$0xff]   ;;  %s9613_s26 = scalar_lea.vmem [#allocation4], %s3645_s12  ;;  %s9933_s13 = scalar_lea.vmem %s7120_s19, %s3645_s12 }
 0x485   : >> { %v6711_v34 = vld [vmem:[%s10002_s7 + $0x38] sm:$0xff]   ;;  %6189 = vmatpush3.bf16.msra.mxu0 %v6710_v58  ;;  %v6715_v12 = vld [vmem:[%s10002_s7 + $0x30] sm:$0xff]   ;;  %v6719_v23 = vld [vmem:[%s10002_s7 + $0x28] sm:$0xff]  }
 0x486   : >> { %6241 = vmatpush3.bf16.msra.mxu1 %v6711_v34  ;;  %6190 = vmatprep.subr.bf16.mxu0 %v6712_v1  ;;  %v6720_v20 = vld [vmem:[%s10002_s7 + $0xe0] sm:$0xff]   ;;  %v6724_v28 = vld [vmem:[%s10002_s7 + $0xd8] sm:$0xff]   ;;  %v6728_v44 = vld [vmem:[%s10002_s7 + $0xd0] sm:$0xff]  }
 0x487   : >> { %6242 = vmatprep.subr.bf16.mxu1 %v6713_v27  ;;  %v6721_v13 = vld [vmem:[%s10002_s7 + $0x60] sm:$0xff]   ;;  %v6725_v24 = vld [vmem:[%s10002_s7 + $0x58] sm:$0xff]   ;;  %v6729_v51 = vld [vmem:[%s10002_s7 + $0x50] sm:$0xff]  }
 0x488   : >> { %v6722_v19 = vld [vmem:[%s10002_s7 + $0xa0] sm:$0xff]   ;;  %v6726_v18 = vld [vmem:[%s10002_s7 + $0x98] sm:$0xff]   ;;  %v6730_v50 = vld [vmem:[%s10002_s7 + $0x90] sm:$0xff]  }
 0x489   : >> { %6191 = vmatpush3.bf16.msra.mxu0 %v6714_v35  ;;  %v6723_v16 = vld [vmem:[%s10002_s7 + $0x20] sm:$0xff]   ;;  %v6727_v26 = vld [vmem:[%s10002_s7 + $0x18] sm:$0xff]   ;;  %v6731_v54 = vld [vmem:[%s10002_s7 + $0x10] sm:$0xff]  }
 0x48a   : >> { %6243 = vmatpush3.bf16.msra.mxu1 %v6715_v12  ;;  %6192 = vmatprep.subr.bf16.mxu0 %v6716_v11  ;;  %v6732_v48 = vld [vmem:[%s10002_s7 + $0xc8] sm:$0xff]   ;;  %v6736_v15 = vld [vmem:[%s10002_s7 + $0xc0] sm:$0xff]   ;;  %v5637_v3 = vld [vmem:[%s9613_s26 + $0x17] sm:$0xff] }
 0x48b   : >> { %6244 = vmatprep.subr.bf16.mxu1 %v6717_v37  ;;  %v6733_v57 = vld [vmem:[%s10002_s7 + $0x48] sm:$0xff]   ;;  %v6737_v29 = vld [vmem:[%s10002_s7 + $0x40] sm:$0xff]   ;;  %v6740_v40 = vld [vmem:[%s10002_s7 + $0x178] sm:$0xff]  }
 0x48c   : >> { %v6734_v7 = vld [vmem:[%s10002_s7 + $0x88] sm:$0xff]   ;;  %v6738_v33 = vld [vmem:[%s10002_s7 + $0x80] sm:$0xff]   ;;  %v6741_v42 = vld [vmem:[%s10002_s7 + $0x1f8] sm:$0xff]  }
 0x48d   : >> { %6193 = vmatpush3.bf16.msra.mxu0 %v6718_v22  ;;  %v6735_v8 = vld [vmem:[%s10002_s7 + $0x8] sm:$0xff]   ;;  %v6739_v17 = vld [vmem:[%s10002_s7] sm:$0xff]   ;;  %v6742_v61 = vld [vmem:[%s10002_s7 + $0x138] sm:$0xff]  }
 0x48e   : >> { %6245 = vmatpush3.bf16.msra.mxu1 %v6719_v23  ;;  %6194 = vmatprep.subr.bf16.mxu0 %v6720_v20  ;;  %v5638_v41 = vld [vmem:[%s9613_s26 + $0x1f] sm:$0xff]  ;;  %v5614_v52 = vld [vmem:[%s9613_s26 + $0xe] sm:$0xff]  ;;  %v5615_v56 = vld [vmem:[%s9613_s26 + $0x16] sm:$0xff] }
 0x48f   : >> { %6246 = vmatprep.subr.bf16.mxu1 %v6721_v13  ;;  %v5613_v2 = vld [vmem:[%s9613_s26 + $0x6] sm:$0xff]  ;;  %v3752_v25 = vpack.c.bf16 %v5638_v41, %v5637_v3  ;;  %v5626_v6 = vld [vmem:[%s9613_s26 + $0xf] sm:$0xff]  ;;  %v6743_v38 = vld [vmem:[%s10002_s7 + $0x1b8] sm:$0xff]  }
 0x490   : >> { %v5625_v21 = vld [vmem:[%s9613_s26 + $0x7] sm:$0xff]  ;;  %v3680_v60 = vpack.c.bf16 %v5614_v52, %v5613_v2  ;;  %v6744_v36 = vld [vmem:[%s10002_s7 + $0x170] sm:$0xff]   ;;  %v5616_v31 = vld [vmem:[%s9613_s26 + $0x1e] sm:$0xff] }
 0x491   : >> { %6195 = vmatpush3.bf16.msra.mxu0 %v6722_v19  ;;  %v3732_v43 = vpack.c.bf16 %v5626_v6, %v5625_v21  ;;  %v5601_v0 = vld [vmem:[%s9613_s26 + $0x5] sm:$0xff]  ;;  %v5602_v53 = vld [vmem:[%s9613_s26 + $0xd] sm:$0xff]  ;;  %3919 = vmatprep.mubr.bf16.mxu0 %v3752_v25  ;;  %v3681_v55 = vpack.c.bf16 %v5616_v31, %v5615_v56  ;;  %v5603_v45 = vld [vmem:[%s9613_s26 + $0x15] sm:$0xff] }
 0x492   : >> { %6247 = vmatpush3.bf16.msra.mxu1 %v6723_v16  ;;  %6196 = vmatprep.subr.bf16.mxu0 %v6724_v28  ;;  %v3660_v5 = vpack.c.bf16 %v5602_v53, %v5601_v0  ;;  %v6745_v9 = vld [vmem:[%s10002_s7 + $0x1f0] sm:$0xff]   ;;  %v5639_v46 = vld [vmem:[%s9613_s26 + $0x27] sm:$0xff]  ;;  %v5604_v47 = vld [vmem:[%s9613_s26 + $0x1d] sm:$0xff] }
 0x493   : >> { %6248 = vmatprep.subr.bf16.mxu1 %v6725_v24  ;;  %4096 = vmatprep.mubr.bf16.mxu1 %v3680_v60  ;;  %v5640_v62 = vld [vmem:[%s9613_s26 + $0x2f] sm:$0xff]  ;;  %v3661_v4 = vpack.c.bf16 %v5604_v47, %v5603_v45  ;;  %v5641_v39 = vld [vmem:[%s9613_s26 + $0x37] sm:$0xff]  ;;  %v5642_v58 = vld [vmem:[%s9613_s26 + $0x3f] sm:$0xff] }
 0x494   : >> { %v3753_v63 = vpack.c.bf16 %v5640_v62, %v5639_v46  ;;  %v6746_v49 = vld [vmem:[%s10002_s7 + $0x130] sm:$0xff]   ;;  %v6748_v10 = vld [vmem:[%s10002_s7 + $0x168] sm:$0xff]   ;;  %v3754_v27 = vpack.c.bf16 %v5642_v58, %v5641_v39  ;;  %v6752_v22 = vld [vmem:[%s10002_s7 + $0x160] sm:$0xff]  }
 0x495   : >> { %6197 = vmatpush3.bf16.msra.mxu0 %v6726_v18  ;;  %v6747_v32 = vld [vmem:[%s10002_s7 + $0x1b0] sm:$0xff]   ;;  %v6749_v59 = vld [vmem:[%s10002_s7 + $0x1e8] sm:$0xff]   ;;  %v6753_v23 = vld [vmem:[%s10002_s7 + $0x1e0] sm:$0xff]  }
 0x496   : >> { %6249 = vmatpush3.bf16.msra.mxu1 %v6727_v26  ;;  %6198 = vmatprep.subr.bf16.mxu0 %v6728_v44  ;;  %v6750_v14 = vld [vmem:[%s10002_s7 + $0x128] sm:$0xff]   ;;  %v6754_v20 = vld [vmem:[%s10002_s7 + $0x120] sm:$0xff]   ;;  %v5619_v28 = vld [vmem:[%s9613_s26 + $0x36] sm:$0xff] }
 0x497   : >> { %6250 = vmatprep.subr.bf16.mxu1 %v6729_v51  ;;  %v6751_v30 = vld [vmem:[%s10002_s7 + $0x1a8] sm:$0xff]   ;;  %v6755_v13 = vld [vmem:[%s10002_s7 + $0x1a0] sm:$0xff]   ;;  %v5607_v44 = vld [vmem:[%s9613_s26 + $0x35] sm:$0xff] }
 0x498   : >> { %v5617_v34 = vld [vmem:[%s9613_s26 + $0x26] sm:$0xff]  ;;  %v5618_v1 = vld [vmem:[%s9613_s26 + $0x2e] sm:$0xff]  ;;  %v5620_v24 = vld [vmem:[%s9613_s26 + $0x3e] sm:$0xff] }
 0x499   : >> { %6199 = vmatpush3.bf16.msra.mxu0 %v6730_v50  ;;  %v3682_v35 = vpack.c.bf16 %v5618_v1, %v5617_v34  ;;  %v5605_v12 = vld [vmem:[%s9613_s26 + $0x25] sm:$0xff]  ;;  %v5606_v11 = vld [vmem:[%s9613_s26 + $0x2d] sm:$0xff]  ;;  %v3683_v26 = vpack.c.bf16 %v5620_v24, %v5619_v28  ;;  %v5608_v51 = vld [vmem:[%s9613_s26 + $0x3d] sm:$0xff] }
 0x49a   : >> { %6251 = vmatpush3.bf16.msra.mxu1 %v6731_v54  ;;  %6200 = vmatprep.subr.bf16.mxu0 %v6732_v48  ;;  %v3662_v37 = vpack.c.bf16 %v5606_v11, %v5605_v12  ;;  %v5643_v19 = vld [vmem:[%s9613_s26 + $0x47] sm:$0xff]  ;;  %v5644_v16 = vld [vmem:[%s9613_s26 + $0x4f] sm:$0xff]  ;;  %v6756_v50 = vld [vmem:[%s10002_s7 + $0x158] sm:$0xff]   ;;  %v3663_v48 = vpack.c.bf16 %v5608_v51, %v5607_v44 }
 0x49b   : >> { %6252 = vmatprep.subr.bf16.mxu1 %v6733_v57  ;;  %v3755_v18 = vpack.c.bf16 %v5644_v16, %v5643_v19  ;;  %v6757_v54 = vld [vmem:[%s10002_s7 + $0x1d8] sm:$0xff]   ;;  %v5622_v3 = vld [vmem:[%s9613_s26 + $0x4e] sm:$0xff]  ;;  %v5609_v21 = vld [vmem:[%s9613_s26 + $0x45] sm:$0xff] }
 0x49c   : >> { %v6758_v57 = vld [vmem:[%s10002_s7 + $0x118] sm:$0xff]   ;;  %v6763_v52 = vld [vmem:[%s10002_s7 + $0x190] sm:$0xff]   ;;  %v6765_v0 = vld [vmem:[%s10002_s7 + $0x1c8] sm:$0xff]  }
 0x49d   : >> { %6201 = vmatpush3.bf16.msra.mxu0 %v6734_v7  ;;  %v6759_v7 = vld [vmem:[%s10002_s7 + $0x198] sm:$0xff]   ;;  %v5610_v6 = vld [vmem:[%s9613_s26 + $0x4d] sm:$0xff]  ;;  %v6768_v56 = vld [vmem:[%s10002_s7 + $0x140] sm:$0xff]  }
 0x49e   : >> { %6253 = vmatpush3.bf16.msra.mxu1 %v6735_v8  ;;  %6202 = vmatprep.subr.bf16.mxu0 %v6736_v15  ;;  %v6760_v8 = vld [vmem:[%s10002_s7 + $0x150] sm:$0xff]   ;;  %v3664_v60 = vpack.c.bf16 %v5610_v6, %v5609_v21  ;;  %v6766_v53 = vld [vmem:[%s10002_s7 + $0x108] sm:$0xff]   ;;  %v5612_v62 = vld [vmem:[%s9613_s26 + $0x5d] sm:$0xff] }
 0x49f   : >> { %6254 = vmatprep.subr.bf16.mxu1 %v6737_v29  ;;  %v6761_v15 = vld [vmem:[%s10002_s7 + $0x1d0] sm:$0xff]   ;;  %v6769_v31 = vld [vmem:[%s10002_s7 + $0x1c0] sm:$0xff]   ;;  %v6772_v34 = vld [vmem:[%s10002_s7 + $0x278] sm:$0xff]  }
 0x4a0   : >> { %v5645_v29 = vld [vmem:[%s9613_s26 + $0x57] sm:$0xff]  ;;  %v5726_v45 = vld [vmem:[%s9613_s26 + $0x21] sm:$0xff]  ;;  %v5797_v47 = vld [vmem:[%s9613_s26 + $0x2a] sm:$0xff] }
 0x4a1   : >> { %6203 = vmatpush3.bf16.msra.mxu0 %v6738_v33  ;;  %v5646_v33 = vld [vmem:[%s9613_s26 + $0x5f] sm:$0xff]  ;;  %v5611_v46 = vld [vmem:[%s9613_s26 + $0x55] sm:$0xff]  ;;  %v5785_v39 = vld [vmem:[%s9613_s26 + $0x29] sm:$0xff] }
 0x4a2   : >> { %6255 = vmatpush3.bf16.msra.mxu1 %v6739_v17  ;;  %6292 = vmatprep.subr.bf16.mxu0 %v6740_v40  ;;  %v5621_v17 = vld [vmem:[%s9613_s26 + $0x46] sm:$0xff]  ;;  %v3756_v41 = vpack.c.bf16 %v5646_v33, %v5645_v29  ;;  %v5786_v58 = vld [vmem:[%s9613_s26 + $0x31] sm:$0xff]  ;;  %v5787_v19 = vld [vmem:[%s9613_s26 + $0x39] sm:$0xff] }
 0x4a3   : >> { %6344 = vmatprep.subr.bf16.mxu1 %v6741_v42  ;;  %v3684_v2 = vpack.c.bf16 %v5622_v3, %v5621_v17  ;;  %v5647_v40 = vld [vmem:[%s9613_s26 + $0x67] sm:$0xff]  ;;  %v5648_v42 = vld [vmem:[%s9613_s26 + $0x6f] sm:$0xff]  ;;  %v4421_v12 = vpack.c.bf16 %v5786_v58, %v5785_v39  ;;  %v5803_v29 = vld [vmem:[%s9613_s26 + $0x5a] sm:$0xff] }
 0x4a4   : >> { %3920 = vmatmul.mubr.bf16.vlgmr.msra.gmra.mxu0 %v3732_v43  ;;  %v6764_v43 = vld [vmem:[%s10002_s7 + $0x148] sm:$0xff]   ;;  %v6780_v33 = vld [vmem:[%s10002_s7 + $0x258] sm:$0xff]   ;;  %v5720_v6 = vld [vmem:[%s9613_s26 + $0x50] sm:$0xff] }
 0x4a5   : >> { %4097 = vmatmul.mubr.bf16.vlgmr.msra.gmra.mxu1 %v3660_v5  ;;  %6293 = vmatpush3.bf16.msra.mxu0 %v6742_v61  ;;  %v6767_v5 = vld [vmem:[%s10002_s7 + $0x188] sm:$0xff]   ;;  %v5623_v61 = vld [vmem:[%s9613_s26 + $0x56] sm:$0xff] }
 0x4a6   : >> { %6345 = vmatpush3.bf16.msra.mxu1 %v6743_v38  ;;  %6294 = vmatprep.subr.bf16.mxu0 %v6744_v36  ;;  %v5624_v38 = vld [vmem:[%s9613_s26 + $0x5e] sm:$0xff]  ;;  %v3757_v36 = vpack.c.bf16 %v5648_v42, %v5647_v40  ;;  %v6776_v28 = vld [vmem:[%s10002_s7 + $0x268] sm:$0xff]   ;;  %v5858_v39 = vld [vmem:[%s9613_s26 + $0x33] sm:$0xff] }
 0x4a7   : >> { %6346 = vmatprep.subr.bf16.mxu1 %v6745_v9  ;;  %3927 = vmatprep.mubr.bf16.mxu0 %v3753_v63  ;;  %v3685_v9 = vpack.c.bf16 %v5624_v38, %v5623_v61  ;;  %v5800_v11 = vld [vmem:[%s9613_s26 + $0x42] sm:$0xff]  ;;  %v5801_v24 = vld [vmem:[%s9613_s26 + $0x4a] sm:$0xff] }
 0x4a8   : >> { %4104 = vmatprep.mubr.bf16.mxu1 %v3681_v55  ;;  %v6770_v55 = vld [vmem:[%s10002_s7 + $0x100] sm:$0xff]   ;;  %v6777_v51 = vld [vmem:[%s10002_s7 + $0x228] sm:$0xff]  }
 0x4a9   : >> { %6295 = vmatpush3.bf16.msra.mxu0 %v6746_v49  ;;  %v6771_v49 = vld [vmem:[%s10002_s7 + $0x180] sm:$0xff]   ;;  %v5719_v21 = vld [vmem:[%s9613_s26 + $0x48] sm:$0xff] }
 0x4aa   : >> { %6347 = vmatpush3.bf16.msra.mxu1 %v6747_v32  ;;  %6296 = vmatprep.subr.bf16.mxu0 %v6748_v10  ;;  %v5725_v32 = vld [vmem:[%s9613_s26 + $0x19] sm:$0xff]  ;;  %v5788_v16 = vld [vmem:[%s9613_s26 + $0x41] sm:$0xff]  ;;  %v4162_v42 = vpack.c.bf16 %v5720_v6, %v5719_v21 }
 0x4ab   : >> { %6348 = vmatprep.subr.bf16.mxu1 %v6749_v59  ;;  %v4179_v10 = vpack.c.bf16 %v5726_v45, %v5725_v32  ;;  %v4422_v44 = vpack.c.bf16 %v5788_v16, %v5787_v19  ;;  %v5804_v17 = vld [vmem:[%s9613_s26 + $0x62] sm:$0xff]  ;;  %v5861_v19 = vld [vmem:[%s9613_s26 + $0x4b] sm:$0xff]  ;;  %v5862_v16 = vld [vmem:[%s9613_s26 + $0x53] sm:$0xff] }
 0x4ac   : >> { %3928 = vmatmul.mubr.bf16.gmra.mxu0 %v3752_v25  ;;  %v6762_v25 = vld [vmem:[%s10002_s7 + $0x110] sm:$0xff]   ;;  %v6784_v40 = vld [vmem:[%s10002_s7 + $0x248] sm:$0xff]   ;;  %v5863_v58 = vld [vmem:[%s9613_s26 + $0x5b] sm:$0xff] }
 0x4ad   : >> { %4105 = vmatmul.mubr.bf16.gmra.mxu1 %v3661_v4  ;;  %6297 = vmatpush3.bf16.msra.mxu0 %v6750_v14  ;;  %v5798_v4 = vld [vmem:[%s9613_s26 + $0x32] sm:$0xff] }
 0x4ae   : >> { %6349 = vmatpush3.bf16.msra.mxu1 %v6751_v30  ;;  %3935 = vmatprep.mubr.bf16.mxu0 %v3754_v27  ;;  %v4441_v59 = vpack.c.bf16 %v5798_v4, %v5797_v47  ;;  %v5713_v14 = vld [vmem:[%s9613_s26 + $0x18] sm:$0xff]  ;;  %v5714_v30 = vld [vmem:[%s9613_s26 + $0x20] sm:$0xff]  ;;  %v5723_v4 = vld [vmem:[%s9613_s26 + $0x68] sm:$0xff] }
 0x4af   : >> { %4112 = vmatprep.mubr.bf16.mxu1 %v3682_v35  ;;  %6298 = vmatprep.subr.bf16.mxu0 %v6752_v22  ;;  %v4159_v1 = vpack.c.bf16 %v5714_v30, %v5713_v14  ;;  %v5799_v35 = vld [vmem:[%s9613_s26 + $0x3a] sm:$0xff]  ;;  %v5857_v30 = vld [vmem:[%s9613_s26 + $0x2b] sm:$0xff] }
 0x4b0   : >> { %6350 = vmatprep.subr.bf16.mxu1 %v6753_v23  ;;  %v4442_v22 = vpack.c.bf16 %v5800_v11, %v5799_v35  ;;  %v6775_v23 = vld [vmem:[%s10002_s7 + $0x230] sm:$0xff]   ;;  %v5796_v14 = vld [vmem:[%s9613_s26 + $0x81] sm:$0xff]  ;;  %v4683_v35 = vpack.c.bf16 %v5858_v39, %v5857_v30 }
 0x4b1   : >> { %6299 = vmatpush3.bf16.msra.mxu0 %v6754_v20  ;;  %v5715_v20 = vld [vmem:[%s9613_s26 + $0x28] sm:$0xff]  ;;  %v5859_v11 = vld [vmem:[%s9613_s26 + $0x3b] sm:$0xff] }
 0x4b2   : >> { %6351 = vmatpush3.bf16.msra.mxu1 %v6755_v13  ;;  %6300 = vmatprep.subr.bf16.mxu0 %v6756_v50  ;;  %v5716_v13 = vld [vmem:[%s9613_s26 + $0x30] sm:$0xff] }
 0x4b3   : >> { %6352 = vmatprep.subr.bf16.mxu1 %v6757_v54  ;;  %v5717_v54 = vld [vmem:[%s9613_s26 + $0x38] sm:$0xff] }
 0x4b4   : >> { %3936 = vmatmul.mubr.bf16.gmra.mxu0 %v3753_v63  ;;  %v3665_v63 = vpack.c.bf16 %v5612_v62, %v5611_v46  ;;  %v5721_v46 = vld [vmem:[%s9613_s26 + $0x58] sm:$0xff]  ;;  %v5722_v62 = vld [vmem:[%s9613_s26 + $0x60] sm:$0xff] }
 0x4b5   : >> { %4113 = vmatmul.mubr.bf16.gmra.mxu1 %v3662_v37  ;;  %3943 = vmatprep.mubr.bf16.mxu0 %v3755_v18  ;;  %v6774_v37 = vld [vmem:[%s10002_s7 + $0x270] sm:$0xff]   ;;  %v4163_v32 = vpack.c.bf16 %v5722_v62, %v5721_v46 }
 0x4b6   : >> { %4120 = vmatprep.mubr.bf16.mxu1 %v3683_v26  ;;  %6301 = vmatpush3.bf16.msra.mxu0 %v6758_v57  ;;  %v5802_v26 = vld [vmem:[%s9613_s26 + $0x52] sm:$0xff]  ;;  %v6778_v57 = vld [vmem:[%s10002_s7 + $0x260] sm:$0xff]  }
 0x4b7   : >> { %6353 = vmatpush3.bf16.msra.mxu1 %v6759_v7  ;;  %6302 = vmatprep.subr.bf16.mxu0 %v6760_v8  ;;  %v4443_v50 = vpack.c.bf16 %v5802_v26, %v5801_v24  ;;  %v5789_v7 = vld [vmem:[%s9613_s26 + $0x49] sm:$0xff]  ;;  %v6779_v8 = vld [vmem:[%s10002_s7 + $0x220] sm:$0xff]  }
 0x4b8   : >> { %6354 = vmatprep.subr.bf16.mxu1 %v6761_v15  ;;  %v5790_v15 = vld [vmem:[%s9613_s26 + $0x51] sm:$0xff]  ;;  %v5868_v24 = vld [vmem:[%s9613_s26 + $0x83] sm:$0xff] }
 0x4ba   : >> { %6303 = vmatpush3.bf16.msra.mxu0 %v6762_v25  ;;  %v6781_v25 = vld [vmem:[%s10002_s7 + $0x218] sm:$0xff]  }
 0x4bb   : >> { %6355 = vmatpush3.bf16.msra.mxu1 %v6763_v52  ;;  %6304 = vmatprep.subr.bf16.mxu0 %v6764_v43  ;;  %v6782_v52 = vld [vmem:[%s10002_s7 + $0x250] sm:$0xff]   ;;  %v5792_v43 = vld [vmem:[%s9613_s26 + $0x61] sm:$0xff] }
 0x4bc   : >> { %3944 = vmatmul.mubr.bf16.gmra.mxu0 %v3754_v27  ;;  %6356 = vmatprep.subr.bf16.mxu1 %v6765_v0  ;;  %v6773_v27 = vld [vmem:[%s10002_s7 + $0x238] sm:$0xff]   ;;  %v6783_v0 = vld [vmem:[%s10002_s7 + $0x210] sm:$0xff]  }
 0x4bd   : >> { %4121 = vmatmul.mubr.bf16.gmra.mxu1 %v3663_v48  ;;  %3951 = vmatprep.mubr.bf16.mxu0 %v3756_v41  ;;  %v5718_v48 = vld [vmem:[%s9613_s26 + $0x40] sm:$0xff] }
 0x4be   : >> { %4128 = vmatprep.mubr.bf16.mxu1 %v3684_v2  ;;  %6305 = vmatpush3.bf16.msra.mxu0 %v6766_v53  ;;  %v4161_v3 = vpack.c.bf16 %v5718_v48, %v5717_v54  ;;  %v4444_v2 = vpack.c.bf16 %v5804_v17, %v5803_v29  ;;  %v5805_v53 = vld [vmem:[%s9613_s26 + $0x6a] sm:$0xff] }
 0x4bf   : >> { %6357 = vmatpush3.bf16.msra.mxu1 %v6767_v5  ;;  %6306 = vmatprep.subr.bf16.mxu0 %v6768_v56  ;;  %v5806_v5 = vld [vmem:[%s9613_s26 + $0x72] sm:$0xff]  ;;  %v5793_v56 = vld [vmem:[%s9613_s26 + $0x69] sm:$0xff] }
 0x4c0   : >> { %6358 = vmatprep.subr.bf16.mxu1 %v6769_v31  ;;  %v4445_v38 = vpack.c.bf16 %v5806_v5, %v5805_v53  ;;  %v5794_v31 = vld [vmem:[%s9613_s26 + $0x71] sm:$0xff] }
 0x4c1   : >> { %v4425_v45 = vpack.c.bf16 %v5794_v31, %v5793_v56 }
 0x4c2   : >> { %6307 = vmatpush3.bf16.msra.mxu0 %v6770_v55  ;;  %v5807_v55 = vld [vmem:[%s9613_s26 + $0x7a] sm:$0xff] }
 0x4c3   : >> { %6359 = vmatpush3.bf16.msra.mxu1 %v6771_v49  ;;  %6396 = vmatprep.subr.bf16.mxu0 %v6772_v34  ;;  %v5808_v49 = vld [vmem:[%s9613_s26 + $0x82] sm:$0xff] }
 0x4c4   : >> { %3952 = vmatmul.mubr.bf16.gmra.mxu0 %v3755_v18  ;;  %6484 = vmatprep.subr.bf16.mxu1 %v6772_v34  ;;  %v4160_v18 = vpack.c.bf16 %v5716_v13, %v5715_v20  ;;  %v4446_v47 = vpack.c.bf16 %v5808_v49, %v5807_v55  ;;  %v5864_v34 = vld [vmem:[%s9613_s26 + $0x63] sm:$0xff] }
 0x4c5   : >> { %4129 = vmatmul.mubr.bf16.gmra.mxu1 %v3664_v60  ;;  %3959 = vmatprep.mubr.bf16.mxu0 %v3757_v36  ;;  %v5791_v60 = vld [vmem:[%s9613_s26 + $0x59] sm:$0xff]  ;;  %v6785_v36 = vld [vmem:[%s10002_s7 + $0x208] sm:$0xff]  }
 0x4c6   : >> { %4136 = vmatprep.mubr.bf16.mxu1 %v3685_v9  ;;  %v4424_v61 = vpack.c.bf16 %v5792_v43, %v5791_v60  ;;  %v6786_v9 = vld [vmem:[%s10002_s7 + $0x240] sm:$0xff]  }
 0x4cc   : >> { %3960 = vmatmul.mubr.bf16.gmra.mxu0 %v3756_v41  ;;  %v4423_v41 = vpack.c.bf16 %v5790_v15, %v5789_v7 }
 0x4cd   : >> { %4137 = vmatmul.mubr.bf16.gmra.mxu1 %v3665_v63  ;;  %4346 = vmatprep.mubr.bf16.mxu0 %v4179_v10  ;;  %v6787_v63 = vld [vmem:[%s10002_s7 + $0x200] sm:$0xff]   ;;  %v5724_v10 = vld [vmem:[%s9613_s26 + $0x70] sm:$0xff] }
 0x4ce   : >> { %4608 = vmatprep.mubr.bf16.mxu1 %v4441_v59  ;;  %v5795_v59 = vld [vmem:[%s9613_s26 + $0x79] sm:$0xff] }
 0x4d4   : >> { %4347 = vmatmul.mubr.bf16.vlgmr.msra.gmra.mxu0 %v4159_v1  ;;  %v4164_v1 = vpack.c.bf16 %v5724_v10, %v5723_v4 }
 0x4d5   : >> { %4609 = vmatmul.mubr.bf16.vlgmr.msra.gmra.mxu1 %v4421_v12  ;;  %6397 = vmatpush3.bf16.msra.mxu0 %v6773_v27 }
 0x4d6   : >> { %6492 = vmatpush3.bf16.msra.mxu1 %v6773_v27  ;;  %6398 = vmatprep.subr.bf16.mxu0 %v6774_v37  ;;  %v4426_v27 = vpack.c.bf16 %v5796_v14, %v5795_v59 }
 0x4d7   : >> { %6485 = vmatprep.subr.bf16.mxu1 %v6774_v37  ;;  %4354 = vmatprep.mubr.bf16.mxu0 %v4421_v12  ;;  %v4686_v12 = vpack.c.bf16 %v5864_v34, %v5863_v58  ;;  %v5860_v37 = vld [vmem:[%s9613_s26 + $0x43] sm:$0xff] }
 0x4d8   : >> { %4616 = vmatprep.mubr.bf16.mxu1 %v4442_v22  ;;  %v5865_v22 = vld [vmem:[%s9613_s26 + $0x6b] sm:$0xff]  ;;  %v4684_v20 = vpack.c.bf16 %v5860_v37, %v5859_v11 }
 0x4d9   : >> { %6399 = vmatpush3.bf16.msra.mxu0 %v6775_v23 }
 0x4da   : >> { %6493 = vmatpush3.bf16.msra.mxu1 %v6775_v23  ;;  %6400 = vmatprep.subr.bf16.mxu0 %v6776_v28  ;;  %v5866_v23 = vld [vmem:[%s9613_s26 + $0x73] sm:$0xff] }
 0x4db   : >> { %6486 = vmatprep.subr.bf16.mxu1 %v6776_v28  ;;  %v4687_v13 = vpack.c.bf16 %v5866_v23, %v5865_v22  ;;  %v5867_v28 = vld [vmem:[%s9613_s26 + $0x7b] sm:$0xff] }
 0x4dc   : >> { %4355 = vmatmul.mubr.bf16.gmra.mxu0 %v4160_v18  ;;  %v4685_v18 = vpack.c.bf16 %v5862_v16, %v5861_v19  ;;  %v4688_v26 = vpack.c.bf16 %v5868_v24, %v5867_v28 }
 0x4dd   : >> { %4617 = vmatmul.mubr.bf16.gmra.mxu1 %v4422_v44  ;;  %6401 = vmatpush3.bf16.msra.mxu0 %v6777_v51 }
 0x4de   : >> { %6494 = vmatpush3.bf16.msra.mxu1 %v6777_v51  ;;  %4362 = vmatprep.mubr.bf16.mxu0 %v4422_v44 }
 0x4df   : >> { %4624 = vmatprep.mubr.bf16.mxu1 %v4443_v50  ;;  %6402 = vmatprep.subr.bf16.mxu0 %v6778_v57 }
 0x4e0   : >> { %6487 = vmatprep.subr.bf16.mxu1 %v6778_v57 }
 0x4e1   : >> { %6403 = vmatpush3.bf16.msra.mxu0 %v6779_v8 }
 0x4e2   : >> { %6495 = vmatpush3.bf16.msra.mxu1 %v6779_v8  ;;  %6404 = vmatprep.subr.bf16.mxu0 %v6780_v33 }
 0x4e3   : >> { %6488 = vmatprep.subr.bf16.mxu1 %v6780_v33 }
 0x4e4   : >> { %4363 = vmatmul.mubr.bf16.gmra.mxu0 %v4161_v3 }
 0x4e5   : >> { %4625 = vmatmul.mubr.bf16.gmra.mxu1 %v4423_v41  ;;  %4370 = vmatprep.mubr.bf16.mxu0 %v4423_v41 }
 0x4e6   : >> { %4632 = vmatprep.mubr.bf16.mxu1 %v4444_v2  ;;  %6405 = vmatpush3.bf16.msra.mxu0 %v6781_v25 }
 0x4e7   : >> { %6496 = vmatpush3.bf16.msra.mxu1 %v6781_v25  ;;  %6406 = vmatprep.subr.bf16.mxu0 %v6782_v52 }
 0x4e8   : >> { %6489 = vmatprep.subr.bf16.mxu1 %v6782_v52 }
 0x4ea   : >> { %6407 = vmatpush3.bf16.msra.mxu0 %v6783_v0 }
 0x4eb   : >> { %6497 = vmatpush3.bf16.msra.mxu1 %v6783_v0  ;;  %6408 = vmatprep.subr.bf16.mxu0 %v6784_v40 }
 0x4ec   : >> { %4371 = vmatmul.mubr.bf16.gmra.mxu0 %v4162_v42  ;;  %6490 = vmatprep.subr.bf16.mxu1 %v6784_v40 }
 0x4ed   : >> { %4633 = vmatmul.mubr.bf16.gmra.mxu1 %v4424_v61  ;;  %4378 = vmatprep.mubr.bf16.mxu0 %v4424_v61 }
 0x4ee   : >> { %4640 = vmatprep.mubr.bf16.mxu1 %v4445_v38  ;;  %6409 = vmatpush3.bf16.msra.mxu0 %v6785_v36 }
 0x4ef   : >> { %6498 = vmatpush3.bf16.msra.mxu1 %v6785_v36  ;;  %6410 = vmatprep.subr.bf16.mxu0 %v6786_v9 }
 0x4f0   : >> { %6491 = vmatprep.subr.bf16.mxu1 %v6786_v9 }
 0x4f2   : >> { %6411 = vmatpush3.bf16.msra.mxu0 %v6787_v63 }
 0x4f3   : >> { %6499 = vmatpush3.bf16.msra.mxu1 %v6787_v63 }
 0x4f4   : >> { %4379 = vmatmul.mubr.bf16.gmra.mxu0 %v4163_v32 }
 0x4f5   : >> { %4641 = vmatmul.mubr.bf16.gmra.mxu1 %v4425_v45  ;;  %4386 = vmatprep.mubr.bf16.mxu0 %v4425_v45 }
 0x4f6   : >> { %4648 = vmatprep.mubr.bf16.mxu1 %v4446_v47 }
 0x4fc   : >> { %4387 = vmatmul.mubr.bf16.gmra.mxu0 %v4164_v1 }
 0x4fd   : >> { %4649 = vmatmul.mubr.bf16.gmra.mxu1 %v4426_v27  ;;  %4850 = vmatprep.mubr.bf16.mxu0 %v4683_v35 }
 0x4fe   : >> { %4874 = vmatprep.mubr.bf16.mxu1 %v4686_v12 }
 0x504   : >> { %4851 = vmatmul.mubr.bf16.vlgmr.msra.gmra.mxu0 %v4683_v35 }
 0x505   : >> { %4875 = vmatmul.mubr.bf16.vlgmr.msra.gmra.mxu1 %v4686_v12  ;;  %4858 = vmatprep.mubr.bf16.mxu0 %v4684_v20 }
 0x506   : >> { %4882 = vmatprep.mubr.bf16.mxu1 %v4687_v13 }
 0x50c   : >> { %4859 = vmatmul.mubr.bf16.gmra.mxu0 %v4684_v20 }
 0x50d   : >> { %4883 = vmatmul.mubr.bf16.gmra.mxu1 %v4687_v13  ;;  %4866 = vmatprep.mubr.bf16.mxu0 %v4685_v18 }
 0x50e   : >> { %4890 = vmatprep.mubr.bf16.mxu1 %v4688_v26 }
 0x514   : >> { %4867 = vmatmul.mubr.bf16.gmra.mxu0 %v4685_v18 }
 0x515   : >> { %4891 = vmatmul.mubr.bf16.gmra.mxu1 %v4688_v26 }
 0x564   : >> { %v6204_v44 = vpop.f32.mrf.mxu0 }
 0x565   : >> { %v6256_v51 = vpop.f32.mrf.mxu1 }
 0x566   : >> { %v6205_v50 = vpop.f32.mrf.mxu0 }
 0x567   : >> { %v6206_v54 = vadd.f32 %v6205_v50, %v6204_v44  ;;  %v6257_v48 = vpop.f32.mrf.mxu1 }
 0x568   : >> { %v6258_v57 = vadd.f32 %v6257_v48, %v6256_v51  ;;  %v6207_v7 = vpop.f32.mrf.mxu0 }
 0x569   : >> { %v6259_v8 = vpop.f32.mrf.mxu1 }
 0x56a   : >> { %v9847_v15 = vadd.f32 %v6258_v57, %v6206_v54  ;;  %v6208_v29 = vpop.f32.mrf.mxu0 }
 0x56b   : >> { %v6209_v33 = vadd.f32 %v6208_v29, %v6207_v7  ;;  %v6260_v17 = vpop.f32.mrf.mxu1 }
 0x56c   : >> { %v6261_v3 = vadd.f32 %v6260_v17, %v6259_v8  ;;  %v6210_v2 = vpop.f32.mrf.mxu0 }
 0x56d   : >> { %v6262_v25 = vpop.f32.mrf.mxu1 }
 0x56e   : >> { %v9849_v41 = vadd.f32 %v6261_v3, %v6209_v33  ;;  %v6211_v52 = vpop.f32.mrf.mxu0 }
 0x56f   : >> { %v6212_v21 = vadd.f32 %v6211_v52, %v6210_v2  ;;  %v6263_v6 = vpop.f32.mrf.mxu1 }
 0x570   : >> { %v6264_v60 = vadd.f32 %v6263_v6, %v6262_v25  ;;  %v6213_v43 = vpop.f32.mrf.mxu0 }
 0x571   : >> { %v6265_v0 = vpop.f32.mrf.mxu1 }
 0x572   : >> { %v9851_v53 = vadd.f32 %v6264_v60, %v6212_v21  ;;  %v6214_v5 = vpop.f32.mrf.mxu0 }
 0x573   : >> { %v6215_v40 = vadd.f32 %v6214_v5, %v6213_v43  ;;  %v6266_v42 = vpop.f32.mrf.mxu1 }
 0x574   : >> { %v6267_v61 = vadd.f32 %v6266_v42, %v6265_v0  ;;  %v6216_v38 = vpop.f32.mrf.mxu0 }
 0x575   : >> { %v6268_v36 = vpop.f32.mrf.mxu1 }
 0x576   : >> { %v9853_v9 = vadd.f32 %v6267_v61, %v6215_v40  ;;  %v6217_v46 = vpop.f32.mrf.mxu0 }
 0x577   : >> { %v6218_v62 = vadd.f32 %v6217_v46, %v6216_v38  ;;  %v6269_v56 = vpop.f32.mrf.mxu1 }
 0x578   : >> { %v6270_v31 = vadd.f32 %v6269_v56, %v6268_v36  ;;  %v6219_v63 = vpop.f32.mrf.mxu0 }
 0x579   : >> { %v6271_v55 = vpop.f32.mrf.mxu1 }
 0x57a   : >> { %v9855_v49 = vadd.f32 %v6270_v31, %v6218_v62  ;;  %v6220_v32 = vpop.f32.mrf.mxu0 }
 0x57b   : >> { %v6221_v45 = vadd.f32 %v6220_v32, %v6219_v63  ;;  %v6272_v47 = vpop.f32.mrf.mxu1 }
 0x57c   : >> { %v6273_v4 = vadd.f32 %v6272_v47, %v6271_v55  ;;  %v6222_v10 = vpop.f32.mrf.mxu0 }
 0x57d   : >> { %v6274_v59 = vpop.f32.mrf.mxu1 }
 0x57e   : >> { %v9857_v14 = vadd.f32 %v6273_v4, %v6221_v45  ;;  %v6223_v30 = vpop.f32.mrf.mxu0 }
 0x57f   : >> { %v6224_v39 = vadd.f32 %v6223_v30, %v6222_v10  ;;  %v6275_v58 = vpop.f32.mrf.mxu1 }
 0x580   : >> { %10385 = vst [vmem:[#allocation48_spill] sm:$0xff] %v9857_v14  ;;  %v6276_v34 = vadd.f32 %v6275_v58, %v6274_v59  ;;  %v6225_v1 = vpop.f32.mrf.mxu0 }
 0x581   : >> { %v6277_v27 = vpop.f32.mrf.mxu1 }
 0x582   : >> { %v9859_v35 = vadd.f32 %v6276_v34, %v6224_v39  ;;  %v6226_v12 = vpop.f32.mrf.mxu0 }
 0x583   : >> { %v6227_v11 = vadd.f32 %v6226_v12, %v6225_v1  ;;  %v6278_v37 = vpop.f32.mrf.mxu1 }
 0x584   : >> { %v6279_v22 = vadd.f32 %v6278_v37, %v6277_v27  ;;  %v6228_v23 = vpop.f32.mrf.mxu0 }
 0x585   : >> { %v6280_v20 = vpop.f32.mrf.mxu1 }
 0x586   : >> { %v9861_v13 = vadd.f32 %v6279_v22, %v6227_v11  ;;  %v6229_v19 = vpop.f32.mrf.mxu0 }
 0x587   : >> { %v6230_v16 = vadd.f32 %v6229_v19, %v6228_v23  ;;  %v6281_v28 = vpop.f32.mrf.mxu1 }
 0x588   : >> { %v6282_v24 = vadd.f32 %v6281_v28, %v6280_v20  ;;  %v6231_v18 = vpop.f32.mrf.mxu0 }
 0x589   : >> { %v6283_v26 = vpop.f32.mrf.mxu1 }
 0x58a   : >> { %v9863_v44 = vadd.f32 %v6282_v24, %v6230_v16  ;;  %v6232_v51 = vpop.f32.mrf.mxu0 }
 0x58b   : >> { %v6233_v50 = vadd.f32 %v6232_v51, %v6231_v18  ;;  %v6284_v54 = vpop.f32.mrf.mxu1 }
 0x58c   : >> { %v6285_v48 = vadd.f32 %v6284_v54, %v6283_v26  ;;  %v6234_v57 = vpop.f32.mrf.mxu0 }
 0x58d   : >> { %v6286_v7 = vpop.f32.mrf.mxu1 }
 0x58e   : >> { %v9865_v8 = vadd.f32 %v6285_v48, %v6233_v50  ;;  %v6235_v29 = vpop.f32.mrf.mxu0 }
 0x58f   : >> { %v6236_v33 = vadd.f32 %v6235_v29, %v6234_v57  ;;  %v6287_v17 = vpop.f32.mrf.mxu1 }
 0x590   : >> { %v6288_v3 = vadd.f32 %v6287_v17, %v6286_v7  ;;  %v6237_v2 = vpop.f32.mrf.mxu0 }
 0x591   : >> { %v6289_v25 = vpop.f32.mrf.mxu1 }
 0x592   : >> { %v9867_v52 = vadd.f32 %v6288_v3, %v6236_v33  ;;  %v6238_v21 = vpop.f32.mrf.mxu0 }
 0x593   : >> { %v6239_v6 = vadd.f32 %v6238_v21, %v6237_v2  ;;  %v6290_v60 = vpop.f32.mrf.mxu1 }
 0x594   : >> { %v6291_v43 = vadd.f32 %v6290_v60, %v6289_v25  ;;  %v6308_v0 = vpop.f32.mrf.mxu0 }
 0x595   : >> { %v6360_v5 = vpop.f32.mrf.mxu1 }
 0x596   : >> { %v9869_v40 = vadd.f32 %v6291_v43, %v6239_v6  ;;  %v6309_v42 = vpop.f32.mrf.mxu0 }
 0x597   : >> { %v6361_v61 = vpop.f32.mrf.mxu1  ;;  %v6310_v33 = vadd.f32 %v6309_v42, %v6308_v0 }
 0x598   : >> { %10386 = vst [vmem:[#allocation49_spill] sm:$0xff] %v9869_v40  ;;  %v6311_v38 = vpop.f32.mrf.mxu0  ;;  %v6362_v14 = vadd.f32 %v6361_v61, %v6360_v5 }
 0x599   : >> { %v6363_v36 = vpop.f32.mrf.mxu1  ;;  %v4395_v60 = vadd.f32 %v6310_v33, %v9847_v15 }
 0x59a   : >> { %v6312_v46 = vpop.f32.mrf.mxu0 }
 0x59b   : >> { %v6364_v62 = vpop.f32.mrf.mxu1  ;;  %v6313_v21 = vadd.f32 %v6312_v46, %v6311_v38 }
 0x59c   : >> { %v6314_v56 = vpop.f32.mrf.mxu0  ;;  %v6365_v38 = vadd.f32 %v6364_v62, %v6363_v36 }
 0x59d   : >> { %v9871_v31 = vpop.f32.mrf.mxu1 }
 0x59e   : >> { %v6315_v63 = vpop.f32.mrf.mxu0 }
 0x59f   : >> { %v9873_v55 = vpop.f32.mrf.mxu1  ;;  %v6316_v0 = vadd.f32 %v6315_v63, %v6314_v56 }
 0x5a0   : >> { %v9875_v32 = vpop.f32.mrf.mxu0 }
 0x5a1   : >> { %v9877_v45 = vpop.f32.mrf.mxu1 }
 0x5a2   : >> { %v6318_v47 = vpop.f32.mrf.mxu0 }
 0x5a3   : >> { %v9879_v4 = vpop.f32.mrf.mxu1  ;;  %v6319_v36 = vadd.f32 %v6318_v47, %v9875_v32 }
 0x5a4   : >> { %v9881_v10 = vpop.f32.mrf.mxu0 }
 0x5a5   : >> { %v9883_v59 = vpop.f32.mrf.mxu1 }
 0x5a6   : >> { %v9885_v30 = vpop.f32.mrf.mxu0 }
 0x5a7   : >> { %v9887_v39 = vpop.f32.mrf.mxu1 }
 0x5a8   : >> { %v9889_v58 = vpop.f32.mrf.mxu0 }
 0x5a9   : >> { %v9891_v34 = vpop.f32.mrf.mxu1 }
 0x5aa   : >> { %10387 = vst [vmem:[#allocation50_spill] sm:$0xff] %v9891_v34  ;;  %v9893_v1 = vpop.f32.mrf.mxu0 }
 0x5ab   : >> { %v9895_v27 = vpop.f32.mrf.mxu1 }
 0x5ac   : >> { %10388 = vst [vmem:[#allocation51_spill] sm:$0xff] %v9895_v27  ;;  %v6326_v12 = vpop.f32.mrf.mxu0 }
 0x5ad   : >> { %v6378_v11 = vpop.f32.mrf.mxu1 }
 0x5ae   : >> { %v6327_v37 = vpop.f32.mrf.mxu0 }
 0x5af   : >> { %v6379_v22 = vpop.f32.mrf.mxu1  ;;  %v6328_v3 = vadd.f32 %v6327_v37, %v6326_v12  ;;  %v4396_v12 = vadd.f32 %v6313_v21, %v9849_v41  ;;  %v4397_v41 = vadd.f32 %v6316_v0, %v9851_v53 }
 0x5b0   : >> { %v6329_v23 = vpop.f32.mrf.mxu0  ;;  %v6380_v37 = vadd.f32 %v6379_v22, %v6378_v11 }
 0x5b1   : >> { %v6381_v20 = vpop.f32.mrf.mxu1  ;;  %v4401_v27 = vadd.f32 %v6328_v3, %v9859_v35  ;;  %v9926_v35 = vld [vmem:[%s10003_s8] ss:$0 sm:$0xff]  ;;  %v4658_v63 = vadd.f32 %v6365_v38, %v4396_v12 }
 0x5b2   : >> { %v6330_v19 = vpop.f32.mrf.mxu0 }
 0x5b3   : >> { %v6382_v16 = vpop.f32.mrf.mxu1  ;;  %v6331_v34 = vadd.f32 %v6330_v19, %v6329_v23  ;;  %v4663_v15 = vadd.f32 %v6380_v37, %v4401_v27 }
 0x5b4   : >> { %v6332_v28 = vpop.f32.mrf.mxu0 }
 0x5b5   : >> { %v9897_v24 = vpop.f32.mrf.mxu1  ;;  %v4402_v33 = vadd.f32 %v6331_v34, %v9861_v13  ;;  %v6368_v34 = vadd.f32 %v9873_v55, %v9871_v31  ;;  %v6322_v31 = vadd.f32 %v9885_v30, %v9881_v10 }
 0x5b6   : >> { %v6333_v18 = vpop.f32.mrf.mxu0 }
 0x5b7   : >> { %v6385_v26 = vpop.f32.mrf.mxu1 }
 0x5b8   : >> { %v6335_v51 = vpop.f32.mrf.mxu0  ;;  %v6386_v55 = vadd.f32 %v6385_v26, %v9897_v24 }
 0x5b9   : >> { %v9899_v50 = vpop.f32.mrf.mxu1 }
 0x5ba   : >> { %v6336_v54 = vpop.f32.mrf.mxu0 }
 0x5bb   : >> { %v9901_v48 = vpop.f32.mrf.mxu1  ;;  %v6337_v27 = vadd.f32 %v6336_v54, %v6335_v51 }
 0x5bc   : >> { %v9903_v57 = vpop.f32.mrf.mxu0 }
 0x5bd   : >> { %v9905_v7 = vpop.f32.mrf.mxu1 }
 0x5be   : >> { %10389 = vst [vmem:[#allocation52_spill] sm:$0xff] %v9905_v7  ;;  %v9907_v29 = vpop.f32.mrf.mxu0  ;;  %v4657_v7 = vadd.f32 %v6362_v14, %v4395_v60  ;;  %v6389_v60 = vadd.f32 %v9901_v48, %v9899_v50 }
 0x5bf   : >> { %v9909_v17 = vpop.f32.mrf.mxu1  ;;  %v6340_v10 = vadd.f32 %v9907_v29, %v9903_v57  ;;  %v6325_v57 = vadd.f32 %v9893_v1, %v9889_v58 }
 0x5c0   : >> { %10390 = vst [vmem:[#allocation53_spill] sm:$0xff] %v9909_v17  ;;  %v9911_v2 = vpop.f32.mrf.mxu0 }
 0x5c1   : >> { %v9913_v25 = vpop.f32.mrf.mxu1  ;;  %v4405_v50 = vadd.f32 %v6340_v10, %v9867_v52 }
 0x5c2   : >> { %10391 = vst [vmem:[#allocation54_spill] sm:$0xff] %v9913_v25  ;;  %v9915_v6 = vpop.f32.mrf.mxu0 }
 0x5c3   : >> { %v9918_v43 = vpop.f32.mrf.mxu1  ;;  %v6343_v48 = vadd.f32 %v9915_v6, %v9911_v2  ;;  %v10395_v2 = vld [vmem:[#allocation48_spill] sm:$0xff] }
 0x5c4   : >> { %10392 = vst [vmem:[#allocation55_spill] sm:$0xff] %v9918_v43  ;;  %v6412_v40 = vpop.f32.mrf.mxu0  ;;  %v6334_v43 = vadd.f32 %v6333_v18, %v6332_v28  ;;  %v4400_v6 = vadd.f32 %v6325_v57, %v10395_v2 }
 0x5c5   : >> { %v6430_v42 = vpop.f32.mrf.mxu1  ;;  %v10393_v1 = vld [vmem:[#allocation52_spill] sm:$0xff] }
 0x5c6   : >> { %v6413_v17 = vpop.f32.mrf.mxu0  ;;  %v4403_v19 = vadd.f32 %v6334_v43, %v9863_v44  ;;  %v6371_v44 = vadd.f32 %v9879_v4, %v9877_v45 }
 0x5c7   : >> { %v6414_v46 = vadd.f32 %v6413_v17, %v6412_v40  ;;  %v6431_v25 = vpop.f32.mrf.mxu1  ;;  %v6383_v40 = vadd.f32 %v6382_v16, %v6381_v20  ;;  %v4659_v16 = vadd.f32 %v6368_v34, %v4397_v41  ;;  %v4404_v17 = vadd.f32 %v6337_v27, %v9865_v8 }
 0x5c8   : >> { %v6432_v5 = vadd.f32 %v6431_v25, %v6430_v42  ;;  %v6415_v61 = vpop.f32.mrf.mxu0  ;;  %v4399_v8 = vadd.f32 %v6322_v31, %v9855_v49 }
 0x5c9   : >> { %v4899_v56 = vadd.f32 %v6414_v46, %v4657_v7  ;;  %v6433_v14 = vpop.f32.mrf.mxu1  ;;  %v4664_v23 = vadd.f32 %v6383_v40, %v4402_v33  ;;  %v4398_v7 = vadd.f32 %v6319_v36, %v9853_v9  ;;  %v4665_v9 = vadd.f32 %v6386_v55, %v4403_v19 }
 0x5ca   : >> { %v4905_v13 = vadd.f32 %v6432_v5, %v4663_v15  ;;  %v6416_v62 = vpop.f32.mrf.mxu0  ;;  %v4666_v29 = vadd.f32 %v6389_v60, %v4404_v17  ;;  %v6374_v33 = vadd.f32 %v9887_v39, %v9883_v59  ;;  %v10396_v59 = vld [vmem:[#allocation49_spill] sm:$0xff] }
 0x5cb   : >> { %v4918_v11 = vadd.f32 %v9926_v35, %v4899_v56  ;;  %v6417_v53 = vadd.f32 %v6416_v62, %v6415_v61  ;;  %v6434_v22 = vpop.f32.mrf.mxu1  ;;  %v4660_v43 = vadd.f32 %v6371_v44, %v4398_v7  ;;  %v10394_v61 = vld [vmem:[#allocation53_spill] sm:$0xff]  ;;  %v4406_v39 = vadd.f32 %v6343_v48, %v10396_v59 }
 0x5cc   : >> { %v4924_v32 = vadd.f32 %v9926_v35, %v4905_v13  ;;  %v6435_v47 = vadd.f32 %v6434_v22, %v6433_v14  ;;  %v6418_v20 = vpop.f32.mrf.mxu0  ;;  %v6392_v41 = vadd.f32 %v10394_v61, %v10393_v1  ;;  %v4661_v14 = vadd.f32 %v6374_v33, %v4399_v8 }
 0x5cd   : >> { %4931 = vst [vmem:[%s9933_s13] sm:$0xff] %v4918_v11  ;;  %v4900_v28 = vadd.f32 %v6417_v53, %v4658_v63  ;;  %v6436_v18 = vpop.f32.mrf.mxu1  ;;  %v10397_v11 = vld [vmem:[#allocation50_spill] sm:$0xff]  ;;  %v10398_v53 = vld [vmem:[#allocation51_spill] sm:$0xff] }
 0x5ce   : >> { %4937 = vst [vmem:[%s9933_s13 + $0x30] sm:$0xff] %v4924_v32  ;;  %v4906_v51 = vadd.f32 %v6435_v47, %v4664_v23  ;;  %v6419_v54 = vpop.f32.mrf.mxu0  ;;  %v4667_v13 = vadd.f32 %v6392_v41, %v4405_v50  ;;  %v6377_v22 = vadd.f32 %v10398_v53, %v10397_v11  ;;  %v10399_v32 = vld [vmem:[#allocation54_spill] sm:$0xff]  ;;  %v10400_v47 = vld [vmem:[#allocation55_spill] sm:$0xff] }
 0x5cf   : >> { %v4919_v3 = vadd.f32 %v9926_v35, %v4900_v28  ;;  %v6420_v25 = vadd.f32 %v6419_v54, %v6418_v20  ;;  %v6437_v21 = vpop.f32.mrf.mxu1  ;;  %v6395_v20 = vadd.f32 %v10400_v47, %v10399_v32 }
 0x5d0   : >> { %v4925_v30 = vadd.f32 %v9926_v35, %v4906_v51  ;;  %v6438_v24 = vadd.f32 %v6437_v21, %v6436_v18  ;;  %v6421_v26 = vpop.f32.mrf.mxu0  ;;  %v4662_v18 = vadd.f32 %v6377_v22, %v4400_v6 }
 0x5d1   : >> { %4932 = vst [vmem:[%s9933_s13 + $0x8] sm:$0xff] %v4919_v3  ;;  %v4901_v45 = vadd.f32 %v6420_v25, %v4659_v16  ;;  %v6439_v4 = vpop.f32.mrf.mxu1  ;;  %v4668_v51 = vadd.f32 %v6395_v20, %v4406_v39 }
 0x5d2   : >> { %4938 = vst [vmem:[%s9933_s13 + $0x38] sm:$0xff] %v4925_v30  ;;  %v4907_v0 = vadd.f32 %v6438_v24, %v4665_v9  ;;  %v6422_v42 = vpop.f32.mrf.mxu0 }
 0x5d3   : >> { %v4920_v12 = vadd.f32 %v9926_v35, %v4901_v45  ;;  %v6423_v37 = vadd.f32 %v6422_v42, %v6421_v26  ;;  %v6440_v38 = vpop.f32.mrf.mxu1 }
 0x5d4   : >> { %v4926_v46 = vadd.f32 %v9926_v35, %v4907_v0  ;;  %v6441_v49 = vadd.f32 %v6440_v38, %v6439_v4  ;;  %v6424_v15 = vpop.f32.mrf.mxu0 }
 0x5d5   : >> { %4933 = vst [vmem:[%s9933_s13 + $0x10] sm:$0xff] %v4920_v12  ;;  %v4902_v5 = vadd.f32 %v6423_v37, %v4660_v43  ;;  %v6442_v58 = vpop.f32.mrf.mxu1 }
 0x5d6   : >> { %4939 = vst [vmem:[%s9933_s13 + $0x40] sm:$0xff] %v4926_v46  ;;  %v4908_v56 = vadd.f32 %v6441_v49, %v4666_v29  ;;  %v6425_v52 = vpop.f32.mrf.mxu0 }
 0x5d7   : >> { %v4921_v63 = vadd.f32 %v9926_v35, %v4902_v5  ;;  %v6426_v36 = vadd.f32 %v6425_v52, %v6424_v15  ;;  %v6443_v40 = vpop.f32.mrf.mxu1 }
 0x5d8   : >> { %v4927_v62 = vadd.f32 %v9926_v35, %v4908_v56  ;;  %v6444_v34 = vadd.f32 %v6443_v40, %v6442_v58  ;;  %v6427_v27 = vpop.f32.mrf.mxu0 }
 0x5d9   : >> { %4934 = vst [vmem:[%s9933_s13 + $0x18] sm:$0xff] %v4921_v63  ;;  %v4903_v23 = vadd.f32 %v6426_v36, %v4661_v14  ;;  %v6445_v19 = vpop.f32.mrf.mxu1 }
 0x5da   : >> { %4940 = vst [vmem:[%s9933_s13 + $0x48] sm:$0xff] %v4927_v62  ;;  %v4909_v16 = vadd.f32 %v6444_v34, %v4667_v13  ;;  %v6428_v28 = vpop.f32.mrf.mxu0 }
 0x5db   : >> { %v4922_v7 = vadd.f32 %v9926_v35, %v4903_v23  ;;  %v6429_v31 = vadd.f32 %v6428_v28, %v6427_v27  ;;  %v6446_v55 = vpop.f32.mrf.mxu1 }
 0x5dc   : >> { %v4928_v54 = vadd.f32 %v9926_v35, %v4909_v16  ;;  %v6447_v44 = vadd.f32 %v6446_v55, %v6445_v19 }
 0x5dd   : >> { %4935 = vst [vmem:[%s9933_s13 + $0x20] sm:$0xff] %v4922_v7  ;;  %v4904_v17 = vadd.f32 %v6429_v31, %v4662_v18 }
 0x5de   : >> { %4941 = vst [vmem:[%s9933_s13 + $0x50] sm:$0xff] %v4928_v54  ;;  %v4910_v3 = vadd.f32 %v6447_v44, %v4668_v51  ;;  %3643 = sbr.rel (!%p3641_p7) target bundleno = 1154 (0x482), region = 186 }
 0x5df   : >> { %v4923_v25 = vadd.f32 %v9926_v35, %v4904_v17 }
 0x5e0   : >> { %v4929_v21 = vadd.f32 %v9926_v35, %v4910_v3 }
 0x5e1   : >> { %4936 = vst [vmem:[%s9933_s13 + $0x28] sm:$0xff] %v4923_v25 }
 0x5e2   : >> { %4942 = vst [vmem:[%s9933_s13 + $0x58] sm:$0xff] %v4929_v21 }
 0x5e3 PF: > { %s19_s30 = sadd.s32 1, %s6810_s30  }
 0x5e4   : > { %p16_p8 = scmp.ge.s32.totalorder %s19_s30, 4  }
 0x5e6   :  { %18 = sbr.rel (!%p16_p8) target bundleno = 1 (0x1), region = 197 }

</bundles_post_ra>
